<compile_context>
chip_gen: v7x
topology: tpu7x:2x2x1
jax: 0.10.0
libtpu: 0.0.40
codegen_flags: <defaults>
</compile_context>

<pallas_src>
import math

import jax
import jax.numpy as jnp
from jax import lax
from jax.experimental import pallas as pl
from jax.experimental.pallas import tpu as pltpu  # noqa: F401

# ---------------------------------------------------------------------------
# Tiny-BART config (synthetic, deterministic init -- no checkpoint loading)
# ---------------------------------------------------------------------------
VOCAB = 128
D_MODEL = 32
N_HEADS = 4
HEAD_DIM = D_MODEL // N_HEADS
FFN_DIM = 64
N_ENC_LAYERS = 2
N_DEC_LAYERS = 2
MAX_POS = 64
POS_OFFSET = 2            # BartLearnedPositionalEmbedding offset
PAD_ID = 1
DECODER_START_ID = 2
EPS = 1e-5
NEG_INF = -1e9

# ---------------------------------------------------------------------------
# Packed-parameter layout (module-level so init and kernel agree)
# ---------------------------------------------------------------------------
MAT_QKV_NAMES = tuple(f"enc_l{l}_qkv" for l in range(N_ENC_LAYERS)) + \
                tuple(f"dec_l{l}_self_qkv" for l in range(N_DEC_LAYERS))        # (D, 3D)
MAT_DD_NAMES = (tuple(f"enc_l{l}_o" for l in range(N_ENC_LAYERS)) +
                tuple(f"dec_l{l}_self_o" for l in range(N_DEC_LAYERS)) +
                tuple(f"dec_l{l}_cross_q" for l in range(N_DEC_LAYERS)) +
                tuple(f"dec_l{l}_cross_o" for l in range(N_DEC_LAYERS)))         # (D, D)
MAT_D64_NAMES = (tuple(f"dec_l{l}_cross_kv" for l in range(N_DEC_LAYERS)) +
                 tuple(f"enc_l{l}_fc1" for l in range(N_ENC_LAYERS)) +
                 tuple(f"dec_l{l}_fc1" for l in range(N_DEC_LAYERS)))            # (D, 64)
MAT_FD_NAMES = (tuple(f"enc_l{l}_fc2" for l in range(N_ENC_LAYERS)) +
                tuple(f"dec_l{l}_fc2" for l in range(N_DEC_LAYERS)))             # (F, D)
QKV_IDX = {n: i for i, n in enumerate(MAT_QKV_NAMES)}
DD_IDX = {n: i for i, n in enumerate(MAT_DD_NAMES)}
D64_IDX = {n: i for i, n in enumerate(MAT_D64_NAMES)}
FD_IDX = {n: i for i, n in enumerate(MAT_FD_NAMES)}


def _build_vec_layout():
    """All 1-D params (biases, LN gamma/beta) packed as rows of one (R,128) table."""
    D, F, V = D_MODEL, FFN_DIM, VOCAB
    rows = [("enc_emb_ln_g", D), ("enc_emb_ln_b", D),
            ("dec_emb_ln_g", D), ("dec_emb_ln_b", D),
            ("final_logits_bias", V)]
    for l in range(N_ENC_LAYERS):
        rows += [(f"enc_l{l}_qkv_bias", 3 * D), (f"enc_l{l}_o_bias", D),
                 (f"enc_l{l}_ln1_g", D), (f"enc_l{l}_ln1_b", D),
                 (f"enc_l{l}_fc1_bias", F), (f"enc_l{l}_fc2_bias", D),
                 (f"enc_l{l}_ln2_g", D), (f"enc_l{l}_ln2_b", D)]
    for l in range(N_DEC_LAYERS):
        rows += [(f"dec_l{l}_self_qkv_bias", 3 * D), (f"dec_l{l}_self_o_bias", D),
                 (f"dec_l{l}_ln1_g", D), (f"dec_l{l}_ln1_b", D),
                 (f"dec_l{l}_cross_q_bias", D), (f"dec_l{l}_cross_kv_bias", 2 * D),
                 (f"dec_l{l}_cross_o_bias", D),
                 (f"dec_l{l}_ln2_g", D), (f"dec_l{l}_ln2_b", D),
                 (f"dec_l{l}_fc1_bias", F), (f"dec_l{l}_fc2_bias", D),
                 (f"dec_l{l}_ln3_g", D), (f"dec_l{l}_ln3_b", D)]
    return rows


VEC_LAYOUT = _build_vec_layout()
VEC_ROW = {name: i for i, (name, _) in enumerate(VEC_LAYOUT)}
VEC_WIDTH = {name: w for name, w in VEC_LAYOUT}
VEC_NROWS = ((len(VEC_LAYOUT) + 7) // 8) * 8          # pad rows to a sublane multiple


# ---------------------------------------------------------------------------
# Fused Pallas kernel (whole BART forward, no grid, everything in VMEM)
# ---------------------------------------------------------------------------
def _fused_kernel(enc_in_ref, dec_in_ref, enc_bias_ref, dec_bias_ref, vec_ref,
                  qkv_ref, dd_ref, d64_ref, fd_ref, emb_ref, logits_ref):
    D, F, H, hd = D_MODEL, FFN_DIM, N_HEADS, HEAD_DIM
    scale = 1.0 / math.sqrt(hd)

    def vrow(name):
        r = VEC_ROW[name]
        return vec_ref[r:r + 1, :VEC_WIDTH[name]]          # (1, w) static ref slice

    def layernorm(x, g, b):
        mean = jnp.mean(x, axis=-1, keepdims=True)
        var = jnp.mean((x - mean) ** 2, axis=-1, keepdims=True)
        return (x - mean) * lax.rsqrt(var + EPS) * g + b

    def mha(q, k, v, bias, wo, bo):
        """All batches fused: bias is (B*S, B*S) with -inf on cross-batch blocks.
        Per-head contexts are concatenated along lanes and projected with ONE
        (B*S, D) @ (D, D) matmul (fused output projection)."""
        ctx = []
        for h in range(H):
            qs = q[:, h * hd:(h + 1) * hd]                  # (BS, hd)
            ks = k[:, h * hd:(h + 1) * hd]
            vs = v[:, h * hd:(h + 1) * hd]
            # Q K^T via dot_general contracting both last dims (no .T / XLU).
            s = lax.dot_general(qs, ks, (((1,), (1,)), ((), ())),
                                preferred_element_type=jnp.float32)   # (BS, BS)
            s = s * scale + bias
            s = s - jnp.max(s, axis=-1, keepdims=True)
            p = jnp.exp(s)
            p = p / jnp.sum(p, axis=-1, keepdims=True)      # exact reciprocal
            ctx.append(jnp.dot(p, vs, preferred_element_type=jnp.float32))
        ctx = jnp.concatenate(ctx, axis=-1)                 # (BS, D), heads on lanes
        return jnp.dot(ctx, wo, preferred_element_type=jnp.float32) + bo

    def self_attn(x, bias, wqkv, bqkv, wo, bo):
        qkv = jnp.dot(x, wqkv, preferred_element_type=jnp.float32) + bqkv
        return mha(qkv[:, :D], qkv[:, D:2 * D], qkv[:, 2 * D:], bias, wo, bo)

    def cross_attn(x_q, x_kv, bias, wq, bq, wkv, bkv, wo, bo):
        q = jnp.dot(x_q, wq, preferred_element_type=jnp.float32) + bq
        kv = jnp.dot(x_kv, wkv, preferred_element_type=jnp.float32) + bkv
        return mha(q, kv[:, :D], kv[:, D:], bias, wo, bo)

    def ffn(x, w1, b1, w2, b2):
        h = jnp.dot(x, w1, preferred_element_type=jnp.float32) + b1
        # TODO(synk): HF BART uses exact (erf) GELU; tanh approximation used here.
        h = jax.nn.gelu(h, approximate=True)
        return jnp.dot(h, w2, preferred_element_type=jnp.float32) + b2

    enc_bias = enc_bias_ref[...]                            # (BS, BS)
    dec_bias = dec_bias_ref[...]                            # (BS, BS)

    # --------------------------------- encoder ---------------------------------
    x = layernorm(enc_in_ref[...], vrow("enc_emb_ln_g"), vrow("enc_emb_ln_b"))
    for l in range(N_ENC_LAYERS):
        h = self_attn(x, enc_bias,
                      qkv_ref[QKV_IDX[f"enc_l{l}_qkv"]], vrow(f"enc_l{l}_qkv_bias"),
                      dd_ref[DD_IDX[f"enc_l{l}_o"]], vrow(f"enc_l{l}_o_bias"))
        x = layernorm(x + h, vrow(f"enc_l{l}_ln1_g"), vrow(f"enc_l{l}_ln1_b"))
        h = ffn(x, d64_ref[D64_IDX[f"enc_l{l}_fc1"]], vrow(f"enc_l{l}_fc1_bias"),
                fd_ref[FD_IDX[f"enc_l{l}_fc2"]], vrow(f"enc_l{l}_fc2_bias"))
        x = layernorm(x + h, vrow(f"enc_l{l}_ln2_g"), vrow(f"enc_l{l}_ln2_b"))

    # --------------------------------- decoder ---------------------------------
    y = layernorm(dec_in_ref[...], vrow("dec_emb_ln_g"), vrow("dec_emb_ln_b"))
    for l in range(N_DEC_LAYERS):
        h = self_attn(y, dec_bias,
                      qkv_ref[QKV_IDX[f"dec_l{l}_self_qkv"]],
                      vrow(f"dec_l{l}_self_qkv_bias"),
                      dd_ref[DD_IDX[f"dec_l{l}_self_o"]], vrow(f"dec_l{l}_self_o_bias"))
        y = layernorm(y + h, vrow(f"dec_l{l}_ln1_g"), vrow(f"dec_l{l}_ln1_b"))
        h = cross_attn(y, x, enc_bias,                      # cross bias == enc bias
                       dd_ref[DD_IDX[f"dec_l{l}_cross_q"]], vrow(f"dec_l{l}_cross_q_bias"),
                       d64_ref[D64_IDX[f"dec_l{l}_cross_kv"]], vrow(f"dec_l{l}_cross_kv_bias"),
                       dd_ref[DD_IDX[f"dec_l{l}_cross_o"]], vrow(f"dec_l{l}_cross_o_bias"))
        y = layernorm(y + h, vrow(f"dec_l{l}_ln2_g"), vrow(f"dec_l{l}_ln2_b"))
        h = ffn(y, d64_ref[D64_IDX[f"dec_l{l}_fc1"]], vrow(f"dec_l{l}_fc1_bias"),
                fd_ref[FD_IDX[f"dec_l{l}_fc2"]], vrow(f"dec_l{l}_fc2_bias"))
        y = layernorm(y + h, vrow(f"dec_l{l}_ln3_g"), vrow(f"dec_l{l}_ln3_b"))

    # ---- lm_head: tied embedding, contraction on last dims (no transpose),
    # lane-dense (VOCAB = 128) output store ----
    logits = lax.dot_general(y, emb_ref[...], (((1,), (1,)), ((), ())),
                             preferred_element_type=jnp.float32)
    logits_ref[...] = (logits + vrow("final_logits_bias")).astype(logits_ref.dtype)


# ---------------------------------------------------------------------------
# Forward wrapper (embedding gather + mask construction in plain JAX)
# ---------------------------------------------------------------------------
def shift_tokens_right(input_ids):
    shifted = jnp.roll(input_ids, 1, axis=1)
    return shifted.at[:, 0].set(DECODER_START_ID)


def actor_forward(params, sequences, sequences_mask):
    """Equivalent of ActorModel.forward: BART(input_ids, attention_mask) -> logits."""
    B, S = sequences.shape
    BS = B * S
    positions = jnp.arange(S)

    # ---- batch-block-diagonal additive biases over the fused (B*S) rows ----
    key_valid = (sequences_mask.reshape(BS) > 0)[None, :]             # (1, BS)
    bidx = jnp.arange(BS) // S
    same_batch = bidx[:, None] == bidx[None, :]                       # (BS, BS)
    pos = jnp.arange(BS) % S
    causal = pos[None, :] <= pos[:, None]
    enc_bias = jnp.where(same_batch & key_valid, 0.0, NEG_INF).astype(jnp.float32)
    dec_bias = jnp.where(same_batch & causal, 0.0, NEG_INF).astype(jnp.float32)

    # ---- embedding gathers + decoder-input shift stay in plain JAX ----
    enc_in = params["embed_tokens"][sequences] + params["enc_pos"][positions + POS_OFFSET]
    dec_ids = shift_tokens_right(sequences)
    dec_in = params["embed_tokens"][dec_ids] + params["dec_pos"][positions + POS_OFFSET]

    logits = pl.pallas_call(
        _fused_kernel,
        out_shape=jax.ShapeDtypeStruct((BS, VOCAB), jnp.float32),
    )(
        enc_in.reshape(BS, D_MODEL).astype(jnp.float32),
        dec_in.reshape(BS, D_MODEL).astype(jnp.float32),
        enc_bias, dec_bias,
        params["vec_table"],
        params["mat_qkv"], params["mat_dd"], params["mat_d64"], params["mat_fd"],
        params["embed_tokens"],
    )

    return {"logits": logits.reshape(B, S, VOCAB)}


# ---------------------------------------------------------------------------
# Deterministic parameter init (weights stacked by shape, vectors in one table)
# ---------------------------------------------------------------------------
def init_params(key):
    keys = iter(jax.random.split(key, 128))

    def rnd(shape):
        return jax.random.normal(next(keys), shape, jnp.float32) * 0.02

    D, F = D_MODEL, FFN_DIM

    mat_qkv = jnp.stack([rnd((D, 3 * D)) for _ in MAT_QKV_NAMES])     # (4, 32, 96)
    mat_dd = jnp.stack([rnd((D, D)) for _ in MAT_DD_NAMES])           # (8, 32, 32)
    mat_d64 = jnp.stack([rnd((D, 64)) for _ in MAT_D64_NAMES])        # (6, 32, 64)
    mat_fd = jnp.stack([rnd((F, D)) for _ in MAT_FD_NAMES])           # (4, 64, 32)

    rows = []
    for name, w in VEC_LAYOUT:
        row = jnp.zeros((128,), jnp.float32)
        if name.endswith("_g"):                       # LN gamma
            row = row.at[:w].set(1.0)
        elif name.endswith("_b") or name == "final_logits_bias":
            pass                                      # LN beta / logits bias = 0
        else:                                         # linear biases: small random
            row = row.at[:w].set(rnd((w,)))
        rows.append(row)
    while len(rows) < VEC_NROWS:
        rows.append(jnp.zeros((128,), jnp.float32))
    vec_table = jnp.stack(rows)                                       # (48, 128)

    return {
        "embed_tokens": rnd((VOCAB, D)),
        "enc_pos": rnd((MAX_POS + POS_OFFSET, D)),
        "dec_pos": rnd((MAX_POS + POS_OFFSET, D)),
        "vec_table": vec_table,
        "mat_qkv": mat_qkv,
        "mat_dd": mat_dd,
        "mat_d64": mat_d64,
        "mat_fd": mat_fd,
    }


# ---------------------------------------------------------------------------
if __name__ == "__main__":
    key = jax.random.PRNGKey(0)
    pkey, dkey = jax.random.split(key)
    params = init_params(pkey)

    B, S = 2, 8
    sequences = jax.random.randint(dkey, (B, S), 3, VOCAB, dtype=jnp.int32)
    # pad the tail of the second sequence
    sequences = sequences.at[1, -2:].set(PAD_ID)
    sequences_mask = jnp.ones((B, S), jnp.int32).at[1, -2:].set(0)

    out = jax.jit(actor_forward)(params, sequences, sequences_mask)
    jax.block_until_ready(out)

    logits = out["logits"]
    assert logits.shape == (B, S, VOCAB), logits.shape
    assert logits.dtype == jnp.float32
    assert bool(jnp.all(jnp.isfinite(logits)))
    print("KERNEL_OK")
</pallas_src>

<mosaic_0001>
module attributes {stable_mosaic.version = 11 : i64} {
  func.func @_fused_kernel(%arg0: memref<16x32xf32, #tpu.memory_space<vmem>>, %arg1: memref<16x32xf32, #tpu.memory_space<vmem>>, %arg2: memref<16x16xf32, #tpu.memory_space<vmem>>, %arg3: memref<16x16xf32, #tpu.memory_space<vmem>>, %arg4: memref<48x128xf32, #tpu.memory_space<vmem>>, %arg5: memref<4x32x96xf32, #tpu.memory_space<vmem>>, %arg6: memref<8x32x32xf32, #tpu.memory_space<vmem>>, %arg7: memref<6x32x64xf32, #tpu.memory_space<vmem>>, %arg8: memref<4x64x32xf32, #tpu.memory_space<vmem>>, %arg9: memref<128x32xf32, #tpu.memory_space<vmem>>, %arg10: memref<16x128xf32, #tpu.memory_space<vmem>>) attributes {dimension_semantics = [], scalar_prefetch = 0 : i64, scratch_operands = 0 : i64, tpu.core_type = #tpu.core_type<tc>} {
    %c0 = arith.constant 0 : index
    %c0_0 = arith.constant 0 : index
    %0 = vector.load %arg2[%c0, %c0_0] : memref<16x16xf32, #tpu.memory_space<vmem>>, vector<16x16xf32>
    %c0_1 = arith.constant 0 : index
    %c0_2 = arith.constant 0 : index
    %1 = vector.load %arg3[%c0_1, %c0_2] : memref<16x16xf32, #tpu.memory_space<vmem>>, vector<16x16xf32>
    %c0_3 = arith.constant 0 : index
    %c0_4 = arith.constant 0 : index
    %2 = vector.load %arg0[%c0_3, %c0_4] : memref<16x32xf32, #tpu.memory_space<vmem>>, vector<16x32xf32>
    %c0_5 = arith.constant 0 : index
    %c0_6 = arith.constant 0 : index
    %3 = vector.load %arg4[%c0_5, %c0_6] : memref<48x128xf32, #tpu.memory_space<vmem>>, vector<1x32xf32>
    %c1 = arith.constant 1 : index
    %c0_7 = arith.constant 0 : index
    %4 = vector.load %arg4[%c1, %c0_7] : memref<48x128xf32, #tpu.memory_space<vmem>>, vector<1x32xf32>
    %cst = arith.constant dense<0.000000e+00> : vector<16xf32>
    %5 = vector.multi_reduction <add>, %2, %cst [1] : vector<16x32xf32> to vector<16xf32>
    %6 = vector.shape_cast %5 : vector<16xf32> to vector<16x1xf32>
    %cst_8 = arith.constant 3.200000e+01 : f32
    %7 = vector.broadcast %cst_8 : f32 to vector<16x1xf32>
    %8 = arith.divf %6, %7 : vector<16x1xf32>
    %9 = vector.broadcast %8 : vector<16x1xf32> to vector<16x32xf32>
    %10 = arith.subf %2, %9 : vector<16x32xf32>
    %11 = arith.mulf %10, %10 : vector<16x32xf32>
    %cst_9 = arith.constant dense<0.000000e+00> : vector<16xf32>
    %12 = vector.multi_reduction <add>, %11, %cst_9 [1] : vector<16x32xf32> to vector<16xf32>
    %13 = vector.shape_cast %12 : vector<16xf32> to vector<16x1xf32>
    %cst_10 = arith.constant 3.200000e+01 : f32
    %14 = vector.broadcast %cst_10 : f32 to vector<16x1xf32>
    %15 = arith.divf %13, %14 : vector<16x1xf32>
    %16 = vector.broadcast %8 : vector<16x1xf32> to vector<16x32xf32>
    %17 = arith.subf %2, %16 : vector<16x32xf32>
    %cst_11 = arith.constant 9.99999974E-6 : f32
    %18 = vector.broadcast %cst_11 : f32 to vector<16x1xf32>
    %19 = arith.addf %15, %18 : vector<16x1xf32>
    %20 = math.rsqrt %19 : vector<16x1xf32>
    %21 = vector.broadcast %20 : vector<16x1xf32> to vector<16x32xf32>
    %22 = arith.mulf %17, %21 : vector<16x32xf32>
    %23 = vector.broadcast %3 : vector<1x32xf32> to vector<16x32xf32>
    %24 = arith.mulf %22, %23 : vector<16x32xf32>
    %25 = vector.broadcast %4 : vector<1x32xf32> to vector<16x32xf32>
    %26 = arith.addf %24, %25 : vector<16x32xf32>
    %c0_12 = arith.constant 0 : index
    %c0_13 = arith.constant 0 : index
    %c0_14 = arith.constant 0 : index
    %27 = vector.load %arg5[%c0_12, %c0_13, %c0_14] : memref<4x32x96xf32, #tpu.memory_space<vmem>>, vector<1x32x96xf32>
    %28 = vector.shape_cast %27 : vector<1x32x96xf32> to vector<32x96xf32>
    %c5 = arith.constant 5 : index
    %c0_15 = arith.constant 0 : index
    %29 = vector.load %arg4[%c5, %c0_15] : memref<48x128xf32, #tpu.memory_space<vmem>>, vector<1x96xf32>
    %c0_16 = arith.constant 0 : index
    %c0_17 = arith.constant 0 : index
    %c0_18 = arith.constant 0 : index
    %30 = vector.load %arg6[%c0_16, %c0_17, %c0_18] : memref<8x32x32xf32, #tpu.memory_space<vmem>>, vector<1x32x32xf32>
    %31 = vector.shape_cast %30 : vector<1x32x32xf32> to vector<32x32xf32>
    %c6 = arith.constant 6 : index
    %c0_19 = arith.constant 0 : index
    %32 = vector.load %arg4[%c6, %c0_19] : memref<48x128xf32, #tpu.memory_space<vmem>>, vector<1x32xf32>
    %cst_20 = arith.constant dense<0.000000e+00> : vector<16x96xf32>
    %33 = tpu.matmul %26, %28, %cst_20 {dimension_numbers = #tpu.dot_dimension_numbers<[1], [0], [0], [1], [0, 0, 1, 1], [], []>} : vector<16x32xf32>, vector<32x96xf32>, vector<16x96xf32> -> vector<16x96xf32>
    %34 = vector.broadcast %29 : vector<1x96xf32> to vector<16x96xf32>
    %35 = arith.addf %33, %34 : vector<16x96xf32>
    %36 = vector.extract_strided_slice %35 {offsets = [0, 0], sizes = [16, 32], strides = [1, 1]} : vector<16x96xf32> to vector<16x32xf32>
    %37 = vector.extract_strided_slice %35 {offsets = [0, 32], sizes = [16, 32], strides = [1, 1]} : vector<16x96xf32> to vector<16x32xf32>
    %38 = vector.extract_strided_slice %35 {offsets = [0, 64], sizes = [16, 32], strides = [1, 1]} : vector<16x96xf32> to vector<16x32xf32>
    %39 = vector.extract_strided_slice %36 {offsets = [0, 0], sizes = [16, 8], strides = [1, 1]} : vector<16x32xf32> to vector<16x8xf32>
    %40 = vector.extract_strided_slice %37 {offsets = [0, 0], sizes = [16, 8], strides = [1, 1]} : vector<16x32xf32> to vector<16x8xf32>
    %41 = vector.extract_strided_slice %38 {offsets = [0, 0], sizes = [16, 8], strides = [1, 1]} : vector<16x32xf32> to vector<16x8xf32>
    %cst_21 = arith.constant dense<0.000000e+00> : vector<16x16xf32>
    %42 = tpu.matmul %39, %40, %cst_21 {dimension_numbers = #tpu.dot_dimension_numbers<[1], [1], [0], [0], [0, 0, 1, 0], [], []>} : vector<16x8xf32>, vector<16x8xf32>, vector<16x16xf32> -> vector<16x16xf32>
    %cst_22 = arith.constant 0.353553385 : f32
    %43 = vector.broadcast %cst_22 : f32 to vector<16x16xf32>
    %44 = arith.mulf %42, %43 : vector<16x16xf32>
    %45 = arith.addf %44, %0 : vector<16x16xf32>
    %cst_23 = arith.constant dense<0xFF800000> : vector<16xf32>
    %46 = vector.multi_reduction <maximumf>, %45, %cst_23 [1] : vector<16x16xf32> to vector<16xf32>
    %47 = vector.shape_cast %46 : vector<16xf32> to vector<16x1xf32>
    %48 = vector.broadcast %47 : vector<16x1xf32> to vector<16x16xf32>
    %49 = arith.subf %45, %48 : vector<16x16xf32>
    %50 = math.exp %49 : vector<16x16xf32>
    %cst_24 = arith.constant dense<0.000000e+00> : vector<16xf32>
    %51 = vector.multi_reduction <add>, %50, %cst_24 [1] : vector<16x16xf32> to vector<16xf32>
    %52 = vector.shape_cast %51 : vector<16xf32> to vector<16x1xf32>
    %53 = vector.broadcast %52 : vector<16x1xf32> to vector<16x16xf32>
    %54 = arith.divf %50, %53 : vector<16x16xf32>
    %cst_25 = arith.constant dense<0.000000e+00> : vector<16x8xf32>
    %55 = tpu.matmul %54, %41, %cst_25 {dimension_numbers = #tpu.dot_dimension_numbers<[1], [0], [0], [1], [0, 0, 1, 1], [], []>} : vector<16x16xf32>, vector<16x8xf32>, vector<16x8xf32> -> vector<16x8xf32>
    %56 = vector.extract_strided_slice %36 {offsets = [0, 8], sizes = [16, 8], strides = [1, 1]} : vector<16x32xf32> to vector<16x8xf32>
    %57 = vector.extract_strided_slice %37 {offsets = [0, 8], sizes = [16, 8], strides = [1, 1]} : vector<16x32xf32> to vector<16x8xf32>
    %58 = vector.extract_strided_slice %38 {offsets = [0, 8], sizes = [16, 8], strides = [1, 1]} : vector<16x32xf32> to vector<16x8xf32>
    %cst_26 = arith.constant dense<0.000000e+00> : vector<16x16xf32>
    %59 = tpu.matmul %56, %57, %cst_26 {dimension_numbers = #tpu.dot_dimension_numbers<[1], [1], [0], [0], [0, 0, 1, 0], [], []>} : vector<16x8xf32>, vector<16x8xf32>, vector<16x16xf32> -> vector<16x16xf32>
    %cst_27 = arith.constant 0.353553385 : f32
    %60 = vector.broadcast %cst_27 : f32 to vector<16x16xf32>
    %61 = arith.mulf %59, %60 : vector<16x16xf32>
    %62 = arith.addf %61, %0 : vector<16x16xf32>
    %cst_28 = arith.constant dense<0xFF800000> : vector<16xf32>
    %63 = vector.multi_reduction <maximumf>, %62, %cst_28 [1] : vector<16x16xf32> to vector<16xf32>
    %64 = vector.shape_cast %63 : vector<16xf32> to vector<16x1xf32>
    %65 = vector.broadcast %64 : vector<16x1xf32> to vector<16x16xf32>
    %66 = arith.subf %62, %65 : vector<16x16xf32>
    %67 = math.exp %66 : vector<16x16xf32>
    %cst_29 = arith.constant dense<0.000000e+00> : vector<16xf32>
    %68 = vector.multi_reduction <add>, %67, %cst_29 [1] : vector<16x16xf32> to vector<16xf32>
    %69 = vector.shape_cast %68 : vector<16xf32> to vector<16x1xf32>
    %70 = vector.broadcast %69 : vector<16x1xf32> to vector<16x16xf32>
    %71 = arith.divf %67, %70 : vector<16x16xf32>
    %cst_30 = arith.constant dense<0.000000e+00> : vector<16x8xf32>
    %72 = tpu.matmul %71, %58, %cst_30 {dimension_numbers = #tpu.dot_dimension_numbers<[1], [0], [0], [1], [0, 0, 1, 1], [], []>} : vector<16x16xf32>, vector<16x8xf32>, vector<16x8xf32> -> vector<16x8xf32>
    %73 = vector.extract_strided_slice %36 {offsets = [0, 16], sizes = [16, 8], strides = [1, 1]} : vector<16x32xf32> to vector<16x8xf32>
    %74 = vector.extract_strided_slice %37 {offsets = [0, 16], sizes = [16, 8], strides = [1, 1]} : vector<16x32xf32> to vector<16x8xf32>
    %75 = vector.extract_strided_slice %38 {offsets = [0, 16], sizes = [16, 8], strides = [1, 1]} : vector<16x32xf32> to vector<16x8xf32>
    %cst_31 = arith.constant dense<0.000000e+00> : vector<16x16xf32>
    %76 = tpu.matmul %73, %74, %cst_31 {dimension_numbers = #tpu.dot_dimension_numbers<[1], [1], [0], [0], [0, 0, 1, 0], [], []>} : vector<16x8xf32>, vector<16x8xf32>, vector<16x16xf32> -> vector<16x16xf32>
    %cst_32 = arith.constant 0.353553385 : f32
    %77 = vector.broadcast %cst_32 : f32 to vector<16x16xf32>
    %78 = arith.mulf %76, %77 : vector<16x16xf32>
    %79 = arith.addf %78, %0 : vector<16x16xf32>
    %cst_33 = arith.constant dense<0xFF800000> : vector<16xf32>
    %80 = vector.multi_reduction <maximumf>, %79, %cst_33 [1] : vector<16x16xf32> to vector<16xf32>
    %81 = vector.shape_cast %80 : vector<16xf32> to vector<16x1xf32>
    %82 = vector.broadcast %81 : vector<16x1xf32> to vector<16x16xf32>
    %83 = arith.subf %79, %82 : vector<16x16xf32>
    %84 = math.exp %83 : vector<16x16xf32>
    %cst_34 = arith.constant dense<0.000000e+00> : vector<16xf32>
    %85 = vector.multi_reduction <add>, %84, %cst_34 [1] : vector<16x16xf32> to vector<16xf32>
    %86 = vector.shape_cast %85 : vector<16xf32> to vector<16x1xf32>
    %87 = vector.broadcast %86 : vector<16x1xf32> to vector<16x16xf32>
    %88 = arith.divf %84, %87 : vector<16x16xf32>
    %cst_35 = arith.constant dense<0.000000e+00> : vector<16x8xf32>
    %89 = tpu.matmul %88, %75, %cst_35 {dimension_numbers = #tpu.dot_dimension_numbers<[1], [0], [0], [1], [0, 0, 1, 1], [], []>} : vector<16x16xf32>, vector<16x8xf32>, vector<16x8xf32> -> vector<16x8xf32>
    %90 = vector.extract_strided_slice %36 {offsets = [0, 24], sizes = [16, 8], strides = [1, 1]} : vector<16x32xf32> to vector<16x8xf32>
    %91 = vector.extract_strided_slice %37 {offsets = [0, 24], sizes = [16, 8], strides = [1, 1]} : vector<16x32xf32> to vector<16x8xf32>
    %92 = vector.extract_strided_slice %38 {offsets = [0, 24], sizes = [16, 8], strides = [1, 1]} : vector<16x32xf32> to vector<16x8xf32>
    %cst_36 = arith.constant dense<0.000000e+00> : vector<16x16xf32>
    %93 = tpu.matmul %90, %91, %cst_36 {dimension_numbers = #tpu.dot_dimension_numbers<[1], [1], [0], [0], [0, 0, 1, 0], [], []>} : vector<16x8xf32>, vector<16x8xf32>, vector<16x16xf32> -> vector<16x16xf32>
    %cst_37 = arith.constant 0.353553385 : f32
    %94 = vector.broadcast %cst_37 : f32 to vector<16x16xf32>
    %95 = arith.mulf %93, %94 : vector<16x16xf32>
    %96 = arith.addf %95, %0 : vector<16x16xf32>
    %cst_38 = arith.constant dense<0xFF800000> : vector<16xf32>
    %97 = vector.multi_reduction <maximumf>, %96, %cst_38 [1] : vector<16x16xf32> to vector<16xf32>
    %98 = vector.shape_cast %97 : vector<16xf32> to vector<16x1xf32>
    %99 = vector.broadcast %98 : vector<16x1xf32> to vector<16x16xf32>
    %100 = arith.subf %96, %99 : vector<16x16xf32>
    %101 = math.exp %100 : vector<16x16xf32>
    %cst_39 = arith.constant dense<0.000000e+00> : vector<16xf32>
    %102 = vector.multi_reduction <add>, %101, %cst_39 [1] : vector<16x16xf32> to vector<16xf32>
    %103 = vector.shape_cast %102 : vector<16xf32> to vector<16x1xf32>
    %104 = vector.broadcast %103 : vector<16x1xf32> to vector<16x16xf32>
    %105 = arith.divf %101, %104 : vector<16x16xf32>
    %cst_40 = arith.constant dense<0.000000e+00> : vector<16x8xf32>
    %106 = tpu.matmul %105, %92, %cst_40 {dimension_numbers = #tpu.dot_dimension_numbers<[1], [0], [0], [1], [0, 0, 1, 1], [], []>} : vector<16x16xf32>, vector<16x8xf32>, vector<16x8xf32> -> vector<16x8xf32>
    %107 = tpu.concatenate %55, %72, %89, %106 in 1 : vector<16x8xf32>, vector<16x8xf32>, vector<16x8xf32>, vector<16x8xf32> -> vector<16x32xf32>
    %cst_41 = arith.constant dense<0.000000e+00> : vector<16x32xf32>
    %108 = tpu.matmul %107, %31, %cst_41 {dimension_numbers = #tpu.dot_dimension_numbers<[1], [0], [0], [1], [0, 0, 1, 1], [], []>} : vector<16x32xf32>, vector<32x32xf32>, vector<16x32xf32> -> vector<16x32xf32>
    %109 = vector.broadcast %32 : vector<1x32xf32> to vector<16x32xf32>
    %110 = arith.addf %108, %109 : vector<16x32xf32>
    %111 = arith.addf %26, %110 : vector<16x32xf32>
    %c7 = arith.constant 7 : index
    %c0_42 = arith.constant 0 : index
    %112 = vector.load %arg4[%c7, %c0_42] : memref<48x128xf32, #tpu.memory_space<vmem>>, vector<1x32xf32>
    %c8 = arith.constant 8 : index
    %c0_43 = arith.constant 0 : index
    %113 = vector.load %arg4[%c8, %c0_43] : memref<48x128xf32, #tpu.memory_space<vmem>>, vector<1x32xf32>
    %cst_44 = arith.constant dense<0.000000e+00> : vector<16xf32>
    %114 = vector.multi_reduction <add>, %111, %cst_44 [1] : vector<16x32xf32> to vector<16xf32>
    %115 = vector.shape_cast %114 : vector<16xf32> to vector<16x1xf32>
    %cst_45 = arith.constant 3.200000e+01 : f32
    %116 = vector.broadcast %cst_45 : f32 to vector<16x1xf32>
    %117 = arith.divf %115, %116 : vector<16x1xf32>
    %118 = vector.broadcast %117 : vector<16x1xf32> to vector<16x32xf32>
    %119 = arith.subf %111, %118 : vector<16x32xf32>
    %120 = arith.mulf %119, %119 : vector<16x32xf32>
    %cst_46 = arith.constant dense<0.000000e+00> : vector<16xf32>
    %121 = vector.multi_reduction <add>, %120, %cst_46 [1] : vector<16x32xf32> to vector<16xf32>
    %122 = vector.shape_cast %121 : vector<16xf32> to vector<16x1xf32>
    %cst_47 = arith.constant 3.200000e+01 : f32
    %123 = vector.broadcast %cst_47 : f32 to vector<16x1xf32>
    %124 = arith.divf %122, %123 : vector<16x1xf32>
    %125 = vector.broadcast %117 : vector<16x1xf32> to vector<16x32xf32>
    %126 = arith.subf %111, %125 : vector<16x32xf32>
    %cst_48 = arith.constant 9.99999974E-6 : f32
    %127 = vector.broadcast %cst_48 : f32 to vector<16x1xf32>
    %128 = arith.addf %124, %127 : vector<16x1xf32>
    %129 = math.rsqrt %128 : vector<16x1xf32>
    %130 = vector.broadcast %129 : vector<16x1xf32> to vector<16x32xf32>
    %131 = arith.mulf %126, %130 : vector<16x32xf32>
    %132 = vector.broadcast %112 : vector<1x32xf32> to vector<16x32xf32>
    %133 = arith.mulf %131, %132 : vector<16x32xf32>
    %134 = vector.broadcast %113 : vector<1x32xf32> to vector<16x32xf32>
    %135 = arith.addf %133, %134 : vector<16x32xf32>
    %c2 = arith.constant 2 : index
    %c0_49 = arith.constant 0 : index
    %c0_50 = arith.constant 0 : index
    %136 = vector.load %arg7[%c2, %c0_49, %c0_50] : memref<6x32x64xf32, #tpu.memory_space<vmem>>, vector<1x32x64xf32>
    %137 = vector.shape_cast %136 : vector<1x32x64xf32> to vector<32x64xf32>
    %c9 = arith.constant 9 : index
    %c0_51 = arith.constant 0 : index
    %138 = vector.load %arg4[%c9, %c0_51] : memref<48x128xf32, #tpu.memory_space<vmem>>, vector<1x64xf32>
    %c0_52 = arith.constant 0 : index
    %c0_53 = arith.constant 0 : index
    %c0_54 = arith.constant 0 : index
    %139 = vector.load %arg8[%c0_52, %c0_53, %c0_54] : memref<4x64x32xf32, #tpu.memory_space<vmem>>, vector<1x64x32xf32>
    %140 = vector.shape_cast %139 : vector<1x64x32xf32> to vector<64x32xf32>
    %c10 = arith.constant 10 : index
    %c0_55 = arith.constant 0 : index
    %141 = vector.load %arg4[%c10, %c0_55] : memref<48x128xf32, #tpu.memory_space<vmem>>, vector<1x32xf32>
    %cst_56 = arith.constant dense<0.000000e+00> : vector<16x64xf32>
    %142 = tpu.matmul %135, %137, %cst_56 {dimension_numbers = #tpu.dot_dimension_numbers<[1], [0], [0], [1], [0, 0, 1, 1], [], []>} : vector<16x32xf32>, vector<32x64xf32>, vector<16x64xf32> -> vector<16x64xf32>
    %143 = vector.broadcast %138 : vector<1x64xf32> to vector<16x64xf32>
    %144 = arith.addf %142, %143 : vector<16x64xf32>
    %145 = arith.mulf %144, %144 : vector<16x64xf32>
    %146 = arith.mulf %144, %145 : vector<16x64xf32>
    %cst_57 = arith.constant 4.471500e-02 : f32
    %147 = vector.broadcast %cst_57 : f32 to vector<16x64xf32>
    %148 = arith.mulf %147, %146 : vector<16x64xf32>
    %149 = arith.addf %144, %148 : vector<16x64xf32>
    %cst_58 = arith.constant 0.797884583 : f32
    %150 = vector.broadcast %cst_58 : f32 to vector<16x64xf32>
    %151 = arith.mulf %150, %149 : vector<16x64xf32>
    %152 = math.tanh %151 : vector<16x64xf32>
    %cst_59 = arith.constant 1.000000e+00 : f32
    %153 = vector.broadcast %cst_59 : f32 to vector<16x64xf32>
    %154 = arith.addf %153, %152 : vector<16x64xf32>
    %cst_60 = arith.constant 5.000000e-01 : f32
    %155 = vector.broadcast %cst_60 : f32 to vector<16x64xf32>
    %156 = arith.mulf %155, %154 : vector<16x64xf32>
    %157 = arith.mulf %144, %156 : vector<16x64xf32>
    %cst_61 = arith.constant dense<0.000000e+00> : vector<16x32xf32>
    %158 = tpu.matmul %157, %140, %cst_61 {dimension_numbers = #tpu.dot_dimension_numbers<[1], [0], [0], [1], [0, 0, 1, 1], [], []>} : vector<16x64xf32>, vector<64x32xf32>, vector<16x32xf32> -> vector<16x32xf32>
    %159 = vector.broadcast %141 : vector<1x32xf32> to vector<16x32xf32>
    %160 = arith.addf %158, %159 : vector<16x32xf32>
    %161 = arith.addf %135, %160 : vector<16x32xf32>
    %c11 = arith.constant 11 : index
    %c0_62 = arith.constant 0 : index
    %162 = vector.load %arg4[%c11, %c0_62] : memref<48x128xf32, #tpu.memory_space<vmem>>, vector<1x32xf32>
    %c12 = arith.constant 12 : index
    %c0_63 = arith.constant 0 : index
    %163 = vector.load %arg4[%c12, %c0_63] : memref<48x128xf32, #tpu.memory_space<vmem>>, vector<1x32xf32>
    %cst_64 = arith.constant dense<0.000000e+00> : vector<16xf32>
    %164 = vector.multi_reduction <add>, %161, %cst_64 [1] : vector<16x32xf32> to vector<16xf32>
    %165 = vector.shape_cast %164 : vector<16xf32> to vector<16x1xf32>
    %cst_65 = arith.constant 3.200000e+01 : f32
    %166 = vector.broadcast %cst_65 : f32 to vector<16x1xf32>
    %167 = arith.divf %165, %166 : vector<16x1xf32>
    %168 = vector.broadcast %167 : vector<16x1xf32> to vector<16x32xf32>
    %169 = arith.subf %161, %168 : vector<16x32xf32>
    %170 = arith.mulf %169, %169 : vector<16x32xf32>
    %cst_66 = arith.constant dense<0.000000e+00> : vector<16xf32>
    %171 = vector.multi_reduction <add>, %170, %cst_66 [1] : vector<16x32xf32> to vector<16xf32>
    %172 = vector.shape_cast %171 : vector<16xf32> to vector<16x1xf32>
    %cst_67 = arith.constant 3.200000e+01 : f32
    %173 = vector.broadcast %cst_67 : f32 to vector<16x1xf32>
    %174 = arith.divf %172, %173 : vector<16x1xf32>
    %175 = vector.broadcast %167 : vector<16x1xf32> to vector<16x32xf32>
    %176 = arith.subf %161, %175 : vector<16x32xf32>
    %cst_68 = arith.constant 9.99999974E-6 : f32
    %177 = vector.broadcast %cst_68 : f32 to vector<16x1xf32>
    %178 = arith.addf %174, %177 : vector<16x1xf32>
    %179 = math.rsqrt %178 : vector<16x1xf32>
    %180 = vector.broadcast %179 : vector<16x1xf32> to vector<16x32xf32>
    %181 = arith.mulf %176, %180 : vector<16x32xf32>
    %182 = vector.broadcast %162 : vector<1x32xf32> to vector<16x32xf32>
    %183 = arith.mulf %181, %182 : vector<16x32xf32>
    %184 = vector.broadcast %163 : vector<1x32xf32> to vector<16x32xf32>
    %185 = arith.addf %183, %184 : vector<16x32xf32>
    %c1_69 = arith.constant 1 : index
    %c0_70 = arith.constant 0 : index
    %c0_71 = arith.constant 0 : index
    %186 = vector.load %arg5[%c1_69, %c0_70, %c0_71] : memref<4x32x96xf32, #tpu.memory_space<vmem>>, vector<1x32x96xf32>
    %187 = vector.shape_cast %186 : vector<1x32x96xf32> to vector<32x96xf32>
    %c13 = arith.constant 13 : index
    %c0_72 = arith.constant 0 : index
    %188 = vector.load %arg4[%c13, %c0_72] : memref<48x128xf32, #tpu.memory_space<vmem>>, vector<1x96xf32>
    %c1_73 = arith.constant 1 : index
    %c0_74 = arith.constant 0 : index
    %c0_75 = arith.constant 0 : index
    %189 = vector.load %arg6[%c1_73, %c0_74, %c0_75] : memref<8x32x32xf32, #tpu.memory_space<vmem>>, vector<1x32x32xf32>
    %190 = vector.shape_cast %189 : vector<1x32x32xf32> to vector<32x32xf32>
    %c14 = arith.constant 14 : index
    %c0_76 = arith.constant 0 : index
    %191 = vector.load %arg4[%c14, %c0_76] : memref<48x128xf32, #tpu.memory_space<vmem>>, vector<1x32xf32>
    %cst_77 = arith.constant dense<0.000000e+00> : vector<16x96xf32>
    %192 = tpu.matmul %185, %187, %cst_77 {dimension_numbers = #tpu.dot_dimension_numbers<[1], [0], [0], [1], [0, 0, 1, 1], [], []>} : vector<16x32xf32>, vector<32x96xf32>, vector<16x96xf32> -> vector<16x96xf32>
    %193 = vector.broadcast %188 : vector<1x96xf32> to vector<16x96xf32>
    %194 = arith.addf %192, %193 : vector<16x96xf32>
    %195 = vector.extract_strided_slice %194 {offsets = [0, 0], sizes = [16, 32], strides = [1, 1]} : vector<16x96xf32> to vector<16x32xf32>
    %196 = vector.extract_strided_slice %194 {offsets = [0, 32], sizes = [16, 32], strides = [1, 1]} : vector<16x96xf32> to vector<16x32xf32>
    %197 = vector.extract_strided_slice %194 {offsets = [0, 64], sizes = [16, 32], strides = [1, 1]} : vector<16x96xf32> to vector<16x32xf32>
    %198 = vector.extract_strided_slice %195 {offsets = [0, 0], sizes = [16, 8], strides = [1, 1]} : vector<16x32xf32> to vector<16x8xf32>
    %199 = vector.extract_strided_slice %196 {offsets = [0, 0], sizes = [16, 8], strides = [1, 1]} : vector<16x32xf32> to vector<16x8xf32>
    %200 = vector.extract_strided_slice %197 {offsets = [0, 0], sizes = [16, 8], strides = [1, 1]} : vector<16x32xf32> to vector<16x8xf32>
    %cst_78 = arith.constant dense<0.000000e+00> : vector<16x16xf32>
    %201 = tpu.matmul %198, %199, %cst_78 {dimension_numbers = #tpu.dot_dimension_numbers<[1], [1], [0], [0], [0, 0, 1, 0], [], []>} : vector<16x8xf32>, vector<16x8xf32>, vector<16x16xf32> -> vector<16x16xf32>
    %cst_79 = arith.constant 0.353553385 : f32
    %202 = vector.broadcast %cst_79 : f32 to vector<16x16xf32>
    %203 = arith.mulf %201, %202 : vector<16x16xf32>
    %204 = arith.addf %203, %0 : vector<16x16xf32>
    %cst_80 = arith.constant dense<0xFF800000> : vector<16xf32>
    %205 = vector.multi_reduction <maximumf>, %204, %cst_80 [1] : vector<16x16xf32> to vector<16xf32>
    %206 = vector.shape_cast %205 : vector<16xf32> to vector<16x1xf32>
    %207 = vector.broadcast %206 : vector<16x1xf32> to vector<16x16xf32>
    %208 = arith.subf %204, %207 : vector<16x16xf32>
    %209 = math.exp %208 : vector<16x16xf32>
    %cst_81 = arith.constant dense<0.000000e+00> : vector<16xf32>
    %210 = vector.multi_reduction <add>, %209, %cst_81 [1] : vector<16x16xf32> to vector<16xf32>
    %211 = vector.shape_cast %210 : vector<16xf32> to vector<16x1xf32>
    %212 = vector.broadcast %211 : vector<16x1xf32> to vector<16x16xf32>
    %213 = arith.divf %209, %212 : vector<16x16xf32>
    %cst_82 = arith.constant dense<0.000000e+00> : vector<16x8xf32>
    %214 = tpu.matmul %213, %200, %cst_82 {dimension_numbers = #tpu.dot_dimension_numbers<[1], [0], [0], [1], [0, 0, 1, 1], [], []>} : vector<16x16xf32>, vector<16x8xf32>, vector<16x8xf32> -> vector<16x8xf32>
    %215 = vector.extract_strided_slice %195 {offsets = [0, 8], sizes = [16, 8], strides = [1, 1]} : vector<16x32xf32> to vector<16x8xf32>
    %216 = vector.extract_strided_slice %196 {offsets = [0, 8], sizes = [16, 8], strides = [1, 1]} : vector<16x32xf32> to vector<16x8xf32>
    %217 = vector.extract_strided_slice %197 {offsets = [0, 8], sizes = [16, 8], strides = [1, 1]} : vector<16x32xf32> to vector<16x8xf32>
    %cst_83 = arith.constant dense<0.000000e+00> : vector<16x16xf32>
    %218 = tpu.matmul %215, %216, %cst_83 {dimension_numbers = #tpu.dot_dimension_numbers<[1], [1], [0], [0], [0, 0, 1, 0], [], []>} : vector<16x8xf32>, vector<16x8xf32>, vector<16x16xf32> -> vector<16x16xf32>
    %cst_84 = arith.constant 0.353553385 : f32
    %219 = vector.broadcast %cst_84 : f32 to vector<16x16xf32>
    %220 = arith.mulf %218, %219 : vector<16x16xf32>
    %221 = arith.addf %220, %0 : vector<16x16xf32>
    %cst_85 = arith.constant dense<0xFF800000> : vector<16xf32>
    %222 = vector.multi_reduction <maximumf>, %221, %cst_85 [1] : vector<16x16xf32> to vector<16xf32>
    %223 = vector.shape_cast %222 : vector<16xf32> to vector<16x1xf32>
    %224 = vector.broadcast %223 : vector<16x1xf32> to vector<16x16xf32>
    %225 = arith.subf %221, %224 : vector<16x16xf32>
    %226 = math.exp %225 : vector<16x16xf32>
    %cst_86 = arith.constant dense<0.000000e+00> : vector<16xf32>
    %227 = vector.multi_reduction <add>, %226, %cst_86 [1] : vector<16x16xf32> to vector<16xf32>
    %228 = vector.shape_cast %227 : vector<16xf32> to vector<16x1xf32>
    %229 = vector.broadcast %228 : vector<16x1xf32> to vector<16x16xf32>
    %230 = arith.divf %226, %229 : vector<16x16xf32>
    %cst_87 = arith.constant dense<0.000000e+00> : vector<16x8xf32>
    %231 = tpu.matmul %230, %217, %cst_87 {dimension_numbers = #tpu.dot_dimension_numbers<[1], [0], [0], [1], [0, 0, 1, 1], [], []>} : vector<16x16xf32>, vector<16x8xf32>, vector<16x8xf32> -> vector<16x8xf32>
    %232 = vector.extract_strided_slice %195 {offsets = [0, 16], sizes = [16, 8], strides = [1, 1]} : vector<16x32xf32> to vector<16x8xf32>
    %233 = vector.extract_strided_slice %196 {offsets = [0, 16], sizes = [16, 8], strides = [1, 1]} : vector<16x32xf32> to vector<16x8xf32>
    %234 = vector.extract_strided_slice %197 {offsets = [0, 16], sizes = [16, 8], strides = [1, 1]} : vector<16x32xf32> to vector<16x8xf32>
    %cst_88 = arith.constant dense<0.000000e+00> : vector<16x16xf32>
    %235 = tpu.matmul %232, %233, %cst_88 {dimension_numbers = #tpu.dot_dimension_numbers<[1], [1], [0], [0], [0, 0, 1, 0], [], []>} : vector<16x8xf32>, vector<16x8xf32>, vector<16x16xf32> -> vector<16x16xf32>
    %cst_89 = arith.constant 0.353553385 : f32
    %236 = vector.broadcast %cst_89 : f32 to vector<16x16xf32>
    %237 = arith.mulf %235, %236 : vector<16x16xf32>
    %238 = arith.addf %237, %0 : vector<16x16xf32>
    %cst_90 = arith.constant dense<0xFF800000> : vector<16xf32>
    %239 = vector.multi_reduction <maximumf>, %238, %cst_90 [1] : vector<16x16xf32> to vector<16xf32>
    %240 = vector.shape_cast %239 : vector<16xf32> to vector<16x1xf32>
    %241 = vector.broadcast %240 : vector<16x1xf32> to vector<16x16xf32>
    %242 = arith.subf %238, %241 : vector<16x16xf32>
    %243 = math.exp %242 : vector<16x16xf32>
    %cst_91 = arith.constant dense<0.000000e+00> : vector<16xf32>
    %244 = vector.multi_reduction <add>, %243, %cst_91 [1] : vector<16x16xf32> to vector<16xf32>
    %245 = vector.shape_cast %244 : vector<16xf32> to vector<16x1xf32>
    %246 = vector.broadcast %245 : vector<16x1xf32> to vector<16x16xf32>
    %247 = arith.divf %243, %246 : vector<16x16xf32>
    %cst_92 = arith.constant dense<0.000000e+00> : vector<16x8xf32>
    %248 = tpu.matmul %247, %234, %cst_92 {dimension_numbers = #tpu.dot_dimension_numbers<[1], [0], [0], [1], [0, 0, 1, 1], [], []>} : vector<16x16xf32>, vector<16x8xf32>, vector<16x8xf32> -> vector<16x8xf32>
    %249 = vector.extract_strided_slice %195 {offsets = [0, 24], sizes = [16, 8], strides = [1, 1]} : vector<16x32xf32> to vector<16x8xf32>
    %250 = vector.extract_strided_slice %196 {offsets = [0, 24], sizes = [16, 8], strides = [1, 1]} : vector<16x32xf32> to vector<16x8xf32>
    %251 = vector.extract_strided_slice %197 {offsets = [0, 24], sizes = [16, 8], strides = [1, 1]} : vector<16x32xf32> to vector<16x8xf32>
    %cst_93 = arith.constant dense<0.000000e+00> : vector<16x16xf32>
    %252 = tpu.matmul %249, %250, %cst_93 {dimension_numbers = #tpu.dot_dimension_numbers<[1], [1], [0], [0], [0, 0, 1, 0], [], []>} : vector<16x8xf32>, vector<16x8xf32>, vector<16x16xf32> -> vector<16x16xf32>
    %cst_94 = arith.constant 0.353553385 : f32
    %253 = vector.broadcast %cst_94 : f32 to vector<16x16xf32>
    %254 = arith.mulf %252, %253 : vector<16x16xf32>
    %255 = arith.addf %254, %0 : vector<16x16xf32>
    %cst_95 = arith.constant dense<0xFF800000> : vector<16xf32>
    %256 = vector.multi_reduction <maximumf>, %255, %cst_95 [1] : vector<16x16xf32> to vector<16xf32>
    %257 = vector.shape_cast %256 : vector<16xf32> to vector<16x1xf32>
    %258 = vector.broadcast %257 : vector<16x1xf32> to vector<16x16xf32>
    %259 = arith.subf %255, %258 : vector<16x16xf32>
    %260 = math.exp %259 : vector<16x16xf32>
    %cst_96 = arith.constant dense<0.000000e+00> : vector<16xf32>
    %261 = vector.multi_reduction <add>, %260, %cst_96 [1] : vector<16x16xf32> to vector<16xf32>
    %262 = vector.shape_cast %261 : vector<16xf32> to vector<16x1xf32>
    %263 = vector.broadcast %262 : vector<16x1xf32> to vector<16x16xf32>
    %264 = arith.divf %260, %263 : vector<16x16xf32>
    %cst_97 = arith.constant dense<0.000000e+00> : vector<16x8xf32>
    %265 = tpu.matmul %264, %251, %cst_97 {dimension_numbers = #tpu.dot_dimension_numbers<[1], [0], [0], [1], [0, 0, 1, 1], [], []>} : vector<16x16xf32>, vector<16x8xf32>, vector<16x8xf32> -> vector<16x8xf32>
    %266 = tpu.concatenate %214, %231, %248, %265 in 1 : vector<16x8xf32>, vector<16x8xf32>, vector<16x8xf32>, vector<16x8xf32> -> vector<16x32xf32>
    %cst_98 = arith.constant dense<0.000000e+00> : vector<16x32xf32>
    %267 = tpu.matmul %266, %190, %cst_98 {dimension_numbers = #tpu.dot_dimension_numbers<[1], [0], [0], [1], [0, 0, 1, 1], [], []>} : vector<16x32xf32>, vector<32x32xf32>, vector<16x32xf32> -> vector<16x32xf32>
    %268 = vector.broadcast %191 : vector<1x32xf32> to vector<16x32xf32>
    %269 = arith.addf %267, %268 : vector<16x32xf32>
    %270 = arith.addf %185, %269 : vector<16x32xf32>
    %c15 = arith.constant 15 : index
    %c0_99 = arith.constant 0 : index
    %271 = vector.load %arg4[%c15, %c0_99] : memref<48x128xf32, #tpu.memory_space<vmem>>, vector<1x32xf32>
    %c16 = arith.constant 16 : index
    %c0_100 = arith.constant 0 : index
    %272 = vector.load %arg4[%c16, %c0_100] : memref<48x128xf32, #tpu.memory_space<vmem>>, vector<1x32xf32>
    %cst_101 = arith.constant dense<0.000000e+00> : vector<16xf32>
    %273 = vector.multi_reduction <add>, %270, %cst_101 [1] : vector<16x32xf32> to vector<16xf32>
    %274 = vector.shape_cast %273 : vector<16xf32> to vector<16x1xf32>
    %cst_102 = arith.constant 3.200000e+01 : f32
    %275 = vector.broadcast %cst_102 : f32 to vector<16x1xf32>
    %276 = arith.divf %274, %275 : vector<16x1xf32>
    %277 = vector.broadcast %276 : vector<16x1xf32> to vector<16x32xf32>
    %278 = arith.subf %270, %277 : vector<16x32xf32>
    %279 = arith.mulf %278, %278 : vector<16x32xf32>
    %cst_103 = arith.constant dense<0.000000e+00> : vector<16xf32>
    %280 = vector.multi_reduction <add>, %279, %cst_103 [1] : vector<16x32xf32> to vector<16xf32>
    %281 = vector.shape_cast %280 : vector<16xf32> to vector<16x1xf32>
    %cst_104 = arith.constant 3.200000e+01 : f32
    %282 = vector.broadcast %cst_104 : f32 to vector<16x1xf32>
    %283 = arith.divf %281, %282 : vector<16x1xf32>
    %284 = vector.broadcast %276 : vector<16x1xf32> to vector<16x32xf32>
    %285 = arith.subf %270, %284 : vector<16x32xf32>
    %cst_105 = arith.constant 9.99999974E-6 : f32
    %286 = vector.broadcast %cst_105 : f32 to vector<16x1xf32>
    %287 = arith.addf %283, %286 : vector<16x1xf32>
    %288 = math.rsqrt %287 : vector<16x1xf32>
    %289 = vector.broadcast %288 : vector<16x1xf32> to vector<16x32xf32>
    %290 = arith.mulf %285, %289 : vector<16x32xf32>
    %291 = vector.broadcast %271 : vector<1x32xf32> to vector<16x32xf32>
    %292 = arith.mulf %290, %291 : vector<16x32xf32>
    %293 = vector.broadcast %272 : vector<1x32xf32> to vector<16x32xf32>
    %294 = arith.addf %292, %293 : vector<16x32xf32>
    %c3 = arith.constant 3 : index
    %c0_106 = arith.constant 0 : index
    %c0_107 = arith.constant 0 : index
    %295 = vector.load %arg7[%c3, %c0_106, %c0_107] : memref<6x32x64xf32, #tpu.memory_space<vmem>>, vector<1x32x64xf32>
    %296 = vector.shape_cast %295 : vector<1x32x64xf32> to vector<32x64xf32>
    %c17 = arith.constant 17 : index
    %c0_108 = arith.constant 0 : index
    %297 = vector.load %arg4[%c17, %c0_108] : memref<48x128xf32, #tpu.memory_space<vmem>>, vector<1x64xf32>
    %c1_109 = arith.constant 1 : index
    %c0_110 = arith.constant 0 : index
    %c0_111 = arith.constant 0 : index
    %298 = vector.load %arg8[%c1_109, %c0_110, %c0_111] : memref<4x64x32xf32, #tpu.memory_space<vmem>>, vector<1x64x32xf32>
    %299 = vector.shape_cast %298 : vector<1x64x32xf32> to vector<64x32xf32>
    %c18 = arith.constant 18 : index
    %c0_112 = arith.constant 0 : index
    %300 = vector.load %arg4[%c18, %c0_112] : memref<48x128xf32, #tpu.memory_space<vmem>>, vector<1x32xf32>
    %cst_113 = arith.constant dense<0.000000e+00> : vector<16x64xf32>
    %301 = tpu.matmul %294, %296, %cst_113 {dimension_numbers = #tpu.dot_dimension_numbers<[1], [0], [0], [1], [0, 0, 1, 1], [], []>} : vector<16x32xf32>, vector<32x64xf32>, vector<16x64xf32> -> vector<16x64xf32>
    %302 = vector.broadcast %297 : vector<1x64xf32> to vector<16x64xf32>
    %303 = arith.addf %301, %302 : vector<16x64xf32>
    %304 = arith.mulf %303, %303 : vector<16x64xf32>
    %305 = arith.mulf %303, %304 : vector<16x64xf32>
    %cst_114 = arith.constant 4.471500e-02 : f32
    %306 = vector.broadcast %cst_114 : f32 to vector<16x64xf32>
    %307 = arith.mulf %306, %305 : vector<16x64xf32>
    %308 = arith.addf %303, %307 : vector<16x64xf32>
    %cst_115 = arith.constant 0.797884583 : f32
    %309 = vector.broadcast %cst_115 : f32 to vector<16x64xf32>
    %310 = arith.mulf %309, %308 : vector<16x64xf32>
    %311 = math.tanh %310 : vector<16x64xf32>
    %cst_116 = arith.constant 1.000000e+00 : f32
    %312 = vector.broadcast %cst_116 : f32 to vector<16x64xf32>
    %313 = arith.addf %312, %311 : vector<16x64xf32>
    %cst_117 = arith.constant 5.000000e-01 : f32
    %314 = vector.broadcast %cst_117 : f32 to vector<16x64xf32>
    %315 = arith.mulf %314, %313 : vector<16x64xf32>
    %316 = arith.mulf %303, %315 : vector<16x64xf32>
    %cst_118 = arith.constant dense<0.000000e+00> : vector<16x32xf32>
    %317 = tpu.matmul %316, %299, %cst_118 {dimension_numbers = #tpu.dot_dimension_numbers<[1], [0], [0], [1], [0, 0, 1, 1], [], []>} : vector<16x64xf32>, vector<64x32xf32>, vector<16x32xf32> -> vector<16x32xf32>
    %318 = vector.broadcast %300 : vector<1x32xf32> to vector<16x32xf32>
    %319 = arith.addf %317, %318 : vector<16x32xf32>
    %320 = arith.addf %294, %319 : vector<16x32xf32>
    %c19 = arith.constant 19 : index
    %c0_119 = arith.constant 0 : index
    %321 = vector.load %arg4[%c19, %c0_119] : memref<48x128xf32, #tpu.memory_space<vmem>>, vector<1x32xf32>
    %c20 = arith.constant 20 : index
    %c0_120 = arith.constant 0 : index
    %322 = vector.load %arg4[%c20, %c0_120] : memref<48x128xf32, #tpu.memory_space<vmem>>, vector<1x32xf32>
    %cst_121 = arith.constant dense<0.000000e+00> : vector<16xf32>
    %323 = vector.multi_reduction <add>, %320, %cst_121 [1] : vector<16x32xf32> to vector<16xf32>
    %324 = vector.shape_cast %323 : vector<16xf32> to vector<16x1xf32>
    %cst_122 = arith.constant 3.200000e+01 : f32
    %325 = vector.broadcast %cst_122 : f32 to vector<16x1xf32>
    %326 = arith.divf %324, %325 : vector<16x1xf32>
    %327 = vector.broadcast %326 : vector<16x1xf32> to vector<16x32xf32>
    %328 = arith.subf %320, %327 : vector<16x32xf32>
    %329 = arith.mulf %328, %328 : vector<16x32xf32>
    %cst_123 = arith.constant dense<0.000000e+00> : vector<16xf32>
    %330 = vector.multi_reduction <add>, %329, %cst_123 [1] : vector<16x32xf32> to vector<16xf32>
    %331 = vector.shape_cast %330 : vector<16xf32> to vector<16x1xf32>
    %cst_124 = arith.constant 3.200000e+01 : f32
    %332 = vector.broadcast %cst_124 : f32 to vector<16x1xf32>
    %333 = arith.divf %331, %332 : vector<16x1xf32>
    %334 = vector.broadcast %326 : vector<16x1xf32> to vector<16x32xf32>
    %335 = arith.subf %320, %334 : vector<16x32xf32>
    %cst_125 = arith.constant 9.99999974E-6 : f32
    %336 = vector.broadcast %cst_125 : f32 to vector<16x1xf32>
    %337 = arith.addf %333, %336 : vector<16x1xf32>
    %338 = math.rsqrt %337 : vector<16x1xf32>
    %339 = vector.broadcast %338 : vector<16x1xf32> to vector<16x32xf32>
    %340 = arith.mulf %335, %339 : vector<16x32xf32>
    %341 = vector.broadcast %321 : vector<1x32xf32> to vector<16x32xf32>
    %342 = arith.mulf %340, %341 : vector<16x32xf32>
    %343 = vector.broadcast %322 : vector<1x32xf32> to vector<16x32xf32>
    %344 = arith.addf %342, %343 : vector<16x32xf32>
    %c0_126 = arith.constant 0 : index
    %c0_127 = arith.constant 0 : index
    %345 = vector.load %arg1[%c0_126, %c0_127] : memref<16x32xf32, #tpu.memory_space<vmem>>, vector<16x32xf32>
    %c2_128 = arith.constant 2 : index
    %c0_129 = arith.constant 0 : index
    %346 = vector.load %arg4[%c2_128, %c0_129] : memref<48x128xf32, #tpu.memory_space<vmem>>, vector<1x32xf32>
    %c3_130 = arith.constant 3 : index
    %c0_131 = arith.constant 0 : index
    %347 = vector.load %arg4[%c3_130, %c0_131] : memref<48x128xf32, #tpu.memory_space<vmem>>, vector<1x32xf32>
    %cst_132 = arith.constant dense<0.000000e+00> : vector<16xf32>
    %348 = vector.multi_reduction <add>, %345, %cst_132 [1] : vector<16x32xf32> to vector<16xf32>
    %349 = vector.shape_cast %348 : vector<16xf32> to vector<16x1xf32>
    %cst_133 = arith.constant 3.200000e+01 : f32
    %350 = vector.broadcast %cst_133 : f32 to vector<16x1xf32>
    %351 = arith.divf %349, %350 : vector<16x1xf32>
    %352 = vector.broadcast %351 : vector<16x1xf32> to vector<16x32xf32>
    %353 = arith.subf %345, %352 : vector<16x32xf32>
    %354 = arith.mulf %353, %353 : vector<16x32xf32>
    %cst_134 = arith.constant dense<0.000000e+00> : vector<16xf32>
    %355 = vector.multi_reduction <add>, %354, %cst_134 [1] : vector<16x32xf32> to vector<16xf32>
    %356 = vector.shape_cast %355 : vector<16xf32> to vector<16x1xf32>
    %cst_135 = arith.constant 3.200000e+01 : f32
    %357 = vector.broadcast %cst_135 : f32 to vector<16x1xf32>
    %358 = arith.divf %356, %357 : vector<16x1xf32>
    %359 = vector.broadcast %351 : vector<16x1xf32> to vector<16x32xf32>
    %360 = arith.subf %345, %359 : vector<16x32xf32>
    %cst_136 = arith.constant 9.99999974E-6 : f32
    %361 = vector.broadcast %cst_136 : f32 to vector<16x1xf32>
    %362 = arith.addf %358, %361 : vector<16x1xf32>
    %363 = math.rsqrt %362 : vector<16x1xf32>
    %364 = vector.broadcast %363 : vector<16x1xf32> to vector<16x32xf32>
    %365 = arith.mulf %360, %364 : vector<16x32xf32>
    %366 = vector.broadcast %346 : vector<1x32xf32> to vector<16x32xf32>
    %367 = arith.mulf %365, %366 : vector<16x32xf32>
    %368 = vector.broadcast %347 : vector<1x32xf32> to vector<16x32xf32>
    %369 = arith.addf %367, %368 : vector<16x32xf32>
    %c2_137 = arith.constant 2 : index
    %c0_138 = arith.constant 0 : index
    %c0_139 = arith.constant 0 : index
    %370 = vector.load %arg5[%c2_137, %c0_138, %c0_139] : memref<4x32x96xf32, #tpu.memory_space<vmem>>, vector<1x32x96xf32>
    %371 = vector.shape_cast %370 : vector<1x32x96xf32> to vector<32x96xf32>
    %c21 = arith.constant 21 : index
    %c0_140 = arith.constant 0 : index
    %372 = vector.load %arg4[%c21, %c0_140] : memref<48x128xf32, #tpu.memory_space<vmem>>, vector<1x96xf32>
    %c2_141 = arith.constant 2 : index
    %c0_142 = arith.constant 0 : index
    %c0_143 = arith.constant 0 : index
    %373 = vector.load %arg6[%c2_141, %c0_142, %c0_143] : memref<8x32x32xf32, #tpu.memory_space<vmem>>, vector<1x32x32xf32>
    %374 = vector.shape_cast %373 : vector<1x32x32xf32> to vector<32x32xf32>
    %c22 = arith.constant 22 : index
    %c0_144 = arith.constant 0 : index
    %375 = vector.load %arg4[%c22, %c0_144] : memref<48x128xf32, #tpu.memory_space<vmem>>, vector<1x32xf32>
    %cst_145 = arith.constant dense<0.000000e+00> : vector<16x96xf32>
    %376 = tpu.matmul %369, %371, %cst_145 {dimension_numbers = #tpu.dot_dimension_numbers<[1], [0], [0], [1], [0, 0, 1, 1], [], []>} : vector<16x32xf32>, vector<32x96xf32>, vector<16x96xf32> -> vector<16x96xf32>
    %377 = vector.broadcast %372 : vector<1x96xf32> to vector<16x96xf32>
    %378 = arith.addf %376, %377 : vector<16x96xf32>
    %379 = vector.extract_strided_slice %378 {offsets = [0, 0], sizes = [16, 32], strides = [1, 1]} : vector<16x96xf32> to vector<16x32xf32>
    %380 = vector.extract_strided_slice %378 {offsets = [0, 32], sizes = [16, 32], strides = [1, 1]} : vector<16x96xf32> to vector<16x32xf32>
    %381 = vector.extract_strided_slice %378 {offsets = [0, 64], sizes = [16, 32], strides = [1, 1]} : vector<16x96xf32> to vector<16x32xf32>
    %382 = vector.extract_strided_slice %379 {offsets = [0, 0], sizes = [16, 8], strides = [1, 1]} : vector<16x32xf32> to vector<16x8xf32>
    %383 = vector.extract_strided_slice %380 {offsets = [0, 0], sizes = [16, 8], strides = [1, 1]} : vector<16x32xf32> to vector<16x8xf32>
    %384 = vector.extract_strided_slice %381 {offsets = [0, 0], sizes = [16, 8], strides = [1, 1]} : vector<16x32xf32> to vector<16x8xf32>
    %cst_146 = arith.constant dense<0.000000e+00> : vector<16x16xf32>
    %385 = tpu.matmul %382, %383, %cst_146 {dimension_numbers = #tpu.dot_dimension_numbers<[1], [1], [0], [0], [0, 0, 1, 0], [], []>} : vector<16x8xf32>, vector<16x8xf32>, vector<16x16xf32> -> vector<16x16xf32>
    %cst_147 = arith.constant 0.353553385 : f32
    %386 = vector.broadcast %cst_147 : f32 to vector<16x16xf32>
    %387 = arith.mulf %385, %386 : vector<16x16xf32>
    %388 = arith.addf %387, %1 : vector<16x16xf32>
    %cst_148 = arith.constant dense<0xFF800000> : vector<16xf32>
    %389 = vector.multi_reduction <maximumf>, %388, %cst_148 [1] : vector<16x16xf32> to vector<16xf32>
    %390 = vector.shape_cast %389 : vector<16xf32> to vector<16x1xf32>
    %391 = vector.broadcast %390 : vector<16x1xf32> to vector<16x16xf32>
    %392 = arith.subf %388, %391 : vector<16x16xf32>
    %393 = math.exp %392 : vector<16x16xf32>
    %cst_149 = arith.constant dense<0.000000e+00> : vector<16xf32>
    %394 = vector.multi_reduction <add>, %393, %cst_149 [1] : vector<16x16xf32> to vector<16xf32>
    %395 = vector.shape_cast %394 : vector<16xf32> to vector<16x1xf32>
    %396 = vector.broadcast %395 : vector<16x1xf32> to vector<16x16xf32>
    %397 = arith.divf %393, %396 : vector<16x16xf32>
    %cst_150 = arith.constant dense<0.000000e+00> : vector<16x8xf32>
    %398 = tpu.matmul %397, %384, %cst_150 {dimension_numbers = #tpu.dot_dimension_numbers<[1], [0], [0], [1], [0, 0, 1, 1], [], []>} : vector<16x16xf32>, vector<16x8xf32>, vector<16x8xf32> -> vector<16x8xf32>
    %399 = vector.extract_strided_slice %379 {offsets = [0, 8], sizes = [16, 8], strides = [1, 1]} : vector<16x32xf32> to vector<16x8xf32>
    %400 = vector.extract_strided_slice %380 {offsets = [0, 8], sizes = [16, 8], strides = [1, 1]} : vector<16x32xf32> to vector<16x8xf32>
    %401 = vector.extract_strided_slice %381 {offsets = [0, 8], sizes = [16, 8], strides = [1, 1]} : vector<16x32xf32> to vector<16x8xf32>
    %cst_151 = arith.constant dense<0.000000e+00> : vector<16x16xf32>
    %402 = tpu.matmul %399, %400, %cst_151 {dimension_numbers = #tpu.dot_dimension_numbers<[1], [1], [0], [0], [0, 0, 1, 0], [], []>} : vector<16x8xf32>, vector<16x8xf32>, vector<16x16xf32> -> vector<16x16xf32>
    %cst_152 = arith.constant 0.353553385 : f32
    %403 = vector.broadcast %cst_152 : f32 to vector<16x16xf32>
    %404 = arith.mulf %402, %403 : vector<16x16xf32>
    %405 = arith.addf %404, %1 : vector<16x16xf32>
    %cst_153 = arith.constant dense<0xFF800000> : vector<16xf32>
    %406 = vector.multi_reduction <maximumf>, %405, %cst_153 [1] : vector<16x16xf32> to vector<16xf32>
    %407 = vector.shape_cast %406 : vector<16xf32> to vector<16x1xf32>
    %408 = vector.broadcast %407 : vector<16x1xf32> to vector<16x16xf32>
    %409 = arith.subf %405, %408 : vector<16x16xf32>
    %410 = math.exp %409 : vector<16x16xf32>
    %cst_154 = arith.constant dense<0.000000e+00> : vector<16xf32>
    %411 = vector.multi_reduction <add>, %410, %cst_154 [1] : vector<16x16xf32> to vector<16xf32>
    %412 = vector.shape_cast %411 : vector<16xf32> to vector<16x1xf32>
    %413 = vector.broadcast %412 : vector<16x1xf32> to vector<16x16xf32>
    %414 = arith.divf %410, %413 : vector<16x16xf32>
    %cst_155 = arith.constant dense<0.000000e+00> : vector<16x8xf32>
    %415 = tpu.matmul %414, %401, %cst_155 {dimension_numbers = #tpu.dot_dimension_numbers<[1], [0], [0], [1], [0, 0, 1, 1], [], []>} : vector<16x16xf32>, vector<16x8xf32>, vector<16x8xf32> -> vector<16x8xf32>
    %416 = vector.extract_strided_slice %379 {offsets = [0, 16], sizes = [16, 8], strides = [1, 1]} : vector<16x32xf32> to vector<16x8xf32>
    %417 = vector.extract_strided_slice %380 {offsets = [0, 16], sizes = [16, 8], strides = [1, 1]} : vector<16x32xf32> to vector<16x8xf32>
    %418 = vector.extract_strided_slice %381 {offsets = [0, 16], sizes = [16, 8], strides = [1, 1]} : vector<16x32xf32> to vector<16x8xf32>
    %cst_156 = arith.constant dense<0.000000e+00> : vector<16x16xf32>
    %419 = tpu.matmul %416, %417, %cst_156 {dimension_numbers = #tpu.dot_dimension_numbers<[1], [1], [0], [0], [0, 0, 1, 0], [], []>} : vector<16x8xf32>, vector<16x8xf32>, vector<16x16xf32> -> vector<16x16xf32>
    %cst_157 = arith.constant 0.353553385 : f32
    %420 = vector.broadcast %cst_157 : f32 to vector<16x16xf32>
    %421 = arith.mulf %419, %420 : vector<16x16xf32>
    %422 = arith.addf %421, %1 : vector<16x16xf32>
    %cst_158 = arith.constant dense<0xFF800000> : vector<16xf32>
    %423 = vector.multi_reduction <maximumf>, %422, %cst_158 [1] : vector<16x16xf32> to vector<16xf32>
    %424 = vector.shape_cast %423 : vector<16xf32> to vector<16x1xf32>
    %425 = vector.broadcast %424 : vector<16x1xf32> to vector<16x16xf32>
    %426 = arith.subf %422, %425 : vector<16x16xf32>
    %427 = math.exp %426 : vector<16x16xf32>
    %cst_159 = arith.constant dense<0.000000e+00> : vector<16xf32>
    %428 = vector.multi_reduction <add>, %427, %cst_159 [1] : vector<16x16xf32> to vector<16xf32>
    %429 = vector.shape_cast %428 : vector<16xf32> to vector<16x1xf32>
    %430 = vector.broadcast %429 : vector<16x1xf32> to vector<16x16xf32>
    %431 = arith.divf %427, %430 : vector<16x16xf32>
    %cst_160 = arith.constant dense<0.000000e+00> : vector<16x8xf32>
    %432 = tpu.matmul %431, %418, %cst_160 {dimension_numbers = #tpu.dot_dimension_numbers<[1], [0], [0], [1], [0, 0, 1, 1], [], []>} : vector<16x16xf32>, vector<16x8xf32>, vector<16x8xf32> -> vector<16x8xf32>
    %433 = vector.extract_strided_slice %379 {offsets = [0, 24], sizes = [16, 8], strides = [1, 1]} : vector<16x32xf32> to vector<16x8xf32>
    %434 = vector.extract_strided_slice %380 {offsets = [0, 24], sizes = [16, 8], strides = [1, 1]} : vector<16x32xf32> to vector<16x8xf32>
    %435 = vector.extract_strided_slice %381 {offsets = [0, 24], sizes = [16, 8], strides = [1, 1]} : vector<16x32xf32> to vector<16x8xf32>
    %cst_161 = arith.constant dense<0.000000e+00> : vector<16x16xf32>
    %436 = tpu.matmul %433, %434, %cst_161 {dimension_numbers = #tpu.dot_dimension_numbers<[1], [1], [0], [0], [0, 0, 1, 0], [], []>} : vector<16x8xf32>, vector<16x8xf32>, vector<16x16xf32> -> vector<16x16xf32>
    %cst_162 = arith.constant 0.353553385 : f32
    %437 = vector.broadcast %cst_162 : f32 to vector<16x16xf32>
    %438 = arith.mulf %436, %437 : vector<16x16xf32>
    %439 = arith.addf %438, %1 : vector<16x16xf32>
    %cst_163 = arith.constant dense<0xFF800000> : vector<16xf32>
    %440 = vector.multi_reduction <maximumf>, %439, %cst_163 [1] : vector<16x16xf32> to vector<16xf32>
    %441 = vector.shape_cast %440 : vector<16xf32> to vector<16x1xf32>
    %442 = vector.broadcast %441 : vector<16x1xf32> to vector<16x16xf32>
    %443 = arith.subf %439, %442 : vector<16x16xf32>
    %444 = math.exp %443 : vector<16x16xf32>
    %cst_164 = arith.constant dense<0.000000e+00> : vector<16xf32>
    %445 = vector.multi_reduction <add>, %444, %cst_164 [1] : vector<16x16xf32> to vector<16xf32>
    %446 = vector.shape_cast %445 : vector<16xf32> to vector<16x1xf32>
    %447 = vector.broadcast %446 : vector<16x1xf32> to vector<16x16xf32>
    %448 = arith.divf %444, %447 : vector<16x16xf32>
    %cst_165 = arith.constant dense<0.000000e+00> : vector<16x8xf32>
    %449 = tpu.matmul %448, %435, %cst_165 {dimension_numbers = #tpu.dot_dimension_numbers<[1], [0], [0], [1], [0, 0, 1, 1], [], []>} : vector<16x16xf32>, vector<16x8xf32>, vector<16x8xf32> -> vector<16x8xf32>
    %450 = tpu.concatenate %398, %415, %432, %449 in 1 : vector<16x8xf32>, vector<16x8xf32>, vector<16x8xf32>, vector<16x8xf32> -> vector<16x32xf32>
    %cst_166 = arith.constant dense<0.000000e+00> : vector<16x32xf32>
    %451 = tpu.matmul %450, %374, %cst_166 {dimension_numbers = #tpu.dot_dimension_numbers<[1], [0], [0], [1], [0, 0, 1, 1], [], []>} : vector<16x32xf32>, vector<32x32xf32>, vector<16x32xf32> -> vector<16x32xf32>
    %452 = vector.broadcast %375 : vector<1x32xf32> to vector<16x32xf32>
    %453 = arith.addf %451, %452 : vector<16x32xf32>
    %454 = arith.addf %369, %453 : vector<16x32xf32>
    %c23 = arith.constant 23 : index
    %c0_167 = arith.constant 0 : index
    %455 = vector.load %arg4[%c23, %c0_167] : memref<48x128xf32, #tpu.memory_space<vmem>>, vector<1x32xf32>
    %c24 = arith.constant 24 : index
    %c0_168 = arith.constant 0 : index
    %456 = vector.load %arg4[%c24, %c0_168] : memref<48x128xf32, #tpu.memory_space<vmem>>, vector<1x32xf32>
    %cst_169 = arith.constant dense<0.000000e+00> : vector<16xf32>
    %457 = vector.multi_reduction <add>, %454, %cst_169 [1] : vector<16x32xf32> to vector<16xf32>
    %458 = vector.shape_cast %457 : vector<16xf32> to vector<16x1xf32>
    %cst_170 = arith.constant 3.200000e+01 : f32
    %459 = vector.broadcast %cst_170 : f32 to vector<16x1xf32>
    %460 = arith.divf %458, %459 : vector<16x1xf32>
    %461 = vector.broadcast %460 : vector<16x1xf32> to vector<16x32xf32>
    %462 = arith.subf %454, %461 : vector<16x32xf32>
    %463 = arith.mulf %462, %462 : vector<16x32xf32>
    %cst_171 = arith.constant dense<0.000000e+00> : vector<16xf32>
    %464 = vector.multi_reduction <add>, %463, %cst_171 [1] : vector<16x32xf32> to vector<16xf32>
    %465 = vector.shape_cast %464 : vector<16xf32> to vector<16x1xf32>
    %cst_172 = arith.constant 3.200000e+01 : f32
    %466 = vector.broadcast %cst_172 : f32 to vector<16x1xf32>
    %467 = arith.divf %465, %466 : vector<16x1xf32>
    %468 = vector.broadcast %460 : vector<16x1xf32> to vector<16x32xf32>
    %469 = arith.subf %454, %468 : vector<16x32xf32>
    %cst_173 = arith.constant 9.99999974E-6 : f32
    %470 = vector.broadcast %cst_173 : f32 to vector<16x1xf32>
    %471 = arith.addf %467, %470 : vector<16x1xf32>
    %472 = math.rsqrt %471 : vector<16x1xf32>
    %473 = vector.broadcast %472 : vector<16x1xf32> to vector<16x32xf32>
    %474 = arith.mulf %469, %473 : vector<16x32xf32>
    %475 = vector.broadcast %455 : vector<1x32xf32> to vector<16x32xf32>
    %476 = arith.mulf %474, %475 : vector<16x32xf32>
    %477 = vector.broadcast %456 : vector<1x32xf32> to vector<16x32xf32>
    %478 = arith.addf %476, %477 : vector<16x32xf32>
    %c4 = arith.constant 4 : index
    %c0_174 = arith.constant 0 : index
    %c0_175 = arith.constant 0 : index
    %479 = vector.load %arg6[%c4, %c0_174, %c0_175] : memref<8x32x32xf32, #tpu.memory_space<vmem>>, vector<1x32x32xf32>
    %480 = vector.shape_cast %479 : vector<1x32x32xf32> to vector<32x32xf32>
    %c25 = arith.constant 25 : index
    %c0_176 = arith.constant 0 : index
    %481 = vector.load %arg4[%c25, %c0_176] : memref<48x128xf32, #tpu.memory_space<vmem>>, vector<1x32xf32>
    %c0_177 = arith.constant 0 : index
    %c0_178 = arith.constant 0 : index
    %c0_179 = arith.constant 0 : index
    %482 = vector.load %arg7[%c0_177, %c0_178, %c0_179] : memref<6x32x64xf32, #tpu.memory_space<vmem>>, vector<1x32x64xf32>
    %483 = vector.shape_cast %482 : vector<1x32x64xf32> to vector<32x64xf32>
    %c26 = arith.constant 26 : index
    %c0_180 = arith.constant 0 : index
    %484 = vector.load %arg4[%c26, %c0_180] : memref<48x128xf32, #tpu.memory_space<vmem>>, vector<1x64xf32>
    %c6_181 = arith.constant 6 : index
    %c0_182 = arith.constant 0 : index
    %c0_183 = arith.constant 0 : index
    %485 = vector.load %arg6[%c6_181, %c0_182, %c0_183] : memref<8x32x32xf32, #tpu.memory_space<vmem>>, vector<1x32x32xf32>
    %486 = vector.shape_cast %485 : vector<1x32x32xf32> to vector<32x32xf32>
    %c27 = arith.constant 27 : index
    %c0_184 = arith.constant 0 : index
    %487 = vector.load %arg4[%c27, %c0_184] : memref<48x128xf32, #tpu.memory_space<vmem>>, vector<1x32xf32>
    %cst_185 = arith.constant dense<0.000000e+00> : vector<16x32xf32>
    %488 = tpu.matmul %478, %480, %cst_185 {dimension_numbers = #tpu.dot_dimension_numbers<[1], [0], [0], [1], [0, 0, 1, 1], [], []>} : vector<16x32xf32>, vector<32x32xf32>, vector<16x32xf32> -> vector<16x32xf32>
    %489 = vector.broadcast %481 : vector<1x32xf32> to vector<16x32xf32>
    %490 = arith.addf %488, %489 : vector<16x32xf32>
    %cst_186 = arith.constant dense<0.000000e+00> : vector<16x64xf32>
    %491 = tpu.matmul %344, %483, %cst_186 {dimension_numbers = #tpu.dot_dimension_numbers<[1], [0], [0], [1], [0, 0, 1, 1], [], []>} : vector<16x32xf32>, vector<32x64xf32>, vector<16x64xf32> -> vector<16x64xf32>
    %492 = vector.broadcast %484 : vector<1x64xf32> to vector<16x64xf32>
    %493 = arith.addf %491, %492 : vector<16x64xf32>
    %494 = vector.extract_strided_slice %493 {offsets = [0, 0], sizes = [16, 32], strides = [1, 1]} : vector<16x64xf32> to vector<16x32xf32>
    %495 = vector.extract_strided_slice %493 {offsets = [0, 32], sizes = [16, 32], strides = [1, 1]} : vector<16x64xf32> to vector<16x32xf32>
    %496 = vector.extract_strided_slice %490 {offsets = [0, 0], sizes = [16, 8], strides = [1, 1]} : vector<16x32xf32> to vector<16x8xf32>
    %497 = vector.extract_strided_slice %494 {offsets = [0, 0], sizes = [16, 8], strides = [1, 1]} : vector<16x32xf32> to vector<16x8xf32>
    %498 = vector.extract_strided_slice %495 {offsets = [0, 0], sizes = [16, 8], strides = [1, 1]} : vector<16x32xf32> to vector<16x8xf32>
    %cst_187 = arith.constant dense<0.000000e+00> : vector<16x16xf32>
    %499 = tpu.matmul %496, %497, %cst_187 {dimension_numbers = #tpu.dot_dimension_numbers<[1], [1], [0], [0], [0, 0, 1, 0], [], []>} : vector<16x8xf32>, vector<16x8xf32>, vector<16x16xf32> -> vector<16x16xf32>
    %cst_188 = arith.constant 0.353553385 : f32
    %500 = vector.broadcast %cst_188 : f32 to vector<16x16xf32>
    %501 = arith.mulf %499, %500 : vector<16x16xf32>
    %502 = arith.addf %501, %0 : vector<16x16xf32>
    %cst_189 = arith.constant dense<0xFF800000> : vector<16xf32>
    %503 = vector.multi_reduction <maximumf>, %502, %cst_189 [1] : vector<16x16xf32> to vector<16xf32>
    %504 = vector.shape_cast %503 : vector<16xf32> to vector<16x1xf32>
    %505 = vector.broadcast %504 : vector<16x1xf32> to vector<16x16xf32>
    %506 = arith.subf %502, %505 : vector<16x16xf32>
    %507 = math.exp %506 : vector<16x16xf32>
    %cst_190 = arith.constant dense<0.000000e+00> : vector<16xf32>
    %508 = vector.multi_reduction <add>, %507, %cst_190 [1] : vector<16x16xf32> to vector<16xf32>
    %509 = vector.shape_cast %508 : vector<16xf32> to vector<16x1xf32>
    %510 = vector.broadcast %509 : vector<16x1xf32> to vector<16x16xf32>
    %511 = arith.divf %507, %510 : vector<16x16xf32>
    %cst_191 = arith.constant dense<0.000000e+00> : vector<16x8xf32>
    %512 = tpu.matmul %511, %498, %cst_191 {dimension_numbers = #tpu.dot_dimension_numbers<[1], [0], [0], [1], [0, 0, 1, 1], [], []>} : vector<16x16xf32>, vector<16x8xf32>, vector<16x8xf32> -> vector<16x8xf32>
    %513 = vector.extract_strided_slice %490 {offsets = [0, 8], sizes = [16, 8], strides = [1, 1]} : vector<16x32xf32> to vector<16x8xf32>
    %514 = vector.extract_strided_slice %494 {offsets = [0, 8], sizes = [16, 8], strides = [1, 1]} : vector<16x32xf32> to vector<16x8xf32>
    %515 = vector.extract_strided_slice %495 {offsets = [0, 8], sizes = [16, 8], strides = [1, 1]} : vector<16x32xf32> to vector<16x8xf32>
    %cst_192 = arith.constant dense<0.000000e+00> : vector<16x16xf32>
    %516 = tpu.matmul %513, %514, %cst_192 {dimension_numbers = #tpu.dot_dimension_numbers<[1], [1], [0], [0], [0, 0, 1, 0], [], []>} : vector<16x8xf32>, vector<16x8xf32>, vector<16x16xf32> -> vector<16x16xf32>
    %cst_193 = arith.constant 0.353553385 : f32
    %517 = vector.broadcast %cst_193 : f32 to vector<16x16xf32>
    %518 = arith.mulf %516, %517 : vector<16x16xf32>
    %519 = arith.addf %518, %0 : vector<16x16xf32>
    %cst_194 = arith.constant dense<0xFF800000> : vector<16xf32>
    %520 = vector.multi_reduction <maximumf>, %519, %cst_194 [1] : vector<16x16xf32> to vector<16xf32>
    %521 = vector.shape_cast %520 : vector<16xf32> to vector<16x1xf32>
    %522 = vector.broadcast %521 : vector<16x1xf32> to vector<16x16xf32>
    %523 = arith.subf %519, %522 : vector<16x16xf32>
    %524 = math.exp %523 : vector<16x16xf32>
    %cst_195 = arith.constant dense<0.000000e+00> : vector<16xf32>
    %525 = vector.multi_reduction <add>, %524, %cst_195 [1] : vector<16x16xf32> to vector<16xf32>
    %526 = vector.shape_cast %525 : vector<16xf32> to vector<16x1xf32>
    %527 = vector.broadcast %526 : vector<16x1xf32> to vector<16x16xf32>
    %528 = arith.divf %524, %527 : vector<16x16xf32>
    %cst_196 = arith.constant dense<0.000000e+00> : vector<16x8xf32>
    %529 = tpu.matmul %528, %515, %cst_196 {dimension_numbers = #tpu.dot_dimension_numbers<[1], [0], [0], [1], [0, 0, 1, 1], [], []>} : vector<16x16xf32>, vector<16x8xf32>, vector<16x8xf32> -> vector<16x8xf32>
    %530 = vector.extract_strided_slice %490 {offsets = [0, 16], sizes = [16, 8], strides = [1, 1]} : vector<16x32xf32> to vector<16x8xf32>
    %531 = vector.extract_strided_slice %494 {offsets = [0, 16], sizes = [16, 8], strides = [1, 1]} : vector<16x32xf32> to vector<16x8xf32>
    %532 = vector.extract_strided_slice %495 {offsets = [0, 16], sizes = [16, 8], strides = [1, 1]} : vector<16x32xf32> to vector<16x8xf32>
    %cst_197 = arith.constant dense<0.000000e+00> : vector<16x16xf32>
    %533 = tpu.matmul %530, %531, %cst_197 {dimension_numbers = #tpu.dot_dimension_numbers<[1], [1], [0], [0], [0, 0, 1, 0], [], []>} : vector<16x8xf32>, vector<16x8xf32>, vector<16x16xf32> -> vector<16x16xf32>
    %cst_198 = arith.constant 0.353553385 : f32
    %534 = vector.broadcast %cst_198 : f32 to vector<16x16xf32>
    %535 = arith.mulf %533, %534 : vector<16x16xf32>
    %536 = arith.addf %535, %0 : vector<16x16xf32>
    %cst_199 = arith.constant dense<0xFF800000> : vector<16xf32>
    %537 = vector.multi_reduction <maximumf>, %536, %cst_199 [1] : vector<16x16xf32> to vector<16xf32>
    %538 = vector.shape_cast %537 : vector<16xf32> to vector<16x1xf32>
    %539 = vector.broadcast %538 : vector<16x1xf32> to vector<16x16xf32>
    %540 = arith.subf %536, %539 : vector<16x16xf32>
    %541 = math.exp %540 : vector<16x16xf32>
    %cst_200 = arith.constant dense<0.000000e+00> : vector<16xf32>
    %542 = vector.multi_reduction <add>, %541, %cst_200 [1] : vector<16x16xf32> to vector<16xf32>
    %543 = vector.shape_cast %542 : vector<16xf32> to vector<16x1xf32>
    %544 = vector.broadcast %543 : vector<16x1xf32> to vector<16x16xf32>
    %545 = arith.divf %541, %544 : vector<16x16xf32>
    %cst_201 = arith.constant dense<0.000000e+00> : vector<16x8xf32>
    %546 = tpu.matmul %545, %532, %cst_201 {dimension_numbers = #tpu.dot_dimension_numbers<[1], [0], [0], [1], [0, 0, 1, 1], [], []>} : vector<16x16xf32>, vector<16x8xf32>, vector<16x8xf32> -> vector<16x8xf32>
    %547 = vector.extract_strided_slice %490 {offsets = [0, 24], sizes = [16, 8], strides = [1, 1]} : vector<16x32xf32> to vector<16x8xf32>
    %548 = vector.extract_strided_slice %494 {offsets = [0, 24], sizes = [16, 8], strides = [1, 1]} : vector<16x32xf32> to vector<16x8xf32>
    %549 = vector.extract_strided_slice %495 {offsets = [0, 24], sizes = [16, 8], strides = [1, 1]} : vector<16x32xf32> to vector<16x8xf32>
    %cst_202 = arith.constant dense<0.000000e+00> : vector<16x16xf32>
    %550 = tpu.matmul %547, %548, %cst_202 {dimension_numbers = #tpu.dot_dimension_numbers<[1], [1], [0], [0], [0, 0, 1, 0], [], []>} : vector<16x8xf32>, vector<16x8xf32>, vector<16x16xf32> -> vector<16x16xf32>
    %cst_203 = arith.constant 0.353553385 : f32
    %551 = vector.broadcast %cst_203 : f32 to vector<16x16xf32>
    %552 = arith.mulf %550, %551 : vector<16x16xf32>
    %553 = arith.addf %552, %0 : vector<16x16xf32>
    %cst_204 = arith.constant dense<0xFF800000> : vector<16xf32>
    %554 = vector.multi_reduction <maximumf>, %553, %cst_204 [1] : vector<16x16xf32> to vector<16xf32>
    %555 = vector.shape_cast %554 : vector<16xf32> to vector<16x1xf32>
    %556 = vector.broadcast %555 : vector<16x1xf32> to vector<16x16xf32>
    %557 = arith.subf %553, %556 : vector<16x16xf32>
    %558 = math.exp %557 : vector<16x16xf32>
    %cst_205 = arith.constant dense<0.000000e+00> : vector<16xf32>
    %559 = vector.multi_reduction <add>, %558, %cst_205 [1] : vector<16x16xf32> to vector<16xf32>
    %560 = vector.shape_cast %559 : vector<16xf32> to vector<16x1xf32>
    %561 = vector.broadcast %560 : vector<16x1xf32> to vector<16x16xf32>
    %562 = arith.divf %558, %561 : vector<16x16xf32>
    %cst_206 = arith.constant dense<0.000000e+00> : vector<16x8xf32>
    %563 = tpu.matmul %562, %549, %cst_206 {dimension_numbers = #tpu.dot_dimension_numbers<[1], [0], [0], [1], [0, 0, 1, 1], [], []>} : vector<16x16xf32>, vector<16x8xf32>, vector<16x8xf32> -> vector<16x8xf32>
    %564 = tpu.concatenate %512, %529, %546, %563 in 1 : vector<16x8xf32>, vector<16x8xf32>, vector<16x8xf32>, vector<16x8xf32> -> vector<16x32xf32>
    %cst_207 = arith.constant dense<0.000000e+00> : vector<16x32xf32>
    %565 = tpu.matmul %564, %486, %cst_207 {dimension_numbers = #tpu.dot_dimension_numbers<[1], [0], [0], [1], [0, 0, 1, 1], [], []>} : vector<16x32xf32>, vector<32x32xf32>, vector<16x32xf32> -> vector<16x32xf32>
    %566 = vector.broadcast %487 : vector<1x32xf32> to vector<16x32xf32>
    %567 = arith.addf %565, %566 : vector<16x32xf32>
    %568 = arith.addf %478, %567 : vector<16x32xf32>
    %c28 = arith.constant 28 : index
    %c0_208 = arith.constant 0 : index
    %569 = vector.load %arg4[%c28, %c0_208] : memref<48x128xf32, #tpu.memory_space<vmem>>, vector<1x32xf32>
    %c29 = arith.constant 29 : index
    %c0_209 = arith.constant 0 : index
    %570 = vector.load %arg4[%c29, %c0_209] : memref<48x128xf32, #tpu.memory_space<vmem>>, vector<1x32xf32>
    %cst_210 = arith.constant dense<0.000000e+00> : vector<16xf32>
    %571 = vector.multi_reduction <add>, %568, %cst_210 [1] : vector<16x32xf32> to vector<16xf32>
    %572 = vector.shape_cast %571 : vector<16xf32> to vector<16x1xf32>
    %cst_211 = arith.constant 3.200000e+01 : f32
    %573 = vector.broadcast %cst_211 : f32 to vector<16x1xf32>
    %574 = arith.divf %572, %573 : vector<16x1xf32>
    %575 = vector.broadcast %574 : vector<16x1xf32> to vector<16x32xf32>
    %576 = arith.subf %568, %575 : vector<16x32xf32>
    %577 = arith.mulf %576, %576 : vector<16x32xf32>
    %cst_212 = arith.constant dense<0.000000e+00> : vector<16xf32>
    %578 = vector.multi_reduction <add>, %577, %cst_212 [1] : vector<16x32xf32> to vector<16xf32>
    %579 = vector.shape_cast %578 : vector<16xf32> to vector<16x1xf32>
    %cst_213 = arith.constant 3.200000e+01 : f32
    %580 = vector.broadcast %cst_213 : f32 to vector<16x1xf32>
    %581 = arith.divf %579, %580 : vector<16x1xf32>
    %582 = vector.broadcast %574 : vector<16x1xf32> to vector<16x32xf32>
    %583 = arith.subf %568, %582 : vector<16x32xf32>
    %cst_214 = arith.constant 9.99999974E-6 : f32
    %584 = vector.broadcast %cst_214 : f32 to vector<16x1xf32>
    %585 = arith.addf %581, %584 : vector<16x1xf32>
    %586 = math.rsqrt %585 : vector<16x1xf32>
    %587 = vector.broadcast %586 : vector<16x1xf32> to vector<16x32xf32>
    %588 = arith.mulf %583, %587 : vector<16x32xf32>
    %589 = vector.broadcast %569 : vector<1x32xf32> to vector<16x32xf32>
    %590 = arith.mulf %588, %589 : vector<16x32xf32>
    %591 = vector.broadcast %570 : vector<1x32xf32> to vector<16x32xf32>
    %592 = arith.addf %590, %591 : vector<16x32xf32>
    %c4_215 = arith.constant 4 : index
    %c0_216 = arith.constant 0 : index
    %c0_217 = arith.constant 0 : index
    %593 = vector.load %arg7[%c4_215, %c0_216, %c0_217] : memref<6x32x64xf32, #tpu.memory_space<vmem>>, vector<1x32x64xf32>
    %594 = vector.shape_cast %593 : vector<1x32x64xf32> to vector<32x64xf32>
    %c30 = arith.constant 30 : index
    %c0_218 = arith.constant 0 : index
    %595 = vector.load %arg4[%c30, %c0_218] : memref<48x128xf32, #tpu.memory_space<vmem>>, vector<1x64xf32>
    %c2_219 = arith.constant 2 : index
    %c0_220 = arith.constant 0 : index
    %c0_221 = arith.constant 0 : index
    %596 = vector.load %arg8[%c2_219, %c0_220, %c0_221] : memref<4x64x32xf32, #tpu.memory_space<vmem>>, vector<1x64x32xf32>
    %597 = vector.shape_cast %596 : vector<1x64x32xf32> to vector<64x32xf32>
    %c31 = arith.constant 31 : index
    %c0_222 = arith.constant 0 : index
    %598 = vector.load %arg4[%c31, %c0_222] : memref<48x128xf32, #tpu.memory_space<vmem>>, vector<1x32xf32>
    %cst_223 = arith.constant dense<0.000000e+00> : vector<16x64xf32>
    %599 = tpu.matmul %592, %594, %cst_223 {dimension_numbers = #tpu.dot_dimension_numbers<[1], [0], [0], [1], [0, 0, 1, 1], [], []>} : vector<16x32xf32>, vector<32x64xf32>, vector<16x64xf32> -> vector<16x64xf32>
    %600 = vector.broadcast %595 : vector<1x64xf32> to vector<16x64xf32>
    %601 = arith.addf %599, %600 : vector<16x64xf32>
    %602 = arith.mulf %601, %601 : vector<16x64xf32>
    %603 = arith.mulf %601, %602 : vector<16x64xf32>
    %cst_224 = arith.constant 4.471500e-02 : f32
    %604 = vector.broadcast %cst_224 : f32 to vector<16x64xf32>
    %605 = arith.mulf %604, %603 : vector<16x64xf32>
    %606 = arith.addf %601, %605 : vector<16x64xf32>
    %cst_225 = arith.constant 0.797884583 : f32
    %607 = vector.broadcast %cst_225 : f32 to vector<16x64xf32>
    %608 = arith.mulf %607, %606 : vector<16x64xf32>
    %609 = math.tanh %608 : vector<16x64xf32>
    %cst_226 = arith.constant 1.000000e+00 : f32
    %610 = vector.broadcast %cst_226 : f32 to vector<16x64xf32>
    %611 = arith.addf %610, %609 : vector<16x64xf32>
    %cst_227 = arith.constant 5.000000e-01 : f32
    %612 = vector.broadcast %cst_227 : f32 to vector<16x64xf32>
    %613 = arith.mulf %612, %611 : vector<16x64xf32>
    %614 = arith.mulf %601, %613 : vector<16x64xf32>
    %cst_228 = arith.constant dense<0.000000e+00> : vector<16x32xf32>
    %615 = tpu.matmul %614, %597, %cst_228 {dimension_numbers = #tpu.dot_dimension_numbers<[1], [0], [0], [1], [0, 0, 1, 1], [], []>} : vector<16x64xf32>, vector<64x32xf32>, vector<16x32xf32> -> vector<16x32xf32>
    %616 = vector.broadcast %598 : vector<1x32xf32> to vector<16x32xf32>
    %617 = arith.addf %615, %616 : vector<16x32xf32>
    %618 = arith.addf %592, %617 : vector<16x32xf32>
    %c32 = arith.constant 32 : index
    %c0_229 = arith.constant 0 : index
    %619 = vector.load %arg4[%c32, %c0_229] : memref<48x128xf32, #tpu.memory_space<vmem>>, vector<1x32xf32>
    %c33 = arith.constant 33 : index
    %c0_230 = arith.constant 0 : index
    %620 = vector.load %arg4[%c33, %c0_230] : memref<48x128xf32, #tpu.memory_space<vmem>>, vector<1x32xf32>
    %cst_231 = arith.constant dense<0.000000e+00> : vector<16xf32>
    %621 = vector.multi_reduction <add>, %618, %cst_231 [1] : vector<16x32xf32> to vector<16xf32>
    %622 = vector.shape_cast %621 : vector<16xf32> to vector<16x1xf32>
    %cst_232 = arith.constant 3.200000e+01 : f32
    %623 = vector.broadcast %cst_232 : f32 to vector<16x1xf32>
    %624 = arith.divf %622, %623 : vector<16x1xf32>
    %625 = vector.broadcast %624 : vector<16x1xf32> to vector<16x32xf32>
    %626 = arith.subf %618, %625 : vector<16x32xf32>
    %627 = arith.mulf %626, %626 : vector<16x32xf32>
    %cst_233 = arith.constant dense<0.000000e+00> : vector<16xf32>
    %628 = vector.multi_reduction <add>, %627, %cst_233 [1] : vector<16x32xf32> to vector<16xf32>
    %629 = vector.shape_cast %628 : vector<16xf32> to vector<16x1xf32>
    %cst_234 = arith.constant 3.200000e+01 : f32
    %630 = vector.broadcast %cst_234 : f32 to vector<16x1xf32>
    %631 = arith.divf %629, %630 : vector<16x1xf32>
    %632 = vector.broadcast %624 : vector<16x1xf32> to vector<16x32xf32>
    %633 = arith.subf %618, %632 : vector<16x32xf32>
    %cst_235 = arith.constant 9.99999974E-6 : f32
    %634 = vector.broadcast %cst_235 : f32 to vector<16x1xf32>
    %635 = arith.addf %631, %634 : vector<16x1xf32>
    %636 = math.rsqrt %635 : vector<16x1xf32>
    %637 = vector.broadcast %636 : vector<16x1xf32> to vector<16x32xf32>
    %638 = arith.mulf %633, %637 : vector<16x32xf32>
    %639 = vector.broadcast %619 : vector<1x32xf32> to vector<16x32xf32>
    %640 = arith.mulf %638, %639 : vector<16x32xf32>
    %641 = vector.broadcast %620 : vector<1x32xf32> to vector<16x32xf32>
    %642 = arith.addf %640, %641 : vector<16x32xf32>
    %c3_236 = arith.constant 3 : index
    %c0_237 = arith.constant 0 : index
    %c0_238 = arith.constant 0 : index
    %643 = vector.load %arg5[%c3_236, %c0_237, %c0_238] : memref<4x32x96xf32, #tpu.memory_space<vmem>>, vector<1x32x96xf32>
    %644 = vector.shape_cast %643 : vector<1x32x96xf32> to vector<32x96xf32>
    %c34 = arith.constant 34 : index
    %c0_239 = arith.constant 0 : index
    %645 = vector.load %arg4[%c34, %c0_239] : memref<48x128xf32, #tpu.memory_space<vmem>>, vector<1x96xf32>
    %c3_240 = arith.constant 3 : index
    %c0_241 = arith.constant 0 : index
    %c0_242 = arith.constant 0 : index
    %646 = vector.load %arg6[%c3_240, %c0_241, %c0_242] : memref<8x32x32xf32, #tpu.memory_space<vmem>>, vector<1x32x32xf32>
    %647 = vector.shape_cast %646 : vector<1x32x32xf32> to vector<32x32xf32>
    %c35 = arith.constant 35 : index
    %c0_243 = arith.constant 0 : index
    %648 = vector.load %arg4[%c35, %c0_243] : memref<48x128xf32, #tpu.memory_space<vmem>>, vector<1x32xf32>
    %cst_244 = arith.constant dense<0.000000e+00> : vector<16x96xf32>
    %649 = tpu.matmul %642, %644, %cst_244 {dimension_numbers = #tpu.dot_dimension_numbers<[1], [0], [0], [1], [0, 0, 1, 1], [], []>} : vector<16x32xf32>, vector<32x96xf32>, vector<16x96xf32> -> vector<16x96xf32>
    %650 = vector.broadcast %645 : vector<1x96xf32> to vector<16x96xf32>
    %651 = arith.addf %649, %650 : vector<16x96xf32>
    %652 = vector.extract_strided_slice %651 {offsets = [0, 0], sizes = [16, 32], strides = [1, 1]} : vector<16x96xf32> to vector<16x32xf32>
    %653 = vector.extract_strided_slice %651 {offsets = [0, 32], sizes = [16, 32], strides = [1, 1]} : vector<16x96xf32> to vector<16x32xf32>
    %654 = vector.extract_strided_slice %651 {offsets = [0, 64], sizes = [16, 32], strides = [1, 1]} : vector<16x96xf32> to vector<16x32xf32>
    %655 = vector.extract_strided_slice %652 {offsets = [0, 0], sizes = [16, 8], strides = [1, 1]} : vector<16x32xf32> to vector<16x8xf32>
    %656 = vector.extract_strided_slice %653 {offsets = [0, 0], sizes = [16, 8], strides = [1, 1]} : vector<16x32xf32> to vector<16x8xf32>
    %657 = vector.extract_strided_slice %654 {offsets = [0, 0], sizes = [16, 8], strides = [1, 1]} : vector<16x32xf32> to vector<16x8xf32>
    %cst_245 = arith.constant dense<0.000000e+00> : vector<16x16xf32>
    %658 = tpu.matmul %655, %656, %cst_245 {dimension_numbers = #tpu.dot_dimension_numbers<[1], [1], [0], [0], [0, 0, 1, 0], [], []>} : vector<16x8xf32>, vector<16x8xf32>, vector<16x16xf32> -> vector<16x16xf32>
    %cst_246 = arith.constant 0.353553385 : f32
    %659 = vector.broadcast %cst_246 : f32 to vector<16x16xf32>
    %660 = arith.mulf %658, %659 : vector<16x16xf32>
    %661 = arith.addf %660, %1 : vector<16x16xf32>
    %cst_247 = arith.constant dense<0xFF800000> : vector<16xf32>
    %662 = vector.multi_reduction <maximumf>, %661, %cst_247 [1] : vector<16x16xf32> to vector<16xf32>
    %663 = vector.shape_cast %662 : vector<16xf32> to vector<16x1xf32>
    %664 = vector.broadcast %663 : vector<16x1xf32> to vector<16x16xf32>
    %665 = arith.subf %661, %664 : vector<16x16xf32>
    %666 = math.exp %665 : vector<16x16xf32>
    %cst_248 = arith.constant dense<0.000000e+00> : vector<16xf32>
    %667 = vector.multi_reduction <add>, %666, %cst_248 [1] : vector<16x16xf32> to vector<16xf32>
    %668 = vector.shape_cast %667 : vector<16xf32> to vector<16x1xf32>
    %669 = vector.broadcast %668 : vector<16x1xf32> to vector<16x16xf32>
    %670 = arith.divf %666, %669 : vector<16x16xf32>
    %cst_249 = arith.constant dense<0.000000e+00> : vector<16x8xf32>
    %671 = tpu.matmul %670, %657, %cst_249 {dimension_numbers = #tpu.dot_dimension_numbers<[1], [0], [0], [1], [0, 0, 1, 1], [], []>} : vector<16x16xf32>, vector<16x8xf32>, vector<16x8xf32> -> vector<16x8xf32>
    %672 = vector.extract_strided_slice %652 {offsets = [0, 8], sizes = [16, 8], strides = [1, 1]} : vector<16x32xf32> to vector<16x8xf32>
    %673 = vector.extract_strided_slice %653 {offsets = [0, 8], sizes = [16, 8], strides = [1, 1]} : vector<16x32xf32> to vector<16x8xf32>
    %674 = vector.extract_strided_slice %654 {offsets = [0, 8], sizes = [16, 8], strides = [1, 1]} : vector<16x32xf32> to vector<16x8xf32>
    %cst_250 = arith.constant dense<0.000000e+00> : vector<16x16xf32>
    %675 = tpu.matmul %672, %673, %cst_250 {dimension_numbers = #tpu.dot_dimension_numbers<[1], [1], [0], [0], [0, 0, 1, 0], [], []>} : vector<16x8xf32>, vector<16x8xf32>, vector<16x16xf32> -> vector<16x16xf32>
    %cst_251 = arith.constant 0.353553385 : f32
    %676 = vector.broadcast %cst_251 : f32 to vector<16x16xf32>
    %677 = arith.mulf %675, %676 : vector<16x16xf32>
    %678 = arith.addf %677, %1 : vector<16x16xf32>
    %cst_252 = arith.constant dense<0xFF800000> : vector<16xf32>
    %679 = vector.multi_reduction <maximumf>, %678, %cst_252 [1] : vector<16x16xf32> to vector<16xf32>
    %680 = vector.shape_cast %679 : vector<16xf32> to vector<16x1xf32>
    %681 = vector.broadcast %680 : vector<16x1xf32> to vector<16x16xf32>
    %682 = arith.subf %678, %681 : vector<16x16xf32>
    %683 = math.exp %682 : vector<16x16xf32>
    %cst_253 = arith.constant dense<0.000000e+00> : vector<16xf32>
    %684 = vector.multi_reduction <add>, %683, %cst_253 [1] : vector<16x16xf32> to vector<16xf32>
    %685 = vector.shape_cast %684 : vector<16xf32> to vector<16x1xf32>
    %686 = vector.broadcast %685 : vector<16x1xf32> to vector<16x16xf32>
    %687 = arith.divf %683, %686 : vector<16x16xf32>
    %cst_254 = arith.constant dense<0.000000e+00> : vector<16x8xf32>
    %688 = tpu.matmul %687, %674, %cst_254 {dimension_numbers = #tpu.dot_dimension_numbers<[1], [0], [0], [1], [0, 0, 1, 1], [], []>} : vector<16x16xf32>, vector<16x8xf32>, vector<16x8xf32> -> vector<16x8xf32>
    %689 = vector.extract_strided_slice %652 {offsets = [0, 16], sizes = [16, 8], strides = [1, 1]} : vector<16x32xf32> to vector<16x8xf32>
    %690 = vector.extract_strided_slice %653 {offsets = [0, 16], sizes = [16, 8], strides = [1, 1]} : vector<16x32xf32> to vector<16x8xf32>
    %691 = vector.extract_strided_slice %654 {offsets = [0, 16], sizes = [16, 8], strides = [1, 1]} : vector<16x32xf32> to vector<16x8xf32>
    %cst_255 = arith.constant dense<0.000000e+00> : vector<16x16xf32>
    %692 = tpu.matmul %689, %690, %cst_255 {dimension_numbers = #tpu.dot_dimension_numbers<[1], [1], [0], [0], [0, 0, 1, 0], [], []>} : vector<16x8xf32>, vector<16x8xf32>, vector<16x16xf32> -> vector<16x16xf32>
    %cst_256 = arith.constant 0.353553385 : f32
    %693 = vector.broadcast %cst_256 : f32 to vector<16x16xf32>
    %694 = arith.mulf %692, %693 : vector<16x16xf32>
    %695 = arith.addf %694, %1 : vector<16x16xf32>
    %cst_257 = arith.constant dense<0xFF800000> : vector<16xf32>
    %696 = vector.multi_reduction <maximumf>, %695, %cst_257 [1] : vector<16x16xf32> to vector<16xf32>
    %697 = vector.shape_cast %696 : vector<16xf32> to vector<16x1xf32>
    %698 = vector.broadcast %697 : vector<16x1xf32> to vector<16x16xf32>
    %699 = arith.subf %695, %698 : vector<16x16xf32>
    %700 = math.exp %699 : vector<16x16xf32>
    %cst_258 = arith.constant dense<0.000000e+00> : vector<16xf32>
    %701 = vector.multi_reduction <add>, %700, %cst_258 [1] : vector<16x16xf32> to vector<16xf32>
    %702 = vector.shape_cast %701 : vector<16xf32> to vector<16x1xf32>
    %703 = vector.broadcast %702 : vector<16x1xf32> to vector<16x16xf32>
    %704 = arith.divf %700, %703 : vector<16x16xf32>
    %cst_259 = arith.constant dense<0.000000e+00> : vector<16x8xf32>
    %705 = tpu.matmul %704, %691, %cst_259 {dimension_numbers = #tpu.dot_dimension_numbers<[1], [0], [0], [1], [0, 0, 1, 1], [], []>} : vector<16x16xf32>, vector<16x8xf32>, vector<16x8xf32> -> vector<16x8xf32>
    %706 = vector.extract_strided_slice %652 {offsets = [0, 24], sizes = [16, 8], strides = [1, 1]} : vector<16x32xf32> to vector<16x8xf32>
    %707 = vector.extract_strided_slice %653 {offsets = [0, 24], sizes = [16, 8], strides = [1, 1]} : vector<16x32xf32> to vector<16x8xf32>
    %708 = vector.extract_strided_slice %654 {offsets = [0, 24], sizes = [16, 8], strides = [1, 1]} : vector<16x32xf32> to vector<16x8xf32>
    %cst_260 = arith.constant dense<0.000000e+00> : vector<16x16xf32>
    %709 = tpu.matmul %706, %707, %cst_260 {dimension_numbers = #tpu.dot_dimension_numbers<[1], [1], [0], [0], [0, 0, 1, 0], [], []>} : vector<16x8xf32>, vector<16x8xf32>, vector<16x16xf32> -> vector<16x16xf32>
    %cst_261 = arith.constant 0.353553385 : f32
    %710 = vector.broadcast %cst_261 : f32 to vector<16x16xf32>
    %711 = arith.mulf %709, %710 : vector<16x16xf32>
    %712 = arith.addf %711, %1 : vector<16x16xf32>
    %cst_262 = arith.constant dense<0xFF800000> : vector<16xf32>
    %713 = vector.multi_reduction <maximumf>, %712, %cst_262 [1] : vector<16x16xf32> to vector<16xf32>
    %714 = vector.shape_cast %713 : vector<16xf32> to vector<16x1xf32>
    %715 = vector.broadcast %714 : vector<16x1xf32> to vector<16x16xf32>
    %716 = arith.subf %712, %715 : vector<16x16xf32>
    %717 = math.exp %716 : vector<16x16xf32>
    %cst_263 = arith.constant dense<0.000000e+00> : vector<16xf32>
    %718 = vector.multi_reduction <add>, %717, %cst_263 [1] : vector<16x16xf32> to vector<16xf32>
    %719 = vector.shape_cast %718 : vector<16xf32> to vector<16x1xf32>
    %720 = vector.broadcast %719 : vector<16x1xf32> to vector<16x16xf32>
    %721 = arith.divf %717, %720 : vector<16x16xf32>
    %cst_264 = arith.constant dense<0.000000e+00> : vector<16x8xf32>
    %722 = tpu.matmul %721, %708, %cst_264 {dimension_numbers = #tpu.dot_dimension_numbers<[1], [0], [0], [1], [0, 0, 1, 1], [], []>} : vector<16x16xf32>, vector<16x8xf32>, vector<16x8xf32> -> vector<16x8xf32>
    %723 = tpu.concatenate %671, %688, %705, %722 in 1 : vector<16x8xf32>, vector<16x8xf32>, vector<16x8xf32>, vector<16x8xf32> -> vector<16x32xf32>
    %cst_265 = arith.constant dense<0.000000e+00> : vector<16x32xf32>
    %724 = tpu.matmul %723, %647, %cst_265 {dimension_numbers = #tpu.dot_dimension_numbers<[1], [0], [0], [1], [0, 0, 1, 1], [], []>} : vector<16x32xf32>, vector<32x32xf32>, vector<16x32xf32> -> vector<16x32xf32>
    %725 = vector.broadcast %648 : vector<1x32xf32> to vector<16x32xf32>
    %726 = arith.addf %724, %725 : vector<16x32xf32>
    %727 = arith.addf %642, %726 : vector<16x32xf32>
    %c36 = arith.constant 36 : index
    %c0_266 = arith.constant 0 : index
    %728 = vector.load %arg4[%c36, %c0_266] : memref<48x128xf32, #tpu.memory_space<vmem>>, vector<1x32xf32>
    %c37 = arith.constant 37 : index
    %c0_267 = arith.constant 0 : index
    %729 = vector.load %arg4[%c37, %c0_267] : memref<48x128xf32, #tpu.memory_space<vmem>>, vector<1x32xf32>
    %cst_268 = arith.constant dense<0.000000e+00> : vector<16xf32>
    %730 = vector.multi_reduction <add>, %727, %cst_268 [1] : vector<16x32xf32> to vector<16xf32>
    %731 = vector.shape_cast %730 : vector<16xf32> to vector<16x1xf32>
    %cst_269 = arith.constant 3.200000e+01 : f32
    %732 = vector.broadcast %cst_269 : f32 to vector<16x1xf32>
    %733 = arith.divf %731, %732 : vector<16x1xf32>
    %734 = vector.broadcast %733 : vector<16x1xf32> to vector<16x32xf32>
    %735 = arith.subf %727, %734 : vector<16x32xf32>
    %736 = arith.mulf %735, %735 : vector<16x32xf32>
    %cst_270 = arith.constant dense<0.000000e+00> : vector<16xf32>
    %737 = vector.multi_reduction <add>, %736, %cst_270 [1] : vector<16x32xf32> to vector<16xf32>
    %738 = vector.shape_cast %737 : vector<16xf32> to vector<16x1xf32>
    %cst_271 = arith.constant 3.200000e+01 : f32
    %739 = vector.broadcast %cst_271 : f32 to vector<16x1xf32>
    %740 = arith.divf %738, %739 : vector<16x1xf32>
    %741 = vector.broadcast %733 : vector<16x1xf32> to vector<16x32xf32>
    %742 = arith.subf %727, %741 : vector<16x32xf32>
    %cst_272 = arith.constant 9.99999974E-6 : f32
    %743 = vector.broadcast %cst_272 : f32 to vector<16x1xf32>
    %744 = arith.addf %740, %743 : vector<16x1xf32>
    %745 = math.rsqrt %744 : vector<16x1xf32>
    %746 = vector.broadcast %745 : vector<16x1xf32> to vector<16x32xf32>
    %747 = arith.mulf %742, %746 : vector<16x32xf32>
    %748 = vector.broadcast %728 : vector<1x32xf32> to vector<16x32xf32>
    %749 = arith.mulf %747, %748 : vector<16x32xf32>
    %750 = vector.broadcast %729 : vector<1x32xf32> to vector<16x32xf32>
    %751 = arith.addf %749, %750 : vector<16x32xf32>
    %c5_273 = arith.constant 5 : index
    %c0_274 = arith.constant 0 : index
    %c0_275 = arith.constant 0 : index
    %752 = vector.load %arg6[%c5_273, %c0_274, %c0_275] : memref<8x32x32xf32, #tpu.memory_space<vmem>>, vector<1x32x32xf32>
    %753 = vector.shape_cast %752 : vector<1x32x32xf32> to vector<32x32xf32>
    %c38 = arith.constant 38 : index
    %c0_276 = arith.constant 0 : index
    %754 = vector.load %arg4[%c38, %c0_276] : memref<48x128xf32, #tpu.memory_space<vmem>>, vector<1x32xf32>
    %c1_277 = arith.constant 1 : index
    %c0_278 = arith.constant 0 : index
    %c0_279 = arith.constant 0 : index
    %755 = vector.load %arg7[%c1_277, %c0_278, %c0_279] : memref<6x32x64xf32, #tpu.memory_space<vmem>>, vector<1x32x64xf32>
    %756 = vector.shape_cast %755 : vector<1x32x64xf32> to vector<32x64xf32>
    %c39 = arith.constant 39 : index
    %c0_280 = arith.constant 0 : index
    %757 = vector.load %arg4[%c39, %c0_280] : memref<48x128xf32, #tpu.memory_space<vmem>>, vector<1x64xf32>
    %c7_281 = arith.constant 7 : index
    %c0_282 = arith.constant 0 : index
    %c0_283 = arith.constant 0 : index
    %758 = vector.load %arg6[%c7_281, %c0_282, %c0_283] : memref<8x32x32xf32, #tpu.memory_space<vmem>>, vector<1x32x32xf32>
    %759 = vector.shape_cast %758 : vector<1x32x32xf32> to vector<32x32xf32>
    %c40 = arith.constant 40 : index
    %c0_284 = arith.constant 0 : index
    %760 = vector.load %arg4[%c40, %c0_284] : memref<48x128xf32, #tpu.memory_space<vmem>>, vector<1x32xf32>
    %cst_285 = arith.constant dense<0.000000e+00> : vector<16x32xf32>
    %761 = tpu.matmul %751, %753, %cst_285 {dimension_numbers = #tpu.dot_dimension_numbers<[1], [0], [0], [1], [0, 0, 1, 1], [], []>} : vector<16x32xf32>, vector<32x32xf32>, vector<16x32xf32> -> vector<16x32xf32>
    %762 = vector.broadcast %754 : vector<1x32xf32> to vector<16x32xf32>
    %763 = arith.addf %761, %762 : vector<16x32xf32>
    %cst_286 = arith.constant dense<0.000000e+00> : vector<16x64xf32>
    %764 = tpu.matmul %344, %756, %cst_286 {dimension_numbers = #tpu.dot_dimension_numbers<[1], [0], [0], [1], [0, 0, 1, 1], [], []>} : vector<16x32xf32>, vector<32x64xf32>, vector<16x64xf32> -> vector<16x64xf32>
    %765 = vector.broadcast %757 : vector<1x64xf32> to vector<16x64xf32>
    %766 = arith.addf %764, %765 : vector<16x64xf32>
    %767 = vector.extract_strided_slice %766 {offsets = [0, 0], sizes = [16, 32], strides = [1, 1]} : vector<16x64xf32> to vector<16x32xf32>
    %768 = vector.extract_strided_slice %766 {offsets = [0, 32], sizes = [16, 32], strides = [1, 1]} : vector<16x64xf32> to vector<16x32xf32>
    %769 = vector.extract_strided_slice %763 {offsets = [0, 0], sizes = [16, 8], strides = [1, 1]} : vector<16x32xf32> to vector<16x8xf32>
    %770 = vector.extract_strided_slice %767 {offsets = [0, 0], sizes = [16, 8], strides = [1, 1]} : vector<16x32xf32> to vector<16x8xf32>
    %771 = vector.extract_strided_slice %768 {offsets = [0, 0], sizes = [16, 8], strides = [1, 1]} : vector<16x32xf32> to vector<16x8xf32>
    %cst_287 = arith.constant dense<0.000000e+00> : vector<16x16xf32>
    %772 = tpu.matmul %769, %770, %cst_287 {dimension_numbers = #tpu.dot_dimension_numbers<[1], [1], [0], [0], [0, 0, 1, 0], [], []>} : vector<16x8xf32>, vector<16x8xf32>, vector<16x16xf32> -> vector<16x16xf32>
    %cst_288 = arith.constant 0.353553385 : f32
    %773 = vector.broadcast %cst_288 : f32 to vector<16x16xf32>
    %774 = arith.mulf %772, %773 : vector<16x16xf32>
    %775 = arith.addf %774, %0 : vector<16x16xf32>
    %cst_289 = arith.constant dense<0xFF800000> : vector<16xf32>
    %776 = vector.multi_reduction <maximumf>, %775, %cst_289 [1] : vector<16x16xf32> to vector<16xf32>
    %777 = vector.shape_cast %776 : vector<16xf32> to vector<16x1xf32>
    %778 = vector.broadcast %777 : vector<16x1xf32> to vector<16x16xf32>
    %779 = arith.subf %775, %778 : vector<16x16xf32>
    %780 = math.exp %779 : vector<16x16xf32>
    %cst_290 = arith.constant dense<0.000000e+00> : vector<16xf32>
    %781 = vector.multi_reduction <add>, %780, %cst_290 [1] : vector<16x16xf32> to vector<16xf32>
    %782 = vector.shape_cast %781 : vector<16xf32> to vector<16x1xf32>
    %783 = vector.broadcast %782 : vector<16x1xf32> to vector<16x16xf32>
    %784 = arith.divf %780, %783 : vector<16x16xf32>
    %cst_291 = arith.constant dense<0.000000e+00> : vector<16x8xf32>
    %785 = tpu.matmul %784, %771, %cst_291 {dimension_numbers = #tpu.dot_dimension_numbers<[1], [0], [0], [1], [0, 0, 1, 1], [], []>} : vector<16x16xf32>, vector<16x8xf32>, vector<16x8xf32> -> vector<16x8xf32>
    %786 = vector.extract_strided_slice %763 {offsets = [0, 8], sizes = [16, 8], strides = [1, 1]} : vector<16x32xf32> to vector<16x8xf32>
    %787 = vector.extract_strided_slice %767 {offsets = [0, 8], sizes = [16, 8], strides = [1, 1]} : vector<16x32xf32> to vector<16x8xf32>
    %788 = vector.extract_strided_slice %768 {offsets = [0, 8], sizes = [16, 8], strides = [1, 1]} : vector<16x32xf32> to vector<16x8xf32>
    %cst_292 = arith.constant dense<0.000000e+00> : vector<16x16xf32>
    %789 = tpu.matmul %786, %787, %cst_292 {dimension_numbers = #tpu.dot_dimension_numbers<[1], [1], [0], [0], [0, 0, 1, 0], [], []>} : vector<16x8xf32>, vector<16x8xf32>, vector<16x16xf32> -> vector<16x16xf32>
    %cst_293 = arith.constant 0.353553385 : f32
    %790 = vector.broadcast %cst_293 : f32 to vector<16x16xf32>
    %791 = arith.mulf %789, %790 : vector<16x16xf32>
    %792 = arith.addf %791, %0 : vector<16x16xf32>
    %cst_294 = arith.constant dense<0xFF800000> : vector<16xf32>
    %793 = vector.multi_reduction <maximumf>, %792, %cst_294 [1] : vector<16x16xf32> to vector<16xf32>
    %794 = vector.shape_cast %793 : vector<16xf32> to vector<16x1xf32>
    %795 = vector.broadcast %794 : vector<16x1xf32> to vector<16x16xf32>
    %796 = arith.subf %792, %795 : vector<16x16xf32>
    %797 = math.exp %796 : vector<16x16xf32>
    %cst_295 = arith.constant dense<0.000000e+00> : vector<16xf32>
    %798 = vector.multi_reduction <add>, %797, %cst_295 [1] : vector<16x16xf32> to vector<16xf32>
    %799 = vector.shape_cast %798 : vector<16xf32> to vector<16x1xf32>
    %800 = vector.broadcast %799 : vector<16x1xf32> to vector<16x16xf32>
    %801 = arith.divf %797, %800 : vector<16x16xf32>
    %cst_296 = arith.constant dense<0.000000e+00> : vector<16x8xf32>
    %802 = tpu.matmul %801, %788, %cst_296 {dimension_numbers = #tpu.dot_dimension_numbers<[1], [0], [0], [1], [0, 0, 1, 1], [], []>} : vector<16x16xf32>, vector<16x8xf32>, vector<16x8xf32> -> vector<16x8xf32>
    %803 = vector.extract_strided_slice %763 {offsets = [0, 16], sizes = [16, 8], strides = [1, 1]} : vector<16x32xf32> to vector<16x8xf32>
    %804 = vector.extract_strided_slice %767 {offsets = [0, 16], sizes = [16, 8], strides = [1, 1]} : vector<16x32xf32> to vector<16x8xf32>
    %805 = vector.extract_strided_slice %768 {offsets = [0, 16], sizes = [16, 8], strides = [1, 1]} : vector<16x32xf32> to vector<16x8xf32>
    %cst_297 = arith.constant dense<0.000000e+00> : vector<16x16xf32>
    %806 = tpu.matmul %803, %804, %cst_297 {dimension_numbers = #tpu.dot_dimension_numbers<[1], [1], [0], [0], [0, 0, 1, 0], [], []>} : vector<16x8xf32>, vector<16x8xf32>, vector<16x16xf32> -> vector<16x16xf32>
    %cst_298 = arith.constant 0.353553385 : f32
    %807 = vector.broadcast %cst_298 : f32 to vector<16x16xf32>
    %808 = arith.mulf %806, %807 : vector<16x16xf32>
    %809 = arith.addf %808, %0 : vector<16x16xf32>
    %cst_299 = arith.constant dense<0xFF800000> : vector<16xf32>
    %810 = vector.multi_reduction <maximumf>, %809, %cst_299 [1] : vector<16x16xf32> to vector<16xf32>
    %811 = vector.shape_cast %810 : vector<16xf32> to vector<16x1xf32>
    %812 = vector.broadcast %811 : vector<16x1xf32> to vector<16x16xf32>
    %813 = arith.subf %809, %812 : vector<16x16xf32>
    %814 = math.exp %813 : vector<16x16xf32>
    %cst_300 = arith.constant dense<0.000000e+00> : vector<16xf32>
    %815 = vector.multi_reduction <add>, %814, %cst_300 [1] : vector<16x16xf32> to vector<16xf32>
    %816 = vector.shape_cast %815 : vector<16xf32> to vector<16x1xf32>
    %817 = vector.broadcast %816 : vector<16x1xf32> to vector<16x16xf32>
    %818 = arith.divf %814, %817 : vector<16x16xf32>
    %cst_301 = arith.constant dense<0.000000e+00> : vector<16x8xf32>
    %819 = tpu.matmul %818, %805, %cst_301 {dimension_numbers = #tpu.dot_dimension_numbers<[1], [0], [0], [1], [0, 0, 1, 1], [], []>} : vector<16x16xf32>, vector<16x8xf32>, vector<16x8xf32> -> vector<16x8xf32>
    %820 = vector.extract_strided_slice %763 {offsets = [0, 24], sizes = [16, 8], strides = [1, 1]} : vector<16x32xf32> to vector<16x8xf32>
    %821 = vector.extract_strided_slice %767 {offsets = [0, 24], sizes = [16, 8], strides = [1, 1]} : vector<16x32xf32> to vector<16x8xf32>
    %822 = vector.extract_strided_slice %768 {offsets = [0, 24], sizes = [16, 8], strides = [1, 1]} : vector<16x32xf32> to vector<16x8xf32>
    %cst_302 = arith.constant dense<0.000000e+00> : vector<16x16xf32>
    %823 = tpu.matmul %820, %821, %cst_302 {dimension_numbers = #tpu.dot_dimension_numbers<[1], [1], [0], [0], [0, 0, 1, 0], [], []>} : vector<16x8xf32>, vector<16x8xf32>, vector<16x16xf32> -> vector<16x16xf32>
    %cst_303 = arith.constant 0.353553385 : f32
    %824 = vector.broadcast %cst_303 : f32 to vector<16x16xf32>
    %825 = arith.mulf %823, %824 : vector<16x16xf32>
    %826 = arith.addf %825, %0 : vector<16x16xf32>
    %cst_304 = arith.constant dense<0xFF800000> : vector<16xf32>
    %827 = vector.multi_reduction <maximumf>, %826, %cst_304 [1] : vector<16x16xf32> to vector<16xf32>
    %828 = vector.shape_cast %827 : vector<16xf32> to vector<16x1xf32>
    %829 = vector.broadcast %828 : vector<16x1xf32> to vector<16x16xf32>
    %830 = arith.subf %826, %829 : vector<16x16xf32>
    %831 = math.exp %830 : vector<16x16xf32>
    %cst_305 = arith.constant dense<0.000000e+00> : vector<16xf32>
    %832 = vector.multi_reduction <add>, %831, %cst_305 [1] : vector<16x16xf32> to vector<16xf32>
    %833 = vector.shape_cast %832 : vector<16xf32> to vector<16x1xf32>
    %834 = vector.broadcast %833 : vector<16x1xf32> to vector<16x16xf32>
    %835 = arith.divf %831, %834 : vector<16x16xf32>
    %cst_306 = arith.constant dense<0.000000e+00> : vector<16x8xf32>
    %836 = tpu.matmul %835, %822, %cst_306 {dimension_numbers = #tpu.dot_dimension_numbers<[1], [0], [0], [1], [0, 0, 1, 1], [], []>} : vector<16x16xf32>, vector<16x8xf32>, vector<16x8xf32> -> vector<16x8xf32>
    %837 = tpu.concatenate %785, %802, %819, %836 in 1 : vector<16x8xf32>, vector<16x8xf32>, vector<16x8xf32>, vector<16x8xf32> -> vector<16x32xf32>
    %cst_307 = arith.constant dense<0.000000e+00> : vector<16x32xf32>
    %838 = tpu.matmul %837, %759, %cst_307 {dimension_numbers = #tpu.dot_dimension_numbers<[1], [0], [0], [1], [0, 0, 1, 1], [], []>} : vector<16x32xf32>, vector<32x32xf32>, vector<16x32xf32> -> vector<16x32xf32>
    %839 = vector.broadcast %760 : vector<1x32xf32> to vector<16x32xf32>
    %840 = arith.addf %838, %839 : vector<16x32xf32>
    %841 = arith.addf %751, %840 : vector<16x32xf32>
    %c41 = arith.constant 41 : index
    %c0_308 = arith.constant 0 : index
    %842 = vector.load %arg4[%c41, %c0_308] : memref<48x128xf32, #tpu.memory_space<vmem>>, vector<1x32xf32>
    %c42 = arith.constant 42 : index
    %c0_309 = arith.constant 0 : index
    %843 = vector.load %arg4[%c42, %c0_309] : memref<48x128xf32, #tpu.memory_space<vmem>>, vector<1x32xf32>
    %cst_310 = arith.constant dense<0.000000e+00> : vector<16xf32>
    %844 = vector.multi_reduction <add>, %841, %cst_310 [1] : vector<16x32xf32> to vector<16xf32>
    %845 = vector.shape_cast %844 : vector<16xf32> to vector<16x1xf32>
    %cst_311 = arith.constant 3.200000e+01 : f32
    %846 = vector.broadcast %cst_311 : f32 to vector<16x1xf32>
    %847 = arith.divf %845, %846 : vector<16x1xf32>
    %848 = vector.broadcast %847 : vector<16x1xf32> to vector<16x32xf32>
    %849 = arith.subf %841, %848 : vector<16x32xf32>
    %850 = arith.mulf %849, %849 : vector<16x32xf32>
    %cst_312 = arith.constant dense<0.000000e+00> : vector<16xf32>
    %851 = vector.multi_reduction <add>, %850, %cst_312 [1] : vector<16x32xf32> to vector<16xf32>
    %852 = vector.shape_cast %851 : vector<16xf32> to vector<16x1xf32>
    %cst_313 = arith.constant 3.200000e+01 : f32
    %853 = vector.broadcast %cst_313 : f32 to vector<16x1xf32>
    %854 = arith.divf %852, %853 : vector<16x1xf32>
    %855 = vector.broadcast %847 : vector<16x1xf32> to vector<16x32xf32>
    %856 = arith.subf %841, %855 : vector<16x32xf32>
    %cst_314 = arith.constant 9.99999974E-6 : f32
    %857 = vector.broadcast %cst_314 : f32 to vector<16x1xf32>
    %858 = arith.addf %854, %857 : vector<16x1xf32>
    %859 = math.rsqrt %858 : vector<16x1xf32>
    %860 = vector.broadcast %859 : vector<16x1xf32> to vector<16x32xf32>
    %861 = arith.mulf %856, %860 : vector<16x32xf32>
    %862 = vector.broadcast %842 : vector<1x32xf32> to vector<16x32xf32>
    %863 = arith.mulf %861, %862 : vector<16x32xf32>
    %864 = vector.broadcast %843 : vector<1x32xf32> to vector<16x32xf32>
    %865 = arith.addf %863, %864 : vector<16x32xf32>
    %c5_315 = arith.constant 5 : index
    %c0_316 = arith.constant 0 : index
    %c0_317 = arith.constant 0 : index
    %866 = vector.load %arg7[%c5_315, %c0_316, %c0_317] : memref<6x32x64xf32, #tpu.memory_space<vmem>>, vector<1x32x64xf32>
    %867 = vector.shape_cast %866 : vector<1x32x64xf32> to vector<32x64xf32>
    %c43 = arith.constant 43 : index
    %c0_318 = arith.constant 0 : index
    %868 = vector.load %arg4[%c43, %c0_318] : memref<48x128xf32, #tpu.memory_space<vmem>>, vector<1x64xf32>
    %c3_319 = arith.constant 3 : index
    %c0_320 = arith.constant 0 : index
    %c0_321 = arith.constant 0 : index
    %869 = vector.load %arg8[%c3_319, %c0_320, %c0_321] : memref<4x64x32xf32, #tpu.memory_space<vmem>>, vector<1x64x32xf32>
    %870 = vector.shape_cast %869 : vector<1x64x32xf32> to vector<64x32xf32>
    %c44 = arith.constant 44 : index
    %c0_322 = arith.constant 0 : index
    %871 = vector.load %arg4[%c44, %c0_322] : memref<48x128xf32, #tpu.memory_space<vmem>>, vector<1x32xf32>
    %cst_323 = arith.constant dense<0.000000e+00> : vector<16x64xf32>
    %872 = tpu.matmul %865, %867, %cst_323 {dimension_numbers = #tpu.dot_dimension_numbers<[1], [0], [0], [1], [0, 0, 1, 1], [], []>} : vector<16x32xf32>, vector<32x64xf32>, vector<16x64xf32> -> vector<16x64xf32>
    %873 = vector.broadcast %868 : vector<1x64xf32> to vector<16x64xf32>
    %874 = arith.addf %872, %873 : vector<16x64xf32>
    %875 = arith.mulf %874, %874 : vector<16x64xf32>
    %876 = arith.mulf %874, %875 : vector<16x64xf32>
    %cst_324 = arith.constant 4.471500e-02 : f32
    %877 = vector.broadcast %cst_324 : f32 to vector<16x64xf32>
    %878 = arith.mulf %877, %876 : vector<16x64xf32>
    %879 = arith.addf %874, %878 : vector<16x64xf32>
    %cst_325 = arith.constant 0.797884583 : f32
    %880 = vector.broadcast %cst_325 : f32 to vector<16x64xf32>
    %881 = arith.mulf %880, %879 : vector<16x64xf32>
    %882 = math.tanh %881 : vector<16x64xf32>
    %cst_326 = arith.constant 1.000000e+00 : f32
    %883 = vector.broadcast %cst_326 : f32 to vector<16x64xf32>
    %884 = arith.addf %883, %882 : vector<16x64xf32>
    %cst_327 = arith.constant 5.000000e-01 : f32
    %885 = vector.broadcast %cst_327 : f32 to vector<16x64xf32>
    %886 = arith.mulf %885, %884 : vector<16x64xf32>
    %887 = arith.mulf %874, %886 : vector<16x64xf32>
    %cst_328 = arith.constant dense<0.000000e+00> : vector<16x32xf32>
    %888 = tpu.matmul %887, %870, %cst_328 {dimension_numbers = #tpu.dot_dimension_numbers<[1], [0], [0], [1], [0, 0, 1, 1], [], []>} : vector<16x64xf32>, vector<64x32xf32>, vector<16x32xf32> -> vector<16x32xf32>
    %889 = vector.broadcast %871 : vector<1x32xf32> to vector<16x32xf32>
    %890 = arith.addf %888, %889 : vector<16x32xf32>
    %891 = arith.addf %865, %890 : vector<16x32xf32>
    %c45 = arith.constant 45 : index
    %c0_329 = arith.constant 0 : index
    %892 = vector.load %arg4[%c45, %c0_329] : memref<48x128xf32, #tpu.memory_space<vmem>>, vector<1x32xf32>
    %c46 = arith.constant 46 : index
    %c0_330 = arith.constant 0 : index
    %893 = vector.load %arg4[%c46, %c0_330] : memref<48x128xf32, #tpu.memory_space<vmem>>, vector<1x32xf32>
    %cst_331 = arith.constant dense<0.000000e+00> : vector<16xf32>
    %894 = vector.multi_reduction <add>, %891, %cst_331 [1] : vector<16x32xf32> to vector<16xf32>
    %895 = vector.shape_cast %894 : vector<16xf32> to vector<16x1xf32>
    %cst_332 = arith.constant 3.200000e+01 : f32
    %896 = vector.broadcast %cst_332 : f32 to vector<16x1xf32>
    %897 = arith.divf %895, %896 : vector<16x1xf32>
    %898 = vector.broadcast %897 : vector<16x1xf32> to vector<16x32xf32>
    %899 = arith.subf %891, %898 : vector<16x32xf32>
    %900 = arith.mulf %899, %899 : vector<16x32xf32>
    %cst_333 = arith.constant dense<0.000000e+00> : vector<16xf32>
    %901 = vector.multi_reduction <add>, %900, %cst_333 [1] : vector<16x32xf32> to vector<16xf32>
    %902 = vector.shape_cast %901 : vector<16xf32> to vector<16x1xf32>
    %cst_334 = arith.constant 3.200000e+01 : f32
    %903 = vector.broadcast %cst_334 : f32 to vector<16x1xf32>
    %904 = arith.divf %902, %903 : vector<16x1xf32>
    %905 = vector.broadcast %897 : vector<16x1xf32> to vector<16x32xf32>
    %906 = arith.subf %891, %905 : vector<16x32xf32>
    %cst_335 = arith.constant 9.99999974E-6 : f32
    %907 = vector.broadcast %cst_335 : f32 to vector<16x1xf32>
    %908 = arith.addf %904, %907 : vector<16x1xf32>
    %909 = math.rsqrt %908 : vector<16x1xf32>
    %910 = vector.broadcast %909 : vector<16x1xf32> to vector<16x32xf32>
    %911 = arith.mulf %906, %910 : vector<16x32xf32>
    %912 = vector.broadcast %892 : vector<1x32xf32> to vector<16x32xf32>
    %913 = arith.mulf %911, %912 : vector<16x32xf32>
    %914 = vector.broadcast %893 : vector<1x32xf32> to vector<16x32xf32>
    %915 = arith.addf %913, %914 : vector<16x32xf32>
    %c0_336 = arith.constant 0 : index
    %c0_337 = arith.constant 0 : index
    %916 = vector.load %arg9[%c0_336, %c0_337] : memref<128x32xf32, #tpu.memory_space<vmem>>, vector<128x32xf32>
    %cst_338 = arith.constant dense<0.000000e+00> : vector<16x128xf32>
    %917 = tpu.matmul %915, %916, %cst_338 {dimension_numbers = #tpu.dot_dimension_numbers<[1], [1], [0], [0], [0, 0, 1, 0], [], []>} : vector<16x32xf32>, vector<128x32xf32>, vector<16x128xf32> -> vector<16x128xf32>
    %c4_339 = arith.constant 4 : index
    %c0_340 = arith.constant 0 : index
    %918 = vector.load %arg4[%c4_339, %c0_340] : memref<48x128xf32, #tpu.memory_space<vmem>>, vector<1x128xf32>
    %919 = vector.broadcast %918 : vector<1x128xf32> to vector<16x128xf32>
    %920 = arith.addf %917, %919 : vector<16x128xf32>
    %c0_341 = arith.constant 0 : index
    %c0_342 = arith.constant 0 : index
    %921 = vector.load %arg10[%c0_341, %c0_342] : memref<16x128xf32, #tpu.memory_space<vmem>>, vector<16x128xf32>
    tpu.vector_store %arg10[%c0_341, %c0_342], %920 {strides = array<i32>} : memref<16x128xf32, #tpu.memory_space<vmem>>, vector<16x128xf32>,
    return
  }
}

</mosaic_0001>

<bundles_post_ra>
// kernel: actor_forward.1
= control target key start
LH: loop header
LB: loop body
LE: loop exit
PB: predicated region body
PF: predicated region fallthrough
CT: control target
= control target key end

     0   :  { %vm44_vm0 = vcmask 261120   ;;  %s11779_s0 = inlined_call_operand.vmem [shape: f32[16,32], index: 0, kind: input, shape index: {}]   ;;  %s11780_s1 = inlined_call_operand.vmem [shape: f32[16,32], index: 1, kind: input, shape index: {}]   ;;  %s11781_s2 = inlined_call_operand.vmem [shape: f32[16,16], index: 2, kind: input, shape index: {}]   ;;  %s11782_s3 = inlined_call_operand.vmem [shape: f32[16,16], index: 3, kind: input, shape index: {}]   ;;  %s11783_s4 = inlined_call_operand.vmem [shape: f32[48,128], index: 4, kind: input, shape index: {}]   ;;  %s11784_s5 = inlined_call_operand.vmem [shape: f32[4,32,96], index: 5, kind: input, shape index: {}]   ;;  %s11785_s6 = inlined_call_operand.vmem [shape: f32[8,32,32], index: 6, kind: input, shape index: {}]   ;;  %s11786_s7 = inlined_call_operand.vmem [shape: f32[6,32,64], index: 7, kind: input, shape index: {}]   ;;  %s11787_s8 = inlined_call_operand.vmem [shape: f32[4,64,32], index: 8, kind: input, shape index: {}]   ;;  %s11788_s9 = inlined_call_operand.vmem [shape: f32[128,32], index: 9, kind: input, shape index: {}]   ;;  %s11789_s10 = inlined_call_operand.hbm [shape: f32[16,128], index: 10, kind: output, shape index: {}]  }
   0x1   :  { %v40_v0 = vld [vmem:[%s11779_s0] sm:$0xff]  ;;  %v41_v1 = vld [vmem:[%s11779_s0 + $0x8] sm:$0xff] }
   0x2   :  { %15 = vsyncpa [#allocation3], 0  ;;  %v45_v2 = vsel %vm44_vm0, %v40_v0, 0.0  ;;  %v48_v3 = vsel %vm44_vm0, %v41_v1, 0.0  ;;  %v84_v14 = vld [vmem:[%s11784_s5] sm:$0xff]  ;;  %v85_v15 = vld [vmem:[%s11784_s5 + $0x8] sm:$0xff] }
   0x3   :  { %46 = vadd.xlane.f32.xlu0 %v45_v2  ;;  %v86_v16 = vld [vmem:[%s11784_s5 + $0x10] sm:$0xff]  ;;  %v9198_v17 = vpack.c.bf16 %v85_v15, %v84_v14  ;;  %v87_v18 = vld [vmem:[%s11784_s5 + $0x18] sm:$0xff]  ;;  %v7858_v27 = vld [vmem:[%s11783_s4] ss:$0 sm:$0xff]  ;;  %vm185_vm1 = vcmask 64512   ;;  %s10228_s30 = smov 96  }
   0x4   :  { %v9202_v19 = vpack.c.bf16 %v87_v18, %v86_v16  ;;  %v7859_v29 = vld [vmem:[%s11783_s4 + $0x1] ss:$0 sm:$0xff]  ;;  %v7860_v36 = vld [vmem:[%s11783_s4 + $0x5] ss:$0 sm:$0xff]  ;;  %s10229_s11 = smov 88   ;;  %s10230_s12 = smov 120   ;;  %vm10358_vm2 = vmpackc.low %vm185_vm1, %vm185_vm1 }
   0x5   :  { %9199 = vmatprep.subr.bf16.mxu0 %v9198_v17  ;;  %v10371_v49 = vld [vmem:[%s11781_s2] sm:$0xff]  ;;  %vm273_vm3 = vcmask 130048   ;;  %v10376_v52 = vld [vmem:[%s11781_s2 + $0x8] sm:$0xff]  ;;  %s10231_s0 = smov 64   ;;  %s10232_s17 = smov 56   ;;  %vm1023_vm4 = vcmask 195584   ;;  %vm11675_vm6 = vmpackc.low %vm44_vm0, %vm44_vm0 }
   0x6   :  { %9201 = vmatpush3.bf16.msra.mxu0 %v9198_v17  ;;  %s10233_s18 = smov 72   ;;  %s10234_s19 = smov 112   ;;  %vm1275_vm5 = vcmask 523264  }
   0x7   :  { %49 = vadd.xlane.f32.xlu0 %v48_v3  ;;  %9203 = vmatprep.subr.bf16.mxu0 %v9202_v19  ;;  %s10235_s20 = smov 104   ;;  %s10236_s21 = smov 80  }
   0x8   :  { %s10237_s22 = smov 40   ;;  %s10238_s23 = smov 48  }
   0x9   :  { %s10239_s24 = smov 8   ;;  %s10240_s16 = smov 16  }
   0xa   :  { %9205 = vmatpush3.bf16.msra.mxu0 %v9202_v19  ;;  %s11790_s25 = smov 24   ;;  %s10242_s29 = smov [#allocation2]  }
  0x90   :  { %v47_v4 = vpop.xlane.xlu0 %46 }
  0x91   :  { %v52_v5 = vmul.f32 0.03125, %v47_v4 }
  0x93   :  { %v54_v6 = vsub.f32 %v40_v0, %v52_v5 }
  0x94   :  { %v50_v7 = vpop.xlane.xlu0 %49 }
  0x95   :  { %v53_v8 = vmul.f32 0.03125, %v50_v7  ;;  %v56_v9 = vmul.f32 %v54_v6, %v54_v6 }
  0x97   :  { %v55_v10 = vsub.f32 %v41_v1, %v53_v8  ;;  %v58_v11 = vsel %vm44_vm0, %v56_v9, 0.0 }
  0x98   :  { %59 = vadd.xlane.f32.xlu1 %v58_v11 }
  0x99   :  { %v57_v12 = vmul.f32 %v55_v10, %v55_v10 }
  0x9b   :  { %v61_v13 = vsel %vm44_vm0, %v57_v12, 0.0 }
  0x9c   :  { %62 = vadd.xlane.f32.xlu1 %v61_v13 }
 0x125   :  { %v60_v20 = vpop.xlane.xlu1 %59 }
 0x126   :  { %v64_v21 = vmul.f32 0.03125, %v60_v20 }
 0x128   :  { %v66_v22 = vadd.f32 1e-05, %v64_v21 }
 0x129   :  { %v63_v23 = vpop.xlane.xlu1 %62 }
 0x12a   :  { %9940 = vrsqrt.f32 %v66_v22  ;;  %v65_v24 = vmul.f32 0.03125, %v63_v23 }
 0x12c   :  { %v67_v25 = vadd.f32 1e-05, %v65_v24 }
 0x12e   :  { %9942 = vrsqrt.f32 %v67_v25 }
 0x134   :  { %v9941_v26 = vpop.eup %9940 }
 0x135   :  { %v70_v28 = vmul.f32 %v9941_v26, %v54_v6 }
 0x137   :  { %v76_v30 = vmul.f32 %v7858_v27, %v70_v28 }
 0x138   :  { %v9943_v31 = vpop.eup %9942 }
 0x139   :  { %v71_v32 = vmul.f32 %v9943_v31, %v55_v10  ;;  %v10327_v33 = vadd.f32 %v7859_v29, %v76_v30 }
 0x13b   :  { %v77_v34 = vmul.f32 %v7858_v27, %v71_v32  ;;  %8561 = vmatprep.mubr.msk.f32.mxu0 %vm44_vm0, %v10327_v33 }
 0x13d   :  { %v10331_v35 = vadd.f32 %v7859_v29, %v77_v34 }
 0x13f   :  { %8562 = vmatmul.mubr.msk.f32.vlgmr.msra.gmra.mrb[0].mxu0 %vm44_vm0, %v10331_v35 }
 0x212   :  { %v8563_v37 = vpop.f32.mrb[0].mxu0 }
 0x213   :  { %v10338_v38 = vadd.f32 %v8563_v37, %v7860_v36  ;;  %v170_v39 = vpop.f32.mrb[1].mxu0 }
 0x214   :  { %v10340_v40 = vadd.f32 %v7860_v36, %v170_v39 }
 0x216   :  { %8568 = vmatprep.mubr.msk.f32.mxu0 %vm185_vm1, %v10340_v40  ;;  %v10346_v41 = vpack.i.bf16 %v10338_v38, %v10340_v40 }
 0x218   :  { %9711 = vrot.lane.b32.xlu0 %v10346_v41, %s10228_s30 }
 0x21c   :  { %9721 = vrot.lane.b32.xlu0 %v10346_v41, %s10229_s11 }
 0x220   :  { %383 = vrot.lane.b32.xlu0 %v10340_v40, %s10230_s12 }
 0x224   :  { %385 = vrot.lane.b32.xlu0 %v10338_v38, %s10230_s12 }
 0x28a   :  { %v9712_v42 = vpop.permute.xlu0 %9711 }
 0x28b   :  { %v9714_v43 = vunpack.i.h.bf16 %v9712_v42  ;;  %v9713_v44 = vunpack.i.l.bf16 %v9712_v42 }
 0x28d   :  { %v9206_v46 = vpack.c.bf16 %v9714_v43, %v9713_v44 }
 0x28e   :  { %v9722_v5 = vpop.permute.xlu0 %9721 }
 0x28f   :  { %9208 = vmatprep.subr.msk.bf16.mxu0 %vm10358_vm2, %v9206_v46  ;;  %v9724_v7 = vunpack.i.h.bf16 %v9722_v5  ;;  %v9723_v8 = vunpack.i.l.bf16 %v9722_v5 }
 0x290   :  { %9211 = vmatpush3.bf16.xpose.msk.msra.mxu0 %vm10358_vm2, %v9206_v46 }
 0x291   :  { %v9216_v12 = vpack.c.bf16 %v9724_v7, %v9723_v8 }
 0x292   :  { %v384_v17 = vpop.permute.xlu0 %383 }
 0x296   :  { %v386_v18 = vpop.permute.xlu0 %385 }
 0x297   :  { %8569 = vmatmul.mubr.msk.f32.vlgmr.msra.gmra.mrb[2].mxu0 %vm185_vm1, %v10338_v38 }
 0x36a   :  { %v8570_v47 = vpop.f32.mrb[2].mxu0 }
 0x36b   :  { %v260_v48 = vpop.f32.mrb[3].mxu0  ;;  %v270_v50 = vmul.f32 0.35355338, %v8570_v47 }
 0x36c   :  { %v269_v51 = vmul.f32 0.35355338, %v260_v48 }
 0x36d   :  { %v272_v55 = vadd.f32 %v270_v50, %v10376_v52 }
 0x36e   :  { %v271_v53 = vadd.f32 %v269_v51, %v10371_v49 }
 0x36f   :  { %v277_v56 = vsel %vm273_vm3, %v272_v55, -inf }
 0x370   :  { %v274_v54 = vsel %vm273_vm3, %v271_v53, -inf }
 0x371   :  { %275 = vmax.xlane.f32.xlu1 %v274_v54 }
 0x375   :  { %278 = vmax.xlane.f32.xlu1 %v277_v56 }
 0x3fe   :  { %v276_v57 = vpop.xlane.xlu1 %275 }
 0x3ff   :  { %v280_v58 = vsub.f32 %v271_v53, %v276_v57 }
 0x401   :  { %v282_v61 = vmul.f32 1.442695, %v280_v58 }
 0x402   :  { %v279_v59 = vpop.xlane.xlu1 %278 }
 0x403   :  { %v281_v60 = vsub.f32 %v272_v55, %v279_v59 }
 0x405   :  { %v284_v62 = vmul.f32 1.442695, %v281_v60 }
 0x407   :  { %9944 = vpow2.f32 %v284_v62 }
 0x408   :  { %9946 = vpow2.f32 %v282_v61 }
 0x411   :  { %v9945_v63 = vpop.eup %9944 }
 0x412   :  { %v289_v0 = vsel %vm273_vm3, %v9945_v63, 0.0  ;;  %v9947_v1 = vpop.eup %9946 }
 0x413   :  { %290 = vadd.xlane.f32.xlu1 %v289_v0  ;;  %v286_v2 = vsel %vm273_vm3, %v9947_v1, 0.0 }
 0x417   :  { %287 = vadd.xlane.f32.xlu1 %v286_v2 }
 0x428   :  { %9716 = vrot.lane.b32.xlu1 %v10346_v41, %s10231_s0 }
 0x4a0   :  { %v291_v3 = vpop.xlane.xlu1 %290 }
 0x4a1   :  { %9948 = vrcp.f32 %v291_v3 }
 0x4a4   :  { %v288_v4 = vpop.xlane.xlu1 %287 }
 0x4a5   :  { %9950 = vrcp.f32 %v288_v4 }
 0x4a8   :  { %v9717_v6 = vpop.permute.xlu1 %9716 }
 0x4a9   :  { %v9719_v9 = vunpack.i.h.bf16 %v9717_v6  ;;  %v9718_v10 = vunpack.i.l.bf16 %v9717_v6 }
 0x4ab   :  { %v9212_v11 = vpack.c.bf16 %v9719_v9, %v9718_v10  ;;  %v9949_v13 = vpop.eup %9948 }
 0x4ac   :  { %v295_v16 = vmul.f32 %v9949_v13, %v9945_v63 }
 0x4ad   :  { %9213 = vmatprep.subr.bf16.mxu0 %v9212_v11 }
 0x4ae   :  { %9215 = vmatpush3.bf16.msra.mxu0 %v9212_v11 }
 0x4af   :  { %v9951_v14 = vpop.eup %9950  ;;  %9218 = vmatprep.subr.msk.bf16.mxu0 %vm10358_vm2, %v9216_v12 }
 0x4b0   :  { %v293_v15 = vmul.f32 %v9951_v14, %v9947_v1 }
 0x4b2   :  { %8575 = vmatprep.mubr.msk.f32.mxu0 %vm273_vm3, %v293_v15 }
 0x4b3   :  { %8576 = vmatmul.mubr.msk.f32.vlgmr.msra.gmra.mrb[4].mxu0 %vm273_vm3, %v295_v16 }
 0x4b4   :  { %8582 = vmatprep.mubr.msk.f32.mxu0 %vm185_vm1, %v384_v17 }
 0x4b7   :  { %9221 = vmatpush3.bf16.xpose.msk.msra.mxu0 %vm10358_vm2, %v9216_v12 }
 0x4be   :  { %8583 = vmatmul.mubr.msk.f32.vlgmr.msra.gmra.mrb[6].mxu0 %vm185_vm1, %v386_v18 }
 0x586   :  { %v10394_v19 = vpop.f32.mrb[4].mxu0 }
 0x587   :  { %v10396_v20 = vpop.f32.mrb[5].mxu0 }
 0x591   :  { %v8584_v21 = vpop.f32.mrb[6].mxu0 }
 0x592   :  { %v475_v22 = vmul.f32 0.35355338, %v8584_v21  ;;  %v465_v23 = vpop.f32.mrb[7].mxu0 }
 0x593   :  { %v474_v24 = vmul.f32 0.35355338, %v465_v23 }
 0x594   :  { %v477_v25 = vadd.f32 %v475_v22, %v10376_v52 }
 0x595   :  { %v476_v26 = vadd.f32 %v474_v24, %v10371_v49 }
 0x596   :  { %v481_v27 = vsel %vm273_vm3, %v477_v25, -inf }
 0x597   :  { %482 = vmax.xlane.f32.xlu0 %v481_v27  ;;  %v478_v28 = vsel %vm273_vm3, %v476_v26, -inf }
 0x598   :  { %479 = vmax.xlane.f32.xlu1 %v478_v28 }
 0x5a9   :  { %9726 = vrot.lane.b32.xlu1 %v10346_v41, %s10232_s17 }
 0x5ad   :  { %9736 = vrot.lane.b32.xlu1 %v10346_v41, %s10233_s18 }
 0x5b1   :  { %587 = vrot.lane.b32.xlu1 %v10340_v40, %s10234_s19 }
 0x5b5   :  { %589 = vrot.lane.b32.xlu1 %v10338_v38, %s10234_s19 }
 0x5b9   :  { %793 = vrot.lane.b32.xlu1 %v10338_v38, %s10235_s20 }
 0x624   :  { %v483_v29 = vpop.xlane.xlu0 %482 }
 0x625   :  { %v485_v30 = vsub.f32 %v477_v25, %v483_v29  ;;  %v480_v31 = vpop.xlane.xlu1 %479 }
 0x626   :  { %v484_v32 = vsub.f32 %v476_v26, %v480_v31 }
 0x627   :  { %v488_v34 = vmul.f32 1.442695, %v485_v30 }
 0x628   :  { %v486_v36 = vmul.f32 1.442695, %v484_v32 }
 0x629   :  { %9952 = vpow2.f32 %v488_v34  ;;  %v9727_v37 = vpop.permute.xlu1 %9726 }
 0x62a   :  { %v9729_v39 = vunpack.i.h.bf16 %v9727_v37  ;;  %v9728_v42 = vunpack.i.l.bf16 %v9727_v37  ;;  %9954 = vpow2.f32 %v486_v36 }
 0x62c   :  { %v9222_v43 = vpack.c.bf16 %v9729_v39, %v9728_v42 }
 0x62d   :  { %v9737_v56 = vpop.permute.xlu1 %9736 }
 0x62e   :  { %9223 = vmatprep.subr.bf16.mxu0 %v9222_v43  ;;  %v9739_v59 = vunpack.i.h.bf16 %v9737_v56  ;;  %v9738_v60 = vunpack.i.l.bf16 %v9737_v56 }
 0x62f   :  { %9225 = vmatpush3.bf16.msra.mxu0 %v9222_v43 }
 0x631   :  { %v588_v63 = vpop.permute.xlu1 %587 }
 0x633   :  { %v9953_v44 = vpop.eup %9952 }
 0x634   :  { %v493_v46 = vsel %vm273_vm3, %v9953_v44, 0.0  ;;  %v9955_v47 = vpop.eup %9954 }
 0x635   :  { %494 = vadd.xlane.f32.xlu0 %v493_v46  ;;  %v490_v38 = vsel %vm273_vm3, %v9955_v47, 0.0  ;;  %v590_v0 = vpop.permute.xlu1 %589 }
 0x639   :  { %491 = vadd.xlane.f32.xlu0 %v490_v38  ;;  %v794_v2 = vpop.permute.xlu1 %793 }
 0x64f   :  { %9731 = vrot.lane.b32.xlu0 %v10346_v41, %s10236_s21 }
 0x653   :  { %791 = vrot.lane.b32.xlu0 %v10340_v40, %s10235_s20  ;;  %v9236_v40 = vpack.c.bf16 %v9739_v59, %v9738_v60 }
 0x6c2   :  { %v495_v48 = vpop.xlane.xlu0 %494 }
 0x6c3   :  { %9956 = vrcp.f32 %v495_v48 }
 0x6c6   :  { %v492_v50 = vpop.xlane.xlu0 %491 }
 0x6c7   :  { %9958 = vrcp.f32 %v492_v50 }
 0x6ca   :  { %v9732_v51 = vpop.permute.xlu0 %9731 }
 0x6cb   :  { %v9734_v53 = vunpack.i.h.bf16 %v9732_v51  ;;  %v9733_v54 = vunpack.i.l.bf16 %v9732_v51 }
 0x6cd   :  { %v9226_v55 = vpack.c.bf16 %v9734_v53, %v9733_v54  ;;  %v9957_v57 = vpop.eup %9956 }
 0x6ce   :  { %v499_v62 = vmul.f32 %v9957_v57, %v9953_v44  ;;  %v792_v1 = vpop.permute.xlu0 %791 }
 0x6cf   :  { %9228 = vmatprep.subr.msk.bf16.mxu0 %vm10358_vm2, %v9226_v55 }
 0x6d1   :  { %v9959_v58 = vpop.eup %9958 }
 0x6d2   :  { %v497_v61 = vmul.f32 %v9959_v58, %v9955_v47 }
 0x6d4   :  { %8589 = vmatprep.mubr.msk.f32.mxu0 %vm273_vm3, %v497_v61 }
 0x6d5   :  { %8590 = vmatmul.mubr.msk.f32.vlgmr.msra.gmra.mrb[8].mxu0 %vm273_vm3, %v499_v62 }
 0x6d6   :  { %9231 = vmatpush3.bf16.xpose.msk.msra.mxu0 %vm10358_vm2, %v9226_v55  ;;  %8596 = vmatprep.mubr.msk.f32.mxu0 %vm185_vm1, %v588_v63 }
 0x6d7   :  { %9238 = vmatprep.subr.msk.bf16.mxu0 %vm10358_vm2, %v9236_v40 }
 0x6dd   :  { %8597 = vmatmul.mubr.msk.f32.vlgmr.msra.gmra.mrb[10].mxu0 %vm185_vm1, %v590_v0 }
 0x6de   :  { %9241 = vmatpush3.bf16.xpose.msk.msra.mxu0 %vm10358_vm2, %v9236_v40  ;;  %8610 = vmatprep.mubr.msk.f32.mxu0 %vm185_vm1, %v792_v1 }
 0x6e5   :  { %8611 = vmatmul.mubr.msk.f32.vlgmr.msra.gmra.mrb[12].mxu0 %vm185_vm1, %v794_v2 }
 0x7a8   :  { %v8591_v3 = vpop.f32.mrb[8].mxu0 }
 0x7a9   :  { %v578_v4 = vpop.f32.mrb[9].mxu0 }
 0x7b0   :  { %v8598_v5 = vpop.f32.mrb[10].mxu0 }
 0x7b1   :  { %v679_v6 = vmul.f32 0.35355338, %v8598_v5  ;;  %v669_v7 = vpop.f32.mrb[11].mxu0  ;;  %v90_v5 = vld [vmem:[%s11785_s6 + $0x8] sm:$0xff] }
 0x7b2   :  { %v678_v8 = vmul.f32 0.35355338, %v669_v7  ;;  %v91_v7 = vld [vmem:[%s11785_s6 + $0x10] sm:$0xff] }
 0x7b3   :  { %v681_v9 = vadd.f32 %v679_v6, %v10376_v52 }
 0x7b4   :  { %v680_v10 = vadd.f32 %v678_v8, %v10371_v49  ;;  %v92_v8 = vld [vmem:[%s11785_s6 + $0x18] sm:$0xff] }
 0x7b5   :  { %v685_v11 = vsel %vm273_vm3, %v681_v9, -inf }
 0x7b6   :  { %686 = vmax.xlane.f32.xlu1 %v685_v11  ;;  %v682_v12 = vsel %vm273_vm3, %v680_v10, -inf }
 0x7b7   :  { %683 = vmax.xlane.f32.xlu0 %v682_v12 }
 0x7b8   :  { %v8612_v13 = vpop.f32.mrb[12].mxu0 }
 0x7b9   :  { %v873_v14 = vpop.f32.mrb[13].mxu0  ;;  %v883_v15 = vmul.f32 0.35355338, %v8612_v13 }
 0x7ba   :  { %v882_v16 = vmul.f32 0.35355338, %v873_v14 }
 0x7bb   :  { %v885_v21 = vadd.f32 %v883_v15, %v10376_v52 }
 0x7bc   :  { %v884_v17 = vadd.f32 %v882_v16, %v10371_v49 }
 0x7bd   :  { %v889_v22 = vsel %vm273_vm3, %v885_v21, -inf }
 0x7be   :  { %v886_v18 = vsel %vm273_vm3, %v884_v17, -inf }
 0x7bf   :  { %887 = vmax.xlane.f32.xlu0 %v886_v18 }
 0x7c3   :  { %890 = vmax.xlane.f32.xlu0 %v889_v22 }
 0x843   :  { %v687_v23 = vpop.xlane.xlu1 %686 }
 0x844   :  { %v689_v24 = vsub.f32 %v681_v9, %v687_v23  ;;  %v684_v25 = vpop.xlane.xlu0 %683  ;;  %v9250_v9 = vpack.c.bf16 %v92_v8, %v91_v7  ;;  %v1160_v7 = vld [vmem:[%s11787_s8 + $0x8] sm:$0xff] }
 0x845   :  { %v688_v26 = vsub.f32 %v680_v10, %v684_v25 }
 0x846   :  { %v692_v27 = vmul.f32 1.442695, %v689_v24 }
 0x847   :  { %v690_v28 = vmul.f32 1.442695, %v688_v26 }
 0x848   :  { %9960 = vpow2.f32 %v692_v27 }
 0x849   :  { %9962 = vpow2.f32 %v690_v28 }
 0x84c   :  { %v888_v29 = vpop.xlane.xlu0 %887 }
 0x84d   :  { %v892_v30 = vsub.f32 %v884_v17, %v888_v29 }
 0x84f   :  { %v894_v31 = vmul.f32 1.442695, %v892_v30 }
 0x850   :  { %v891_v32 = vpop.xlane.xlu0 %890 }
 0x851   :  { %9964 = vpow2.f32 %v894_v31  ;;  %v893_v34 = vsub.f32 %v885_v21, %v891_v32 }
 0x852   :  { %v9961_v36 = vpop.eup %9960 }
 0x853   :  { %v9963_v37 = vpop.eup %9962  ;;  %v896_v39 = vmul.f32 1.442695, %v893_v34  ;;  %v697_v42 = vsel %vm273_vm3, %v9961_v36, 0.0 }
 0x854   :  { %698 = vadd.xlane.f32.xlu1 %v697_v42  ;;  %v694_v43 = vsel %vm273_vm3, %v9963_v37, 0.0 }
 0x855   :  { %9966 = vpow2.f32 %v896_v39  ;;  %695 = vadd.xlane.f32.xlu0 %v694_v43 }
 0x85b   :  { %v9965_v44 = vpop.eup %9964 }
 0x85c   :  { %v898_v46 = vsel %vm273_vm3, %v9965_v44, 0.0 }
 0x85d   :  { %899 = vadd.xlane.f32.xlu0 %v898_v46 }
 0x85f   :  { %v9967_v47 = vpop.eup %9966 }
 0x860   :  { %v901_v38 = vsel %vm273_vm3, %v9967_v47, 0.0 }
 0x861   :  { %902 = vadd.xlane.f32.xlu1 %v901_v38 }
 0x872   :  { %9746 = vrot.lane.b32.xlu1 %v10346_v41, %s10237_s22 }
 0x873   :  { %9741 = vrot.lane.b32.xlu0 %v10346_v41, %s10238_s23 }
 0x876   :  { %997 = vrot.lane.b32.xlu1 %v578_v4, %s10239_s24  ;;  %v89_v4 = vld [vmem:[%s11785_s6] sm:$0xff] }
 0x877   :  { %v9246_v6 = vpack.c.bf16 %v90_v5, %v89_v4 }
 0x87a   :  { %999 = vrot.lane.b32.xlu1 %v8591_v3, %s10239_s24 }
 0x8e1   :  { %v699_v50 = vpop.xlane.xlu1 %698 }
 0x8e2   :  { %v696_v48 = vpop.xlane.xlu0 %695 }
 0x8e3   :  { %9968 = vrcp.f32 %v696_v48 }
 0x8e4   :  { %9970 = vrcp.f32 %v699_v50  ;;  %v7893_v50 = vld [vmem:[%s11786_s7 + $0x48] sm:$0xff] }
 0x8ea   :  { %v900_v51 = vpop.xlane.xlu0 %899 }
 0x8eb   :  { %9972 = vrcp.f32 %v900_v51  ;;  %v7894_v51 = vld [vmem:[%s11786_s7 + $0x50] sm:$0xff] }
 0x8ed   :  { %v9969_v53 = vpop.eup %9968 }
 0x8ee   :  { %v903_v54 = vpop.xlane.xlu1 %902  ;;  %v9742_v55 = vpop.permute.xlu0 %9741  ;;  %v701_v56 = vmul.f32 %v9969_v53, %v9963_v37 }
 0x8ef   :  { %9974 = vrcp.f32 %v903_v54  ;;  %v9744_v57 = vunpack.i.h.bf16 %v9742_v55  ;;  %v9743_v58 = vunpack.i.l.bf16 %v9742_v55  ;;  %v9971_v59 = vpop.eup %9970  ;;  %v7895_v54 = vld [vmem:[%s11786_s7 + $0x58] sm:$0xff] }
 0x8f0   :  { %8603 = vmatprep.mubr.msk.f32.mxu1 %vm273_vm3, %v701_v56  ;;  %v703_v63 = vmul.f32 %v9971_v59, %v9961_v36  ;;  %v9258_v55 = vpack.c.bf16 %v7895_v54, %v7894_v51 }
 0x8f1   :  { %v9232_v41 = vpack.c.bf16 %v9744_v57, %v9743_v58 }
 0x8f2   :  { %v9747_v60 = vpop.permute.xlu1 %9746 }
 0x8f3   :  { %v9749_v61 = vunpack.i.h.bf16 %v9747_v60  ;;  %v9748_v62 = vunpack.i.l.bf16 %v9747_v60  ;;  %9233 = vmatprep.subr.bf16.mxu1 %v9232_v41 }
 0x8f4   :  { %9235 = vmatpush3.bf16.msra.mxu1 %v9232_v41 }
 0x8f5   :  { %v9973_v40 = vpop.eup %9972  ;;  %v9242_v0 = vpack.c.bf16 %v9749_v61, %v9748_v62  ;;  %v7890_v62 = vld [vmem:[%s11783_s4 + $0x7] ss:$0 sm:$0xff] }
 0x8f6   :  { %v905_v1 = vmul.f32 %v9973_v40, %v9965_v44  ;;  %v998_v14 = vpop.permute.xlu1 %997 }
 0x8f7   :  { %8604 = vmatmul.mubr.msk.f32.vlgmr.msra.gmra.mrb[0].mxu1 %vm273_vm3, %v703_v63  ;;  %9243 = vmatprep.subr.bf16.mxu0 %v9242_v0  ;;  %v1019_v18 = vsel %vm185_vm1, %v10396_v20, %v998_v14  ;;  %v7887_v20 = vld [vmem:[%s11783_s4 + $0x6] ss:$0 sm:$0xff]  ;;  %v7891_v63 = vld [vmem:[%s11783_s4 + $0x8] ss:$0 sm:$0xff] }
 0x8f8   :  { %9245 = vmatpush3.bf16.msra.mxu0 %v9242_v0  ;;  %8617 = vmatprep.mubr.msk.f32.mxu0 %vm273_vm3, %v905_v1 }
 0x8f9   :  { %v9975_v2 = vpop.eup %9974  ;;  %9247 = vmatprep.subr.bf16.mxu0 %v9246_v6 }
 0x8fa   :  { %v907_v3 = vmul.f32 %v9975_v2, %v9967_v47  ;;  %v1000_v15 = vpop.permute.xlu1 %999 }
 0x8fb   :  { %v1020_v22 = vsel %vm185_vm1, %v10394_v19, %v1000_v15  ;;  %v1165_v15 = vld [vmem:[%s11787_s8 + $0x30] sm:$0xff] }
 0x8fc   :  { %8618 = vmatmul.mubr.msk.f32.vlgmr.msra.gmra.mrb[14].mxu0 %vm273_vm3, %v907_v3 }
 0x8fd   :  { %9249 = vmatpush3.bf16.msra.mxu0 %v9246_v6  ;;  %v1159_v6 = vld [vmem:[%s11787_s8] sm:$0xff] }
 0x8fe   :  { %9251 = vmatprep.subr.bf16.mxu0 %v9250_v9  ;;  %v9262_v8 = vpack.c.bf16 %v1160_v7, %v1159_v6 }
 0x901   :  { %9253 = vmatpush3.bf16.msra.mxu0 %v9250_v9  ;;  %v1161_v9 = vld [vmem:[%s11787_s8 + $0x10] sm:$0xff] }
 0x902   :  { %9263 = vmatprep.subr.bf16.mxu0 %v9262_v8 }
 0x9ca   :  { %v8605_v10 = vpop.f32.mrb[0].mxu1 }
 0x9cb   :  { %1007 = vrot.lane.b32.xlu1 %v8605_v10, %s10240_s16  ;;  %v782_v11 = vpop.f32.mrb[1].mxu1  ;;  %v1162_v10 = vld [vmem:[%s11787_s8 + $0x18] sm:$0xff] }
 0x9cc   :  { %1005 = vrot.lane.b32.xlu0 %v782_v11, %s10240_s16  ;;  %v9266_v11 = vpack.c.bf16 %v1162_v10, %v1161_v9 }
 0x9cf   :  { %v8619_v12 = vpop.f32.mrb[14].mxu0 }
 0x9d0   :  { %v986_v13 = vpop.f32.mrb[15].mxu0  ;;  %1015 = vrot.lane.b32.xlu1 %v8619_v12, %s11790_s25  ;;  %v1163_v12 = vld [vmem:[%s11787_s8 + $0x20] sm:$0xff] }
 0x9d1   :  { %1013 = vrot.lane.b32.xlu0 %v986_v13, %s11790_s25  ;;  %v1164_v13 = vld [vmem:[%s11787_s8 + $0x28] sm:$0xff]  ;;  %s11794_s25 = smov 24  }
 0x9d2   :  { %v9270_v14 = vpack.c.bf16 %v1164_v13, %v1163_v12  ;;  %v7902_v12 = vld [vmem:[%s11783_s4 + $0xb] ss:$0 sm:$0xff] }
 0xa3d   :  { %v1008_v16 = vpop.permute.xlu1 %1007 }
 0xa3e   :  { %v1006_v17 = vpop.permute.xlu0 %1005  ;;  %v1022_v25 = vsel %vm273_vm3, %v1020_v22, %v1008_v16  ;;  %v1166_v16 = vld [vmem:[%s11787_s8 + $0x38] sm:$0xff] }
 0xa3f   :  { %v1021_v23 = vsel %vm273_vm3, %v1019_v18, %v1006_v17  ;;  %v9274_v17 = vpack.c.bf16 %v1166_v16, %v1165_v15  ;;  %v7896_v18 = vld [vmem:[%s11783_s4 + $0x9] ss:$0 sm:$0xff]  ;;  %v7903_v16 = vld [vmem:[%s11783_s4 + $0xc] ss:$0 sm:$0xff] }
 0xa42   :  { %v1016_v21 = vpop.permute.xlu1 %1015 }
 0xa43   :  { %v1014_v24 = vpop.permute.xlu0 %1013  ;;  %v1025_v27 = vsel %vm1023_vm4, %v1022_v25, %v1016_v21 }
 0xa44   :  { %v1024_v26 = vsel %vm1023_vm4, %v1021_v23, %v1014_v24 }
 0xa45   :  { %8628 = vmatprep.mubr.msk.f32.mxu0 %vm44_vm0, %v1024_v26 }
 0xa46   :  { %8629 = vmatmul.mubr.msk.f32.vlgmr.msra.gmra.mrb[16].mxu0 %vm44_vm0, %v1025_v27 }
 0xa47   :  { %9265 = vmatpush3.bf16.msra.mxu0 %v9262_v8 }
 0xa48   :  { %9267 = vmatprep.subr.bf16.mxu0 %v9266_v11 }
 0xa4b   :  { %9269 = vmatpush3.bf16.msra.mxu0 %v9266_v11 }
 0xa4c   :  { %9271 = vmatprep.subr.bf16.mxu0 %v9270_v14 }
 0xa4f   :  { %9273 = vmatpush3.bf16.msra.mxu0 %v9270_v14 }
 0xa50   :  { %9275 = vmatprep.subr.bf16.mxu0 %v9274_v17 }
 0xa53   :  { %9277 = vmatpush3.bf16.msra.mxu0 %v9274_v17 }
 0xb19   :  { %v8630_v28 = vpop.f32.mrb[16].mxu0 }
 0xb1a   :  { %v1108_v29 = vadd.f32 %v8630_v28, %v7887_v20  ;;  %v1102_v19 = vpop.f32.mrb[17].mxu0 }
 0xb1b   :  { %v1103_v30 = vadd.f32 %v7887_v20, %v1102_v19 }
 0xb1c   :  { %v1112_v31 = vadd.f32 %v1108_v29, %v10331_v35 }
 0xb1d   :  { %v1111_v32 = vadd.f32 %v1103_v30, %v10327_v33  ;;  %v7892_v33 = vld [vmem:[%s11786_s7 + $0x40] sm:$0xff] }
 0xb1e   :  { %v1118_v34 = vsel %vm44_vm0, %v1112_v31, 0.0  ;;  %v9254_v53 = vpack.c.bf16 %v7893_v50, %v7892_v33 }
 0xb1f   :  { %1119 = vadd.xlane.f32.xlu1 %v1118_v34  ;;  %v1115_v36 = vsel %vm44_vm0, %v1111_v32, 0.0 }
 0xb20   :  { %1116 = vadd.xlane.f32.xlu0 %v1115_v36  ;;  %9255 = vmatprep.subr.bf16.mxu1 %v9254_v53 }
 0xb21   :  { %9257 = vmatpush3.bf16.msra.mxu1 %v9254_v53 }
 0xb22   :  { %9259 = vmatprep.subr.bf16.mxu1 %v9258_v55 }
 0xb25   :  { %9261 = vmatpush3.bf16.msra.mxu1 %v9258_v55 }
 0xbac   :  { %v1120_v37 = vpop.xlane.xlu1 %1119 }
 0xbad   :  { %v1122_v39 = vmul.f32 0.03125, %v1120_v37  ;;  %v1117_v42 = vpop.xlane.xlu0 %1116 }
 0xbae   :  { %v1121_v43 = vmul.f32 0.03125, %v1117_v42 }
 0xbaf   :  { %v1124_v44 = vsub.f32 %v1112_v31, %v1122_v39 }
 0xbb0   :  { %v1123_v46 = vsub.f32 %v1111_v32, %v1121_v43 }
 0xbb1   :  { %v1126_v48 = vmul.f32 %v1124_v44, %v1124_v44 }
 0xbb2   :  { %v1125_v47 = vmul.f32 %v1123_v46, %v1123_v46 }
 0xbb3   :  { %v1130_v35 = vsel %vm44_vm0, %v1126_v48, 0.0 }
 0xbb4   :  { %v1127_v38 = vsel %vm44_vm0, %v1125_v47, 0.0  ;;  %v7899_v47 = vld [vmem:[%s11783_s4 + $0xa] ss:$0 sm:$0xff] }
 0xbb5   :  { %1128 = vadd.xlane.f32.xlu0 %v1127_v38 }
 0xbb9   :  { %1131 = vadd.xlane.f32.xlu0 %v1130_v35 }
 0xc42   :  { %v1129_v56 = vpop.xlane.xlu0 %1128 }
 0xc43   :  { %v1133_v57 = vmul.f32 0.03125, %v1129_v56 }
 0xc45   :  { %v1135_v58 = vadd.f32 1e-05, %v1133_v57 }
 0xc46   :  { %v1132_v41 = vpop.xlane.xlu0 %1131 }
 0xc47   :  { %9976 = vrsqrt.f32 %v1135_v58  ;;  %v1134_v59 = vmul.f32 0.03125, %v1132_v41 }
 0xc49   :  { %v1136_v60 = vadd.f32 1e-05, %v1134_v59 }
 0xc4b   :  { %9978 = vrsqrt.f32 %v1136_v60 }
 0xc51   :  { %v9977_v61 = vpop.eup %9976 }
 0xc52   :  { %v1139_v40 = vmul.f32 %v9977_v61, %v1123_v46 }
 0xc54   :  { %v1145_v0 = vmul.f32 %v7890_v62, %v1139_v40 }
 0xc55   :  { %v9979_v1 = vpop.eup %9978 }
 0xc56   :  { %v1140_v2 = vmul.f32 %v9979_v1, %v1124_v44  ;;  %v1151_v3 = vadd.f32 %v7891_v63, %v1145_v0  ;;  %v7905_v0 = vld [vmem:[%s11784_s5 + $0x28] sm:$0xff]  ;;  %v7906_v1 = vld [vmem:[%s11784_s5 + $0x30] sm:$0xff] }
 0xc58   :  { %v1146_v4 = vmul.f32 %v7890_v62, %v1140_v2  ;;  %8639 = vmatprep.mubr.msk.f32.mxu1 %vm44_vm0, %v1151_v3 }
 0xc5a   :  { %v1152_v5 = vadd.f32 %v7891_v63, %v1146_v4  ;;  %v7904_v63 = vld [vmem:[%s11784_s5 + $0x20] sm:$0xff] }
 0xc5b   :  { %v9278_v2 = vpack.c.bf16 %v7905_v0, %v7904_v63 }
 0xc5c   :  { %8640 = vmatmul.mubr.msk.f32.vlgmr.msra.gmra.mrb[2].mxu1 %vm44_vm0, %v1152_v5 }
 0xc5d   :  { %9279 = vmatprep.subr.bf16.mxu1 %v9278_v2 }
 0xc5e   :  { %9281 = vmatpush3.bf16.msra.mxu1 %v9278_v2 }
 0xd2f   :  { %v8641_v21 = vpop.f32.mrb[2].mxu1 }
 0xd30   :  { %v1250_v22 = vadd.f32 %v8641_v21, %v7896_v18  ;;  %v1244_v23 = vpop.f32.mrb[3].mxu1 }
 0xd31   :  { %v1245_v24 = vadd.f32 %v7896_v18, %v1244_v23  ;;  %v7912_v23 = vld [vmem:[%s11783_s4 + $0xd] ss:$0 sm:$0xff] }
 0xd32   :  { %v1254_v25 = vmul.f32 %v1250_v22, %v1250_v22 }
 0xd33   :  { %v1253_v26 = vmul.f32 %v1245_v24, %v1245_v24 }
 0xd34   :  { %v1256_v27 = vmul.f32 %v1254_v25, %v1250_v22 }
 0xd35   :  { %v1255_v20 = vmul.f32 %v1253_v26, %v1245_v24 }
 0xd36   :  { %v1258_v28 = vmul.f32 0.044715, %v1256_v27 }
 0xd37   :  { %v1257_v29 = vmul.f32 0.044715, %v1255_v20 }
 0xd38   :  { %v1260_v19 = vadd.f32 %v1258_v28, %v1250_v22 }
 0xd39   :  { %v1259_v30 = vadd.f32 %v1257_v29, %v1245_v24 }
 0xd3a   :  { %v1262_v31 = vmul.f32 0.7978846, %v1260_v19 }
 0xd3b   :  { %v1261_v32 = vmul.f32 0.7978846, %v1259_v30 }
 0xd3c   :  { %9980 = vtanh.f32 %v1262_v31 }
 0xd3d   :  { %9982 = vtanh.f32 %v1261_v32 }
 0xd46   :  { %v9981_v34 = vpop.eup %9980 }
 0xd47   :  { %v9983_v36 = vpop.eup %9982  ;;  %v1266_v37 = vadd.f32 1.0, %v9981_v34 }
 0xd48   :  { %v1265_v39 = vadd.f32 1.0, %v9983_v36 }
 0xd49   :  { %v1268_v42 = vmul.f32 0.5, %v1266_v37 }
 0xd4a   :  { %v1267_v43 = vmul.f32 0.5, %v1265_v39 }
 0xd4b   :  { %v1270_v46 = vmul.f32 %v1268_v42, %v1250_v22 }
 0xd4c   :  { %v1269_v44 = vmul.f32 %v1267_v43, %v1245_v24 }
 0xd4e   :  { %8658 = vmatprep.mubr.msk.f32.mxu0 %vm1275_vm5, %v1269_v44 }
 0xd4f   :  { %8659 = vmatmul.mubr.msk.f32.vlgmr.msra.gmra.mrb[18].mxu0 %vm1275_vm5, %v1270_v46 }
 0xe22   :  { %v8660_v38 = vpop.f32.mrb[18].mxu0 }
 0xe23   :  { %v1354_v48 = vadd.f32 %v8660_v38, %v7899_v47  ;;  %v1348_v35 = vpop.f32.mrb[19].mxu0 }
 0xe24   :  { %v1349_v33 = vadd.f32 %v7899_v47, %v1348_v35 }
 0xe25   :  { %v1358_v50 = vadd.f32 %v1354_v48, %v1152_v5 }
 0xe26   :  { %v1357_v51 = vadd.f32 %v1349_v33, %v1151_v3  ;;  %v7907_v3 = vld [vmem:[%s11784_s5 + $0x38] sm:$0xff] }
 0xe27   :  { %v1364_v53 = vsel %vm44_vm0, %v1358_v50, 0.0  ;;  %v9282_v4 = vpack.c.bf16 %v7907_v3, %v7906_v1 }
 0xe28   :  { %1365 = vadd.xlane.f32.xlu1 %v1364_v53  ;;  %v1361_v54 = vsel %vm44_vm0, %v1357_v51, 0.0 }
 0xe29   :  { %1362 = vadd.xlane.f32.xlu0 %v1361_v54  ;;  %9283 = vmatprep.subr.bf16.mxu1 %v9282_v4 }
 0xe2a   :  { %9285 = vmatpush3.bf16.msra.mxu1 %v9282_v4 }
 0xeb5   :  { %v1366_v55 = vpop.xlane.xlu1 %1365 }
 0xeb6   :  { %v1368_v56 = vmul.f32 0.03125, %v1366_v55  ;;  %v1363_v57 = vpop.xlane.xlu0 %1362 }
 0xeb7   :  { %v1367_v58 = vmul.f32 0.03125, %v1363_v57 }
 0xeb8   :  { %v1370_v41 = vsub.f32 %v1358_v50, %v1368_v56 }
 0xeb9   :  { %v1369_v59 = vsub.f32 %v1357_v51, %v1367_v58 }
 0xeba   :  { %v1372_v60 = vmul.f32 %v1370_v41, %v1370_v41 }
 0xebb   :  { %v1371_v61 = vmul.f32 %v1369_v59, %v1369_v59 }
 0xebc   :  { %v1376_v62 = vsel %vm44_vm0, %v1372_v60, 0.0 }
 0xebd   :  { %1377 = vadd.xlane.f32.xlu1 %v1376_v62  ;;  %v1373_v40 = vsel %vm44_vm0, %v1371_v61, 0.0 }
 0xebe   :  { %1374 = vadd.xlane.f32.xlu0 %v1373_v40 }
 0xf4a   :  { %v1378_v5 = vpop.xlane.xlu1 %1377 }
 0xf4b   :  { %v1380_v6 = vmul.f32 0.03125, %v1378_v5  ;;  %v1375_v7 = vpop.xlane.xlu0 %1374 }
 0xf4c   :  { %v1379_v8 = vmul.f32 0.03125, %v1375_v7 }
 0xf4d   :  { %v1382_v9 = vadd.f32 1e-05, %v1380_v6 }
 0xf4e   :  { %v1381_v10 = vadd.f32 1e-05, %v1379_v8 }
 0xf4f   :  { %9984 = vrsqrt.f32 %v1382_v9 }
 0xf50   :  { %9986 = vrsqrt.f32 %v1381_v10 }
 0xf59   :  { %v9985_v11 = vpop.eup %9984 }
 0xf5a   :  { %v9987_v13 = vpop.eup %9986  ;;  %v1386_v14 = vmul.f32 %v9985_v11, %v1370_v41 }
 0xf5b   :  { %v1385_v15 = vmul.f32 %v9987_v13, %v1369_v59 }
 0xf5c   :  { %v1392_v17 = vmul.f32 %v7902_v12, %v1386_v14 }
 0xf5d   :  { %v1391_v18 = vmul.f32 %v7902_v12, %v1385_v15 }
 0xf5e   :  { %v10565_v22 = vadd.f32 %v7903_v16, %v1392_v17 }
 0xf5f   :  { %v10563_v21 = vadd.f32 %v7903_v16, %v1391_v18 }
 0xf61   :  { %8669 = vmatprep.mubr.msk.f32.mxu1 %vm44_vm0, %v10563_v21 }
 0xf62   :  { %8670 = vmatmul.mubr.msk.f32.vlgmr.msra.gmra.mrb[4].mxu1 %vm44_vm0, %v10565_v22 }
0x1035   :  { %v8671_v24 = vpop.f32.mrb[4].mxu1 }
0x1036   :  { %v10574_v25 = vadd.f32 %v8671_v24, %v7912_v23  ;;  %v1487_v26 = vpop.f32.mrb[5].mxu1 }
0x1037   :  { %v10576_v27 = vadd.f32 %v7912_v23, %v1487_v26 }
0x1039   :  { %8676 = vmatprep.mubr.msk.f32.mxu1 %vm185_vm1, %v10576_v27  ;;  %v10582_v20 = vpack.i.bf16 %v10574_v25, %v10576_v27 }
0x103b   :  { %9756 = vrot.lane.b32.xlu1 %v10582_v20, %s10229_s11  ;;  %9751 = vrot.lane.b32.xlu0 %v10582_v20, %s10228_s30 }
0x103f   :  { %1698 = vrot.lane.b32.xlu1 %v10576_v27, %s10230_s12 }
0x1043   :  { %1700 = vrot.lane.b32.xlu1 %v10574_v25, %s10230_s12 }
0x10ad   :  { %v9757_v28 = vpop.permute.xlu1 %9756  ;;  %v9752_v29 = vpop.permute.xlu0 %9751 }
0x10ae   :  { %v9759_v19 = vunpack.i.h.bf16 %v9757_v28  ;;  %v9758_v30 = vunpack.i.l.bf16 %v9757_v28  ;;  %v9754_v31 = vunpack.i.h.bf16 %v9752_v29  ;;  %v9753_v32 = vunpack.i.l.bf16 %v9752_v29 }
0x10b0   :  { %v9286_v34 = vpack.c.bf16 %v9754_v31, %v9753_v32  ;;  %v9296_v36 = vpack.c.bf16 %v9759_v19, %v9758_v30 }
0x10b1   :  { %v1699_v37 = vpop.permute.xlu1 %1698 }
0x10b2   :  { %9288 = vmatprep.subr.msk.bf16.mxu1 %vm10358_vm2, %v9286_v34 }
0x10b3   :  { %9291 = vmatpush3.bf16.xpose.msk.msra.mxu1 %vm10358_vm2, %v9286_v34 }
0x10b4   :  { %9298 = vmatprep.subr.msk.bf16.mxu1 %vm10358_vm2, %v9296_v36 }
0x10b5   :  { %v1701_v39 = vpop.permute.xlu1 %1700 }
0x10ba   :  { %8677 = vmatmul.mubr.msk.f32.vlgmr.msra.gmra.mrb[6].mxu1 %vm185_vm1, %v10574_v25 }
0x10bb   :  { %9301 = vmatpush3.bf16.xpose.msk.msra.mxu1 %vm10358_vm2, %v9296_v36  ;;  %8690 = vmatprep.mubr.msk.f32.mxu1 %vm185_vm1, %v1699_v37 }
0x10c2   :  { %8691 = vmatmul.mubr.msk.f32.vlgmr.msra.gmra.mrb[8].mxu1 %vm185_vm1, %v1701_v39 }
0x118d   :  { %v8678_v42 = vpop.f32.mrb[6].mxu1 }
0x118e   :  { %v1586_v43 = vmul.f32 0.35355338, %v8678_v42  ;;  %v1576_v44 = vpop.f32.mrb[7].mxu1 }
0x118f   :  { %v1585_v46 = vmul.f32 0.35355338, %v1576_v44 }
0x1190   :  { %v1588_v47 = vadd.f32 %v1586_v43, %v10376_v52 }
0x1191   :  { %v1587_v38 = vadd.f32 %v1585_v46, %v10371_v49 }
0x1192   :  { %v1592_v48 = vsel %vm273_vm3, %v1588_v47, -inf }
0x1193   :  { %1593 = vmax.xlane.f32.xlu1 %v1592_v48  ;;  %v1589_v35 = vsel %vm273_vm3, %v1587_v38, -inf }
0x1194   :  { %1590 = vmax.xlane.f32.xlu0 %v1589_v35 }
0x1195   :  { %v8692_v33 = vpop.f32.mrb[8].mxu1 }
0x1196   :  { %v1780_v50 = vpop.f32.mrb[9].mxu1  ;;  %v1790_v51 = vmul.f32 0.35355338, %v8692_v33 }
0x1197   :  { %v1789_v53 = vmul.f32 0.35355338, %v1780_v50 }
0x1198   :  { %v1792_v56 = vadd.f32 %v1790_v51, %v10376_v52 }
0x1199   :  { %v1791_v54 = vadd.f32 %v1789_v53, %v10371_v49 }
0x119a   :  { %v1796_v57 = vsel %vm273_vm3, %v1792_v56, -inf }
0x119b   :  { %v1793_v55 = vsel %vm273_vm3, %v1791_v54, -inf }
0x119c   :  { %1794 = vmax.xlane.f32.xlu0 %v1793_v55 }
0x11a0   :  { %1797 = vmax.xlane.f32.xlu0 %v1796_v57 }
0x1220   :  { %v1594_v58 = vpop.xlane.xlu1 %1593 }
0x1221   :  { %v1596_v41 = vsub.f32 %v1588_v47, %v1594_v58  ;;  %v1591_v59 = vpop.xlane.xlu0 %1590 }
0x1222   :  { %v1595_v60 = vsub.f32 %v1587_v38, %v1591_v59 }
0x1223   :  { %v1599_v61 = vmul.f32 1.442695, %v1596_v41 }
0x1224   :  { %v1597_v62 = vmul.f32 1.442695, %v1595_v60 }
0x1225   :  { %9988 = vpow2.f32 %v1599_v61 }
0x1226   :  { %9990 = vpow2.f32 %v1597_v62 }
0x1229   :  { %v1795_v40 = vpop.xlane.xlu0 %1794 }
0x122a   :  { %v1799_v63 = vsub.f32 %v1791_v54, %v1795_v40  ;;  %v10196_v54 = vld [vmem:[%s11781_s2 + $0x8] sm:$0xff] }
0x122c   :  { %v1801_v0 = vmul.f32 1.442695, %v1799_v63 }
0x122d   :  { %v1798_v49 = vpop.xlane.xlu0 %1797 }
0x122e   :  { %9992 = vpow2.f32 %v1801_v0  ;;  %v1800_v1 = vsub.f32 %v1792_v56, %v1798_v49  ;;  %v10197_v56 = vld [vmem:[%s11781_s2] sm:$0xff] }
0x122f   :  { %v9989_v2 = vpop.eup %9988 }
0x1230   :  { %v9991_v52 = vpop.eup %9990  ;;  %v1803_v3 = vmul.f32 1.442695, %v1800_v1  ;;  %v1604_v4 = vsel %vm273_vm3, %v9989_v2, 0.0 }
0x1231   :  { %1605 = vadd.xlane.f32.xlu1 %v1604_v4  ;;  %v1601_v5 = vsel %vm273_vm3, %v9991_v52, 0.0 }
0x1232   :  { %9994 = vpow2.f32 %v1803_v3  ;;  %1602 = vadd.xlane.f32.xlu0 %v1601_v5 }
0x1238   :  { %v9993_v6 = vpop.eup %9992 }
0x1239   :  { %v1805_v7 = vsel %vm273_vm3, %v9993_v6, 0.0 }
0x123a   :  { %1806 = vadd.xlane.f32.xlu0 %v1805_v7 }
0x123c   :  { %v9995_v8 = vpop.eup %9994 }
0x123d   :  { %v1808_v9 = vsel %vm273_vm3, %v9995_v8, 0.0 }
0x123e   :  { %1809 = vadd.xlane.f32.xlu1 %v1808_v9 }
0x124f   :  { %9766 = vrot.lane.b32.xlu1 %v10582_v20, %s10232_s17 }
0x1250   :  { %9761 = vrot.lane.b32.xlu0 %v10582_v20, %s10231_s0 }
0x1253   :  { %9771 = vrot.lane.b32.xlu1 %v10582_v20, %s10236_s21 }
0x1254   :  { %1904 = vrot.lane.b32.xlu0 %v10574_v25, %s10234_s19 }
0x1257   :  { %1902 = vrot.lane.b32.xlu1 %v10576_v27, %s10234_s19 }
0x12be   :  { %v1606_v11 = vpop.xlane.xlu1 %1605 }
0x12bf   :  { %v1603_v10 = vpop.xlane.xlu0 %1602 }
0x12c0   :  { %9996 = vrcp.f32 %v1603_v10 }
0x12c1   :  { %9998 = vrcp.f32 %v1606_v11 }
0x12c7   :  { %v1807_v12 = vpop.xlane.xlu0 %1806 }
0x12c8   :  { %10000 = vrcp.f32 %v1807_v12 }
0x12ca   :  { %v9997_v13 = vpop.eup %9996 }
0x12cb   :  { %v1810_v14 = vpop.xlane.xlu1 %1809  ;;  %v9762_v15 = vpop.permute.xlu0 %9761  ;;  %v1608_v16 = vmul.f32 %v9997_v13, %v9991_v52 }
0x12cc   :  { %10002 = vrcp.f32 %v1810_v14  ;;  %v9764_v17 = vunpack.i.h.bf16 %v9762_v15  ;;  %v9763_v18 = vunpack.i.l.bf16 %v9762_v15  ;;  %v9999_v24 = vpop.eup %9998 }
0x12cd   :  { %8683 = vmatprep.mubr.msk.f32.mxu0 %vm273_vm3, %v1608_v16  ;;  %v1610_v30 = vmul.f32 %v9999_v24, %v9989_v2 }
0x12ce   :  { %v9292_v23 = vpack.c.bf16 %v9764_v17, %v9763_v18 }
0x12cf   :  { %v9767_v26 = vpop.permute.xlu1 %9766  ;;  %v1905_v46 = vpop.permute.xlu0 %1904 }
0x12d0   :  { %v9769_v28 = vunpack.i.h.bf16 %v9767_v26  ;;  %v9768_v29 = vunpack.i.l.bf16 %v9767_v26  ;;  %9293 = vmatprep.subr.bf16.mxu0 %v9292_v23 }
0x12d1   :  { %9295 = vmatpush3.bf16.msra.mxu0 %v9292_v23 }
0x12d2   :  { %v10001_v19 = vpop.eup %10000  ;;  %v9302_v31 = vpack.c.bf16 %v9769_v28, %v9768_v29 }
0x12d3   :  { %v9772_v32 = vpop.permute.xlu1 %9771  ;;  %v1812_v34 = vmul.f32 %v10001_v19, %v9993_v6 }
0x12d4   :  { %v9774_v36 = vunpack.i.h.bf16 %v9772_v32  ;;  %v9773_v37 = vunpack.i.l.bf16 %v9772_v32  ;;  %8684 = vmatmul.mubr.msk.f32.vlgmr.msra.gmra.mrb[20].mxu0 %vm273_vm3, %v1610_v30  ;;  %9303 = vmatprep.subr.bf16.mxu0 %v9302_v31 }
0x12d5   :  { %9305 = vmatpush3.bf16.msra.mxu0 %v9302_v31  ;;  %8697 = vmatprep.mubr.msk.f32.mxu0 %vm273_vm3, %v1812_v34 }
0x12d6   :  { %v10003_v39 = vpop.eup %10002  ;;  %v9306_v42 = vpack.c.bf16 %v9774_v36, %v9773_v37 }
0x12d7   :  { %v1814_v43 = vmul.f32 %v10003_v39, %v9995_v8  ;;  %v1903_v44 = vpop.permute.xlu1 %1902 }
0x12d8   :  { %9308 = vmatprep.subr.msk.bf16.mxu0 %vm10358_vm2, %v9306_v42 }
0x12d9   :  { %8698 = vmatmul.mubr.msk.f32.vlgmr.msra.gmra.mrb[22].mxu0 %vm273_vm3, %v1814_v43 }
0x12da   :  { %8704 = vmatprep.mubr.msk.f32.mxu0 %vm185_vm1, %v1903_v44 }
0x12de   :  { %9311 = vmatpush3.bf16.xpose.msk.msra.mxu0 %vm10358_vm2, %v9306_v42 }
0x12e5   :  { %8705 = vmatmul.mubr.msk.f32.vlgmr.msra.gmra.mrb[24].mxu0 %vm185_vm1, %v1905_v46 }
0x13a7   :  { %v10636_v47 = vpop.f32.mrb[20].mxu0 }
0x13a8   :  { %v10638_v38 = vpop.f32.mrb[21].mxu0 }
0x13ac   :  { %v10640_v48 = vpop.f32.mrb[22].mxu0 }
0x13ad   :  { %v10642_v35 = vpop.f32.mrb[23].mxu0 }
0x13b8   :  { %v8706_v33 = vpop.f32.mrb[24].mxu0 }
0x13b9   :  { %v1994_v50 = vmul.f32 0.35355338, %v8706_v33  ;;  %v1984_v51 = vpop.f32.mrb[25].mxu0 }
0x13ba   :  { %v1993_v53 = vmul.f32 0.35355338, %v1984_v51 }
0x13bb   :  { %v1996_v55 = vadd.f32 %v10196_v54, %v1994_v50 }
0x13bc   :  { %v1995_v57 = vadd.f32 %v10197_v56, %v1993_v53 }
0x13bd   :  { %v2000_v58 = vsel %vm273_vm3, %v1996_v55, -inf }
0x13be   :  { %2001 = vmax.xlane.f32.xlu0 %v2000_v58  ;;  %v1997_v41 = vsel %vm273_vm3, %v1995_v57, -inf  ;;  %v7908_v58 = vld [vmem:[%s11785_s6 + $0x20] sm:$0xff] }
0x13bf   :  { %1998 = vmax.xlane.f32.xlu1 %v1997_v41  ;;  %v7910_v41 = vld [vmem:[%s11785_s6 + $0x30] sm:$0xff] }
0x13d0   :  { %9776 = vrot.lane.b32.xlu1 %v10582_v20, %s10238_s23 }
0x13d4   :  { %2106 = vrot.lane.b32.xlu1 %v10576_v27, %s10235_s20 }
0x13d8   :  { %2108 = vrot.lane.b32.xlu1 %v10574_v25, %s10235_s20 }
0x144b   :  { %v2002_v59 = vpop.xlane.xlu0 %2001 }
0x144c   :  { %v2004_v60 = vsub.f32 %v1996_v55, %v2002_v59  ;;  %v1999_v61 = vpop.xlane.xlu1 %1998 }
0x144d   :  { %v2003_v62 = vsub.f32 %v1995_v57, %v1999_v61 }
0x144e   :  { %v2007_v40 = vmul.f32 1.442695, %v2004_v60  ;;  %v7911_v60 = vld [vmem:[%s11785_s6 + $0x38] sm:$0xff] }
0x144f   :  { %v2005_v63 = vmul.f32 1.442695, %v2003_v62  ;;  %v9330_v61 = vpack.c.bf16 %v7911_v60, %v7910_v41 }
0x1450   :  { %10004 = vpow2.f32 %v2007_v40  ;;  %v9777_v0 = vpop.permute.xlu1 %9776 }
0x1451   :  { %v9779_v49 = vunpack.i.h.bf16 %v9777_v0  ;;  %v9778_v1 = vunpack.i.l.bf16 %v9777_v0  ;;  %10006 = vpow2.f32 %v2005_v63 }
0x1453   :  { %v9312_v2 = vpack.c.bf16 %v9779_v49, %v9778_v1 }
0x1454   :  { %v2107_v14 = vpop.permute.xlu1 %2106 }
0x1455   :  { %9313 = vmatprep.subr.bf16.mxu1 %v9312_v2 }
0x1456   :  { %9315 = vmatpush3.bf16.msra.mxu1 %v9312_v2 }
0x1458   :  { %v2109_v15 = vpop.permute.xlu1 %2108 }
0x145a   :  { %v10005_v52 = vpop.eup %10004 }
0x145b   :  { %v2012_v27 = vsel %vm273_vm3, %v10005_v52, 0.0  ;;  %v10007_v3 = vpop.eup %10006 }
0x145c   :  { %2013 = vadd.xlane.f32.xlu0 %v2012_v27  ;;  %v2009_v25 = vsel %vm273_vm3, %v10007_v3, 0.0 }
0x1460   :  { %2010 = vadd.xlane.f32.xlu0 %v2009_v25 }
0x1476   :  { %9781 = vrot.lane.b32.xlu0 %v10582_v20, %s10233_s18 }
0x14e9   :  { %v2014_v4 = vpop.xlane.xlu0 %2013 }
0x14ea   :  { %10008 = vrcp.f32 %v2014_v4 }
0x14ed   :  { %v2011_v5 = vpop.xlane.xlu0 %2010 }
0x14ee   :  { %10010 = vrcp.f32 %v2011_v5 }
0x14f1   :  { %v9782_v6 = vpop.permute.xlu0 %9781 }
0x14f2   :  { %v9784_v7 = vunpack.i.h.bf16 %v9782_v6  ;;  %v9783_v8 = vunpack.i.l.bf16 %v9782_v6 }
0x14f4   :  { %v9316_v9 = vpack.c.bf16 %v9784_v7, %v9783_v8  ;;  %v10009_v10 = vpop.eup %10008 }
0x14f5   :  { %v2018_v13 = vmul.f32 %v10009_v10, %v10005_v52 }
0x14f6   :  { %9318 = vmatprep.subr.msk.bf16.mxu1 %vm10358_vm2, %v9316_v9 }
0x14f8   :  { %v10011_v11 = vpop.eup %10010 }
0x14f9   :  { %v2016_v12 = vmul.f32 %v10011_v11, %v10007_v3 }
0x14fb   :  { %8711 = vmatprep.mubr.msk.f32.mxu1 %vm273_vm3, %v2016_v12 }
0x14fc   :  { %8712 = vmatmul.mubr.msk.f32.vlgmr.msra.gmra.mrb[10].mxu1 %vm273_vm3, %v2018_v13  ;;  %v2713_v13 = vld [vmem:[%s11780_s1] sm:$0xff] }
0x14fd   :  { %9321 = vmatpush3.bf16.xpose.msk.msra.mxu1 %vm10358_vm2, %v9316_v9  ;;  %8718 = vmatprep.mubr.msk.f32.mxu1 %vm185_vm1, %v2107_v14 }
0x1504   :  { %8719 = vmatmul.mubr.msk.f32.vlgmr.msra.gmra.mrb[12].mxu1 %vm185_vm1, %v2109_v15  ;;  %v2717_v15 = vsel %vm44_vm0, %v2713_v13, 0.0 }
0x15cf   :  { %v8713_v16 = vpop.f32.mrb[10].mxu1 }
0x15d0   :  { %v2097_v17 = vpop.f32.mrb[11].mxu1 }
0x15d7   :  { %v8720_v18 = vpop.f32.mrb[12].mxu1 }
0x15d8   :  { %v2198_v23 = vmul.f32 0.35355338, %v8720_v18  ;;  %v2188_v24 = vpop.f32.mrb[13].mxu1 }
0x15d9   :  { %v2197_v26 = vmul.f32 0.35355338, %v2188_v24 }
0x15da   :  { %v2200_v28 = vadd.f32 %v10196_v54, %v2198_v23 }
0x15db   :  { %v2199_v29 = vadd.f32 %v10197_v56, %v2197_v26 }
0x15dc   :  { %v2204_v19 = vsel %vm273_vm3, %v2200_v28, -inf }
0x15dd   :  { %2205 = vmax.xlane.f32.xlu0 %v2204_v19  ;;  %v2201_v30 = vsel %vm273_vm3, %v2199_v29, -inf }
0x15de   :  { %2202 = vmax.xlane.f32.xlu1 %v2201_v30 }
0x15ef   :  { %9786 = vrot.lane.b32.xlu1 %v10582_v20, %s10237_s22 }
0x15f3   :  { %2314 = vrot.lane.b32.xlu1 %v10640_v48, %s10239_s24 }
0x15f7   :  { %2320 = vrot.lane.b32.xlu1 %v2097_v17, %s10240_s16 }
0x15fb   :  { %2322 = vrot.lane.b32.xlu1 %v8713_v16, %s10240_s16  ;;  %v2714_v16 = vld [vmem:[%s11780_s1 + $0x8] sm:$0xff] }
0x166a   :  { %v2206_v31 = vpop.xlane.xlu0 %2205 }
0x166b   :  { %v2208_v32 = vsub.f32 %v2200_v28, %v2206_v31  ;;  %v2203_v34 = vpop.xlane.xlu1 %2202 }
0x166c   :  { %v2207_v36 = vsub.f32 %v2199_v29, %v2203_v34 }
0x166d   :  { %v2211_v37 = vmul.f32 1.442695, %v2208_v32 }
0x166e   :  { %v2209_v39 = vmul.f32 1.442695, %v2207_v36 }
0x166f   :  { %v9787_v42 = vpop.permute.xlu1 %9786 }
0x1670   :  { %10012 = vpow2.f32 %v2209_v39  ;;  %v9789_v43 = vunpack.i.h.bf16 %v9787_v42  ;;  %v9788_v44 = vunpack.i.l.bf16 %v9787_v42 }
0x1671   :  { %10014 = vpow2.f32 %v2211_v37 }
0x1672   :  { %v9322_v46 = vpack.c.bf16 %v9789_v43, %v9788_v44 }
0x1673   :  { %v2315_v63 = vpop.permute.xlu1 %2314 }
0x1674   :  { %9323 = vmatprep.subr.bf16.mxu0 %v9322_v46  ;;  %v2335_v27 = vsel %vm185_vm1, %v10636_v47, %v2315_v63 }
0x1675   :  { %9325 = vmatpush3.bf16.msra.mxu0 %v9322_v46 }
0x1677   :  { %v2321_v0 = vpop.permute.xlu1 %2320 }
0x167a   :  { %v10013_v20 = vpop.eup %10012 }
0x167b   :  { %v2213_v48 = vsel %vm273_vm3, %v10013_v20, 0.0  ;;  %v10015_v33 = vpop.eup %10014  ;;  %v2323_v1 = vpop.permute.xlu1 %2322 }
0x167c   :  { %2214 = vadd.xlane.f32.xlu0 %v2213_v48  ;;  %v2216_v50 = vsel %vm273_vm3, %v10015_v33, 0.0  ;;  %v2337_v4 = vsel %vm273_vm3, %v2335_v27, %v2323_v1  ;;  %v7945_v48 = vld [vmem:[%s11786_s7 + $0x68] sm:$0xff] }
0x1680   :  { %2217 = vadd.xlane.f32.xlu0 %v2216_v50  ;;  %v7946_v50 = vld [vmem:[%s11786_s7 + $0x70] sm:$0xff] }
0x1696   :  { %2312 = vrot.lane.b32.xlu0 %v10642_v35, %s10239_s24  ;;  %v7909_v35 = vld [vmem:[%s11785_s6 + $0x28] sm:$0xff] }
0x1697   :  { %v9326_v59 = vpack.c.bf16 %v7909_v35, %v7908_v58 }
0x1699   :  { %9327 = vmatprep.subr.bf16.mxu0 %v9326_v59 }
0x1709   :  { %v2215_v51 = vpop.xlane.xlu0 %2214 }
0x170a   :  { %10016 = vrcp.f32 %v2215_v51  ;;  %v7947_v51 = vld [vmem:[%s11786_s7 + $0x78] sm:$0xff] }
0x170d   :  { %v2218_v53 = vpop.xlane.xlu0 %2217 }
0x170e   :  { %10018 = vrcp.f32 %v2218_v53  ;;  %v9338_v53 = vpack.c.bf16 %v7947_v51, %v7946_v50 }
0x1711   :  { %v2313_v49 = vpop.permute.xlu0 %2312 }
0x1712   :  { %v2334_v2 = vsel %vm185_vm1, %v10638_v38, %v2313_v49  ;;  %v7939_v38 = vld [vmem:[%s11783_s4 + $0xe] ss:$0 sm:$0xff] }
0x1713   :  { %v2336_v3 = vsel %vm273_vm3, %v2334_v2, %v2321_v0  ;;  %v7942_v2 = vld [vmem:[%s11783_s4 + $0xf] ss:$0 sm:$0xff] }
0x1714   :  { %v10017_v54 = vpop.eup %10016 }
0x1715   :  { %v2220_v55 = vmul.f32 %v10017_v54, %v10013_v20  ;;  %v7944_v20 = vld [vmem:[%s11786_s7 + $0x60] sm:$0xff] }
0x1716   :  { %v7966_v54 = vld [vmem:[%s11784_s5 + $0x40] sm:$0xff] }
0x1717   :  { %8725 = vmatprep.mubr.msk.f32.mxu0 %vm273_vm3, %v2220_v55  ;;  %v7967_v55 = vld [vmem:[%s11784_s5 + $0x48] sm:$0xff] }
0x1718   :  { %v10019_v56 = vpop.eup %10018 }
0x1719   :  { %v2222_v57 = vmul.f32 %v10019_v56, %v10015_v33  ;;  %v9334_v33 = vpack.c.bf16 %v7945_v48, %v7944_v20  ;;  %v9358_v56 = vpack.c.bf16 %v7967_v55, %v7966_v54 }
0x171b   :  { %8726 = vmatmul.mubr.msk.f32.vlgmr.msra.gmra.mrb[26].mxu0 %vm273_vm3, %v2222_v57  ;;  %9335 = vmatprep.subr.bf16.mxu1 %v9334_v33 }
0x171c   :  { %9329 = vmatpush3.bf16.msra.mxu0 %v9326_v59  ;;  %9337 = vmatpush3.bf16.msra.mxu1 %v9334_v33  ;;  %v7974_v33 = vld [vmem:[%s11783_s4 + $0x15] ss:$0 sm:$0xff] }
0x171d   :  { %9331 = vmatprep.subr.bf16.mxu0 %v9330_v61  ;;  %9339 = vmatprep.subr.bf16.mxu1 %v9338_v53 }
0x1720   :  { %9333 = vmatpush3.bf16.msra.mxu0 %v9330_v61  ;;  %9341 = vmatpush3.bf16.msra.mxu1 %v9338_v53 }
0x1721   :  { %9359 = vmatprep.subr.bf16.mxu1 %v9358_v56 }
0x17ee   :  { %v8727_v62 = vpop.f32.mrb[26].mxu0 }
0x17ef   :  { %2330 = vrot.lane.b32.xlu1 %v8727_v62, %s11794_s25  ;;  %v2301_v40 = vpop.f32.mrb[27].mxu0 }
0x17f0   :  { %2328 = vrot.lane.b32.xlu0 %v2301_v40, %s11794_s25 }
0x1861   :  { %v2331_v52 = vpop.permute.xlu1 %2330 }
0x1862   :  { %v2329_v25 = vpop.permute.xlu0 %2328  ;;  %v2339_v6 = vsel %vm1023_vm4, %v2337_v4, %v2331_v52 }
0x1863   :  { %v2338_v5 = vsel %vm1023_vm4, %v2336_v3, %v2329_v25  ;;  %v7943_v25 = vld [vmem:[%s11783_s4 + $0x10] ss:$0 sm:$0xff] }
0x1864   :  { %8736 = vmatprep.mubr.msk.f32.mxu0 %vm44_vm0, %v2338_v5 }
0x1865   :  { %8737 = vmatmul.mubr.msk.f32.vlgmr.msra.gmra.mrb[28].mxu0 %vm44_vm0, %v2339_v6  ;;  %v7968_v6 = vld [vmem:[%s11784_s5 + $0x50] sm:$0xff] }
0x1938   :  { %v8738_v7 = vpop.f32.mrb[28].mxu0 }
0x1939   :  { %v2422_v8 = vadd.f32 %v8738_v7, %v7939_v38  ;;  %v2416_v47 = vpop.f32.mrb[29].mxu0 }
0x193a   :  { %v2417_v9 = vadd.f32 %v7939_v38, %v2416_v47  ;;  %v7969_v38 = vld [vmem:[%s11784_s5 + $0x58] sm:$0xff] }
0x193b   :  { %v2426_v10 = vadd.f32 %v2422_v8, %v10565_v22  ;;  %v2720_v22 = vsel %vm44_vm0, %v2714_v16, 0.0  ;;  %v7964_v8 = vld [vmem:[%s11783_s4 + $0x2] ss:$0 sm:$0xff] }
0x193c   :  { %v2425_v11 = vadd.f32 %v2417_v9, %v10563_v21 }
0x193d   :  { %v2432_v12 = vsel %vm44_vm0, %v2426_v10, 0.0 }
0x193e   :  { %2433 = vadd.xlane.f32.xlu1 %v2432_v12  ;;  %v2429_v14 = vsel %vm44_vm0, %v2425_v11, 0.0  ;;  %v7965_v12 = vld [vmem:[%s11783_s4 + $0x3] ss:$0 sm:$0xff] }
0x193f   :  { %2430 = vadd.xlane.f32.xlu0 %v2429_v14 }
0x1943   :  { %2718 = vadd.xlane.f32.xlu0 %v2717_v15 }
0x1947   :  { %2721 = vadd.xlane.f32.xlu0 %v2720_v22 }
0x19cb   :  { %v2434_v21 = vpop.xlane.xlu1 %2433 }
0x19cc   :  { %v2436_v17 = vmul.f32 0.03125, %v2434_v21  ;;  %v2431_v18 = vpop.xlane.xlu0 %2430 }
0x19cd   :  { %v2435_v23 = vmul.f32 0.03125, %v2431_v18  ;;  %v7949_v18 = vld [vmem:[%s11787_s8 + $0x48] sm:$0xff] }
0x19ce   :  { %v2438_v24 = vsub.f32 %v2426_v10, %v2436_v17  ;;  %v7948_v17 = vld [vmem:[%s11787_s8 + $0x40] sm:$0xff] }
0x19cf   :  { %v2437_v26 = vsub.f32 %v2425_v11, %v2435_v23  ;;  %v9362_v11 = vpack.c.bf16 %v7969_v38, %v7968_v6  ;;  %v9342_v23 = vpack.c.bf16 %v7949_v18, %v7948_v17 }
0x19d0   :  { %v2719_v28 = vpop.xlane.xlu0 %2718  ;;  %v2440_v29 = vmul.f32 %v2438_v24, %v2438_v24 }
0x19d1   :  { %v2723_v19 = vmul.f32 0.03125, %v2719_v28  ;;  %v2439_v30 = vmul.f32 %v2437_v26, %v2437_v26  ;;  %9343 = vmatprep.subr.bf16.mxu0 %v9342_v23 }
0x19d2   :  { %v2444_v31 = vsel %vm44_vm0, %v2440_v29, 0.0  ;;  %9345 = vmatpush3.bf16.msra.mxu0 %v9342_v23  ;;  %v7952_v29 = vld [vmem:[%s11787_s8 + $0x60] sm:$0xff] }
0x19d3   :  { %v2725_v32 = vsub.f32 %v2713_v13, %v2723_v19  ;;  %2445 = vadd.xlane.f32.xlu1 %v2444_v31  ;;  %v2441_v34 = vsel %vm44_vm0, %v2439_v30, 0.0  ;;  %v7953_v19 = vld [vmem:[%s11787_s8 + $0x68] sm:$0xff]  ;;  %v7954_v31 = vld [vmem:[%s11787_s8 + $0x70] sm:$0xff] }
0x19d4   :  { %2442 = vadd.xlane.f32.xlu0 %v2441_v34  ;;  %v2722_v36 = vpop.xlane.xlu0 %2721  ;;  %v9350_v30 = vpack.c.bf16 %v7953_v19, %v7952_v29 }
0x19d5   :  { %v2724_v37 = vmul.f32 0.03125, %v2722_v36  ;;  %v2727_v39 = vmul.f32 %v2725_v32, %v2725_v32  ;;  %v7956_v36 = vld [vmem:[%s11783_s4 + $0x11] ss:$0 sm:$0xff] }
0x19d7   :  { %v2726_v42 = vsub.f32 %v2714_v16, %v2724_v37  ;;  %v2729_v43 = vsel %vm44_vm0, %v2727_v39, 0.0 }
0x19d8   :  { %2730 = vadd.xlane.f32.xlu0 %v2729_v43 }
0x19d9   :  { %v2728_v44 = vmul.f32 %v2726_v42, %v2726_v42 }
0x19db   :  { %v2732_v46 = vsel %vm44_vm0, %v2728_v44, 0.0 }
0x19dc   :  { %2733 = vadd.xlane.f32.xlu1 %v2732_v46 }
0x1a60   :  { %v2446_v57 = vpop.xlane.xlu1 %2445 }
0x1a61   :  { %v2448_v58 = vmul.f32 0.03125, %v2446_v57  ;;  %v2443_v35 = vpop.xlane.xlu0 %2442 }
0x1a62   :  { %v2447_v41 = vmul.f32 0.03125, %v2443_v35 }
0x1a63   :  { %v2450_v59 = vadd.f32 1e-05, %v2448_v58 }
0x1a64   :  { %v2449_v60 = vadd.f32 1e-05, %v2447_v41 }
0x1a65   :  { %10020 = vrsqrt.f32 %v2450_v59  ;;  %v2731_v61 = vpop.xlane.xlu0 %2730 }
0x1a66   :  { %10022 = vrsqrt.f32 %v2449_v60  ;;  %v2735_v62 = vmul.f32 0.03125, %v2731_v61 }
0x1a68   :  { %v2737_v40 = vadd.f32 1e-05, %v2735_v62 }
0x1a69   :  { %v2734_v63 = vpop.xlane.xlu1 %2733 }
0x1a6a   :  { %10024 = vrsqrt.f32 %v2737_v40  ;;  %v2736_v0 = vmul.f32 0.03125, %v2734_v63 }
0x1a6c   :  { %v2738_v49 = vadd.f32 1e-05, %v2736_v0 }
0x1a6e   :  { %10026 = vrsqrt.f32 %v2738_v49 }
0x1a6f   :  { %v10021_v1 = vpop.eup %10020 }
0x1a70   :  { %v10023_v52 = vpop.eup %10022  ;;  %v2454_v27 = vmul.f32 %v10021_v1, %v2438_v24  ;;  %v7950_v24 = vld [vmem:[%s11787_s8 + $0x50] sm:$0xff] }
0x1a71   :  { %v2453_v3 = vmul.f32 %v10023_v52, %v2437_v26  ;;  %v7951_v26 = vld [vmem:[%s11787_s8 + $0x58] sm:$0xff] }
0x1a72   :  { %v2460_v4 = vmul.f32 %v7942_v2, %v2454_v27  ;;  %v9346_v28 = vpack.c.bf16 %v7951_v26, %v7950_v24 }
0x1a73   :  { %v2459_v5 = vmul.f32 %v7942_v2, %v2453_v3 }
0x1a74   :  { %v10025_v7 = vpop.eup %10024  ;;  %v10762_v10 = vadd.f32 %v7943_v25, %v2460_v4  ;;  %9347 = vmatprep.subr.bf16.mxu0 %v9346_v28 }
0x1a75   :  { %v10760_v47 = vadd.f32 %v7943_v25, %v2459_v5  ;;  %v2741_v9 = vmul.f32 %v10025_v7, %v2725_v32  ;;  %9349 = vmatpush3.bf16.msra.mxu0 %v9346_v28  ;;  %v7955_v32 = vld [vmem:[%s11787_s8 + $0x78] sm:$0xff] }
0x1a76   :  { %9351 = vmatprep.subr.bf16.mxu0 %v9350_v30  ;;  %v9354_v34 = vpack.c.bf16 %v7955_v32, %v7954_v31 }
0x1a77   :  { %8747 = vmatprep.mubr.msk.f32.mxu1 %vm44_vm0, %v10760_v47  ;;  %v2747_v13 = vmul.f32 %v7964_v8, %v2741_v9 }
0x1a78   :  { %v10027_v14 = vpop.eup %10026  ;;  %8748 = vmatmul.mubr.msk.f32.vlgmr.msra.gmra.mrb[14].mxu1 %vm44_vm0, %v10762_v10 }
0x1a79   :  { %9361 = vmatpush3.bf16.msra.mxu1 %v9358_v56  ;;  %v2742_v15 = vmul.f32 %v10027_v14, %v2726_v42  ;;  %v10771_v16 = vadd.f32 %v7965_v12, %v2747_v13  ;;  %9353 = vmatpush3.bf16.msra.mxu0 %v9350_v30 }
0x1a7a   :  { %9363 = vmatprep.subr.bf16.mxu1 %v9362_v11  ;;  %9355 = vmatprep.subr.bf16.mxu0 %v9354_v34 }
0x1a7b   :  { %v2748_v22 = vmul.f32 %v7964_v8, %v2742_v15  ;;  %8777 = vmatprep.mubr.msk.f32.mxu1 %vm44_vm0, %v10771_v16  ;;  %v10853_v15 = vld [vmem:[%s11782_s3] sm:$0xff] }
0x1a7d   :  { %v10775_v21 = vadd.f32 %v7965_v12, %v2748_v22  ;;  %9365 = vmatpush3.bf16.msra.mxu1 %v9362_v11  ;;  %9357 = vmatpush3.bf16.msra.mxu0 %v9354_v34  ;;  %v10848_v11 = vld [vmem:[%s11782_s3 + $0x8] sm:$0xff] }
0x1a80   :  { %8778 = vmatmul.mubr.msk.f32.vlgmr.msra.gmra.mrb[16].mxu1 %vm44_vm0, %v10775_v21 }
0x1b4b   :  { %v8749_v37 = vpop.f32.mrb[14].mxu1 }
0x1b4c   :  { %v2565_v39 = vadd.f32 %v8749_v37, %v7956_v36  ;;  %v2559_v42 = vpop.f32.mrb[15].mxu1 }
0x1b4d   :  { %v2560_v43 = vadd.f32 %v7956_v36, %v2559_v42 }
0x1b4e   :  { %v2569_v44 = vmul.f32 %v2565_v39, %v2565_v39 }
0x1b4f   :  { %v2568_v46 = vmul.f32 %v2560_v43, %v2560_v43 }
0x1b50   :  { %v2571_v20 = vmul.f32 %v2569_v44, %v2565_v39 }
0x1b51   :  { %v2570_v48 = vmul.f32 %v2568_v46, %v2560_v43 }
0x1b52   :  { %v2573_v50 = vmul.f32 0.044715, %v2571_v20 }
0x1b53   :  { %v2572_v51 = vmul.f32 0.044715, %v2570_v48  ;;  %v8779_v53 = vpop.f32.mrb[16].mxu1 }
0x1b54   :  { %v2575_v54 = vadd.f32 %v2573_v50, %v2565_v39  ;;  %v10809_v55 = vadd.f32 %v8779_v53, %v7974_v33  ;;  %v2843_v56 = vpop.f32.mrb[17].mxu1 }
0x1b55   :  { %v2574_v57 = vadd.f32 %v2572_v51, %v2560_v43  ;;  %v10811_v58 = vadd.f32 %v7974_v33, %v2843_v56 }
0x1b56   :  { %v2577_v35 = vmul.f32 0.7978846, %v2575_v54 }
0x1b57   :  { %v2576_v41 = vmul.f32 0.7978846, %v2574_v57  ;;  %8784 = vmatprep.mubr.msk.f32.mxu1 %vm185_vm1, %v10811_v58  ;;  %v10817_v59 = vpack.i.bf16 %v10809_v55, %v10811_v58 }
0x1b58   :  { %10028 = vtanh.f32 %v2577_v35 }
0x1b59   :  { %10030 = vtanh.f32 %v2576_v41  ;;  %9796 = vrot.lane.b32.xlu1 %v10817_v59, %s10229_s11  ;;  %9791 = vrot.lane.b32.xlu0 %v10817_v59, %s10228_s30 }
0x1b5d   :  { %3054 = vrot.lane.b32.xlu1 %v10811_v58, %s10230_s12 }
0x1b61   :  { %3056 = vrot.lane.b32.xlu1 %v10809_v55, %s10230_s12 }
0x1b62   :  { %v10029_v60 = vpop.eup %10028 }
0x1b63   :  { %v10031_v61 = vpop.eup %10030  ;;  %v2581_v62 = vadd.f32 1.0, %v10029_v60 }
0x1b64   :  { %v2580_v40 = vadd.f32 1.0, %v10031_v61 }
0x1b65   :  { %v2583_v63 = vmul.f32 0.5, %v2581_v62 }
0x1b66   :  { %v2582_v0 = vmul.f32 0.5, %v2580_v40 }
0x1b67   :  { %v2585_v1 = vmul.f32 %v2583_v63, %v2565_v39 }
0x1b68   :  { %v2584_v49 = vmul.f32 %v2582_v0, %v2560_v43 }
0x1b6a   :  { %8766 = vmatprep.mubr.msk.f32.mxu0 %vm1275_vm5, %v2584_v49 }
0x1b6b   :  { %8767 = vmatmul.mubr.msk.f32.vlgmr.msra.gmra.mrb[30].mxu0 %vm1275_vm5, %v2585_v1 }
0x1bcb   :  { %v9797_v2 = vpop.permute.xlu1 %9796  ;;  %v9792_v52 = vpop.permute.xlu0 %9791 }
0x1bcc   :  { %v9799_v27 = vunpack.i.h.bf16 %v9797_v2  ;;  %v9798_v3 = vunpack.i.l.bf16 %v9797_v2  ;;  %v9794_v25 = vunpack.i.h.bf16 %v9792_v52  ;;  %v9793_v4 = vunpack.i.l.bf16 %v9792_v52 }
0x1bce   :  { %v9366_v5 = vpack.c.bf16 %v9794_v25, %v9793_v4  ;;  %v9376_v6 = vpack.c.bf16 %v9799_v27, %v9798_v3 }
0x1bcf   :  { %v3055_v38 = vpop.permute.xlu1 %3054 }
0x1bd0   :  { %9368 = vmatprep.subr.msk.bf16.mxu1 %vm10358_vm2, %v9366_v5 }
0x1bd1   :  { %9371 = vmatpush3.bf16.xpose.msk.msra.mxu1 %vm10358_vm2, %v9366_v5 }
0x1bd2   :  { %9378 = vmatprep.subr.msk.bf16.mxu1 %vm10358_vm2, %v9376_v6 }
0x1bd3   :  { %v3057_v7 = vpop.permute.xlu1 %3056 }
0x1bd8   :  { %8785 = vmatmul.mubr.msk.f32.vlgmr.msra.gmra.mrb[18].mxu1 %vm185_vm1, %v10809_v55 }
0x1bd9   :  { %9381 = vmatpush3.bf16.xpose.msk.msra.mxu1 %vm10358_vm2, %v9376_v6  ;;  %8798 = vmatprep.mubr.msk.f32.mxu1 %vm185_vm1, %v3055_v38 }
0x1be0   :  { %8799 = vmatmul.mubr.msk.f32.vlgmr.msra.gmra.mrb[20].mxu1 %vm185_vm1, %v3057_v7 }
0x1c3e   :  { %v10841_v8 = vpop.f32.mrb[30].mxu0 }
0x1c3f   :  { %v10843_v9 = vpop.f32.mrb[31].mxu0 }
0x1cab   :  { %v8786_v12 = vpop.f32.mrb[18].mxu1 }
0x1cac   :  { %v2942_v13 = vmul.f32 0.35355338, %v8786_v12  ;;  %v2932_v14 = vpop.f32.mrb[19].mxu1 }
0x1cad   :  { %v2941_v22 = vmul.f32 0.35355338, %v2932_v14 }
0x1cae   :  { %v2944_v17 = vadd.f32 %v2942_v13, %v10848_v11 }
0x1caf   :  { %v2943_v18 = vadd.f32 %v2941_v22, %v10853_v15 }
0x1cb0   :  { %v2948_v23 = vsel %vm273_vm3, %v2944_v17, -inf }
0x1cb1   :  { %2949 = vmax.xlane.f32.xlu1 %v2948_v23  ;;  %v2945_v24 = vsel %vm273_vm3, %v2943_v18, -inf }
0x1cb2   :  { %2946 = vmax.xlane.f32.xlu0 %v2945_v24 }
0x1cb3   :  { %v8800_v26 = vpop.f32.mrb[20].mxu1 }
0x1cb4   :  { %v3136_v28 = vpop.f32.mrb[21].mxu1  ;;  %v3146_v29 = vmul.f32 0.35355338, %v8800_v26 }
0x1cb5   :  { %v3145_v19 = vmul.f32 0.35355338, %v3136_v28 }
0x1cb6   :  { %v3148_v31 = vadd.f32 %v3146_v29, %v10848_v11 }
0x1cb7   :  { %v3147_v30 = vadd.f32 %v3145_v19, %v10853_v15 }
0x1cb8   :  { %v3152_v34 = vsel %vm273_vm3, %v3148_v31, -inf }
0x1cb9   :  { %v3149_v32 = vsel %vm273_vm3, %v3147_v30, -inf }
0x1cba   :  { %3150 = vmax.xlane.f32.xlu0 %v3149_v32 }
0x1cbe   :  { %3153 = vmax.xlane.f32.xlu0 %v3152_v34 }
0x1d3e   :  { %v2950_v36 = vpop.xlane.xlu1 %2949 }
0x1d3f   :  { %v2952_v37 = vsub.f32 %v2944_v17, %v2950_v36  ;;  %v2947_v39 = vpop.xlane.xlu0 %2946 }
0x1d40   :  { %v2951_v42 = vsub.f32 %v2943_v18, %v2947_v39 }
0x1d41   :  { %v2955_v43 = vmul.f32 1.442695, %v2952_v37 }
0x1d42   :  { %v2953_v44 = vmul.f32 1.442695, %v2951_v42 }
0x1d43   :  { %10032 = vpow2.f32 %v2955_v43 }
0x1d44   :  { %10034 = vpow2.f32 %v2953_v44 }
0x1d47   :  { %v3151_v46 = vpop.xlane.xlu0 %3150 }
0x1d48   :  { %v3155_v20 = vsub.f32 %v3147_v30, %v3151_v46 }
0x1d4a   :  { %v3157_v48 = vmul.f32 1.442695, %v3155_v20 }
0x1d4b   :  { %v3154_v33 = vpop.xlane.xlu0 %3153 }
0x1d4c   :  { %10036 = vpow2.f32 %v3157_v48  ;;  %v3156_v50 = vsub.f32 %v3148_v31, %v3154_v33 }
0x1d4d   :  { %v10033_v51 = vpop.eup %10032 }
0x1d4e   :  { %v10035_v53 = vpop.eup %10034  ;;  %v3159_v54 = vmul.f32 1.442695, %v3156_v50  ;;  %v2960_v56 = vsel %vm273_vm3, %v10033_v51, 0.0 }
0x1d4f   :  { %2961 = vadd.xlane.f32.xlu1 %v2960_v56  ;;  %v2957_v57 = vsel %vm273_vm3, %v10035_v53, 0.0 }
0x1d50   :  { %10038 = vpow2.f32 %v3159_v54  ;;  %2958 = vadd.xlane.f32.xlu0 %v2957_v57 }
0x1d56   :  { %v10037_v35 = vpop.eup %10036 }
0x1d57   :  { %v3161_v41 = vsel %vm273_vm3, %v10037_v35, 0.0 }
0x1d58   :  { %3162 = vadd.xlane.f32.xlu0 %v3161_v41 }
0x1d5a   :  { %v10039_v60 = vpop.eup %10038 }
0x1d5b   :  { %v3164_v61 = vsel %vm273_vm3, %v10039_v60, 0.0 }
0x1d5c   :  { %3165 = vadd.xlane.f32.xlu1 %v3164_v61 }
0x1d6d   :  { %9806 = vrot.lane.b32.xlu1 %v10817_v59, %s10232_s17 }
0x1d6e   :  { %9801 = vrot.lane.b32.xlu0 %v10817_v59, %s10231_s0 }
0x1d71   :  { %9811 = vrot.lane.b32.xlu1 %v10817_v59, %s10236_s21 }
0x1d72   :  { %3260 = vrot.lane.b32.xlu0 %v10809_v55, %s10234_s19 }
0x1d75   :  { %3258 = vrot.lane.b32.xlu1 %v10811_v58, %s10234_s19 }
0x1ddc   :  { %v2962_v40 = vpop.xlane.xlu1 %2961 }
0x1ddd   :  { %v2959_v62 = vpop.xlane.xlu0 %2958 }
0x1dde   :  { %10040 = vrcp.f32 %v2959_v62 }
0x1ddf   :  { %10042 = vrcp.f32 %v2962_v40 }
0x1de5   :  { %v3163_v63 = vpop.xlane.xlu0 %3162 }
0x1de6   :  { %10044 = vrcp.f32 %v3163_v63 }
0x1de8   :  { %v10041_v0 = vpop.eup %10040 }
0x1de9   :  { %v3166_v49 = vpop.xlane.xlu1 %3165  ;;  %v9802_v1 = vpop.permute.xlu0 %9801  ;;  %v2964_v2 = vmul.f32 %v10041_v0, %v10035_v53 }
0x1dea   :  { %10046 = vrcp.f32 %v3166_v49  ;;  %v9804_v52 = vunpack.i.h.bf16 %v9802_v1  ;;  %v9803_v27 = vunpack.i.l.bf16 %v9802_v1  ;;  %v10043_v25 = vpop.eup %10042 }
0x1deb   :  { %8791 = vmatprep.mubr.msk.f32.mxu0 %vm273_vm3, %v2964_v2  ;;  %v2966_v7 = vmul.f32 %v10043_v25, %v10033_v51 }
0x1dec   :  { %v9372_v3 = vpack.c.bf16 %v9804_v52, %v9803_v27 }
0x1ded   :  { %v9807_v4 = vpop.permute.xlu1 %9806  ;;  %v3261_v28 = vpop.permute.xlu0 %3260 }
0x1dee   :  { %v9809_v5 = vunpack.i.h.bf16 %v9807_v4  ;;  %v9808_v6 = vunpack.i.l.bf16 %v9807_v4  ;;  %9373 = vmatprep.subr.bf16.mxu0 %v9372_v3 }
0x1def   :  { %9375 = vmatpush3.bf16.msra.mxu0 %v9372_v3 }
0x1df0   :  { %v10045_v38 = vpop.eup %10044  ;;  %v9382_v12 = vpack.c.bf16 %v9809_v5, %v9808_v6 }
0x1df1   :  { %v9812_v13 = vpop.permute.xlu1 %9811  ;;  %v3168_v14 = vmul.f32 %v10045_v38, %v10037_v35 }
0x1df2   :  { %v9814_v22 = vunpack.i.h.bf16 %v9812_v13  ;;  %v9813_v17 = vunpack.i.l.bf16 %v9812_v13  ;;  %8792 = vmatmul.mubr.msk.f32.vlgmr.msra.gmra.mrb[32].mxu0 %vm273_vm3, %v2966_v7  ;;  %9383 = vmatprep.subr.bf16.mxu0 %v9382_v12 }
0x1df3   :  { %9385 = vmatpush3.bf16.msra.mxu0 %v9382_v12  ;;  %8805 = vmatprep.mubr.msk.f32.mxu0 %vm273_vm3, %v3168_v14 }
0x1df4   :  { %v10047_v18 = vpop.eup %10046  ;;  %v9386_v23 = vpack.c.bf16 %v9814_v22, %v9813_v17 }
0x1df5   :  { %v3170_v24 = vmul.f32 %v10047_v18, %v10039_v60  ;;  %v3259_v26 = vpop.permute.xlu1 %3258 }
0x1df6   :  { %9388 = vmatprep.subr.msk.bf16.mxu0 %vm10358_vm2, %v9386_v23 }
0x1df7   :  { %8806 = vmatmul.mubr.msk.f32.vlgmr.msra.gmra.mrb[34].mxu0 %vm273_vm3, %v3170_v24 }
0x1df8   :  { %8812 = vmatprep.mubr.msk.f32.mxu0 %vm185_vm1, %v3259_v26 }
0x1dfc   :  { %9391 = vmatpush3.bf16.xpose.msk.msra.mxu0 %vm10358_vm2, %v9386_v23 }
0x1e03   :  { %8813 = vmatmul.mubr.msk.f32.vlgmr.msra.gmra.mrb[36].mxu0 %vm185_vm1, %v3261_v28 }
0x1ec5   :  { %v10887_v29 = vpop.f32.mrb[32].mxu0 }
0x1ec6   :  { %v10889_v19 = vpop.f32.mrb[33].mxu0 }
0x1eca   :  { %v10891_v30 = vpop.f32.mrb[34].mxu0 }
0x1ecb   :  { %v10893_v31 = vpop.f32.mrb[35].mxu0 }
0x1ed6   :  { %v8814_v32 = vpop.f32.mrb[36].mxu0 }
0x1ed7   :  { %v3350_v34 = vmul.f32 0.35355338, %v8814_v32  ;;  %v3340_v36 = vpop.f32.mrb[37].mxu0 }
0x1ed8   :  { %v3349_v37 = vmul.f32 0.35355338, %v3340_v36 }
0x1ed9   :  { %v3352_v39 = vadd.f32 %v3350_v34, %v10848_v11 }
0x1eda   :  { %v3351_v42 = vadd.f32 %v3349_v37, %v10853_v15 }
0x1edb   :  { %v3356_v43 = vsel %vm273_vm3, %v3352_v39, -inf }
0x1edc   :  { %3357 = vmax.xlane.f32.xlu0 %v3356_v43  ;;  %v3353_v44 = vsel %vm273_vm3, %v3351_v42, -inf }
0x1edd   :  { %3354 = vmax.xlane.f32.xlu1 %v3353_v44 }
0x1eee   :  { %9816 = vrot.lane.b32.xlu1 %v10817_v59, %s10238_s23 }
0x1ef2   :  { %3462 = vrot.lane.b32.xlu1 %v10811_v58, %s10235_s20 }
0x1ef6   :  { %3464 = vrot.lane.b32.xlu1 %v10809_v55, %s10235_s20 }
0x1f69   :  { %v3358_v46 = vpop.xlane.xlu0 %3357 }
0x1f6a   :  { %v3360_v20 = vsub.f32 %v3352_v39, %v3358_v46  ;;  %v3355_v48 = vpop.xlane.xlu1 %3354 }
0x1f6b   :  { %v3359_v33 = vsub.f32 %v3351_v42, %v3355_v48  ;;  %v7970_v48 = vld [vmem:[%s11785_s6 + $0x40] sm:$0xff] }
0x1f6c   :  { %v3363_v50 = vmul.f32 1.442695, %v3360_v20 }
0x1f6d   :  { %v3361_v51 = vmul.f32 1.442695, %v3359_v33  ;;  %v7972_v33 = vld [vmem:[%s11785_s6 + $0x50] sm:$0xff] }
0x1f6e   :  { %10048 = vpow2.f32 %v3363_v50  ;;  %v9817_v53 = vpop.permute.xlu1 %9816 }
0x1f6f   :  { %v9819_v54 = vunpack.i.h.bf16 %v9817_v53  ;;  %v9818_v56 = vunpack.i.l.bf16 %v9817_v53  ;;  %10050 = vpow2.f32 %v3361_v51  ;;  %v7973_v51 = vld [vmem:[%s11785_s6 + $0x58] sm:$0xff] }
0x1f70   :  { %v9410_v53 = vpack.c.bf16 %v7973_v51, %v7972_v33 }
0x1f71   :  { %v9392_v57 = vpack.c.bf16 %v9819_v54, %v9818_v56 }
0x1f72   :  { %v3463_v27 = vpop.permute.xlu1 %3462 }
0x1f73   :  { %9393 = vmatprep.subr.bf16.mxu1 %v9392_v57 }
0x1f74   :  { %9395 = vmatpush3.bf16.msra.mxu1 %v9392_v57  ;;  %v7959_v57 = vld [vmem:[%s11783_s4 + $0x12] ss:$0 sm:$0xff] }
0x1f76   :  { %v3465_v3 = vpop.permute.xlu1 %3464 }
0x1f78   :  { %v10049_v35 = vpop.eup %10048 }
0x1f79   :  { %v3368_v58 = vsel %vm273_vm3, %v10049_v35, 0.0  ;;  %v10051_v41 = vpop.eup %10050 }
0x1f7a   :  { %3369 = vadd.xlane.f32.xlu0 %v3368_v58  ;;  %v3365_v55 = vsel %vm273_vm3, %v10051_v41, 0.0  ;;  %v2668_v58 = vadd.f32 %v10841_v8, %v7959_v57 }
0x1f7e   :  { %3366 = vadd.xlane.f32.xlu0 %v3365_v55  ;;  %v2672_v55 = vadd.f32 %v2668_v58, %v10762_v10 }
0x1f94   :  { %9821 = vrot.lane.b32.xlu0 %v10817_v59, %s10233_s18 }
0x2007   :  { %v3370_v60 = vpop.xlane.xlu0 %3369 }
0x2008   :  { %10052 = vrcp.f32 %v3370_v60 }
0x200b   :  { %v3367_v61 = vpop.xlane.xlu0 %3366 }
0x200c   :  { %10054 = vrcp.f32 %v3367_v61  ;;  %v2678_v61 = vsel %vm44_vm0, %v2672_v55, 0.0 }
0x200f   :  { %v9822_v62 = vpop.permute.xlu0 %9821 }
0x2010   :  { %v9824_v40 = vunpack.i.h.bf16 %v9822_v62  ;;  %v9823_v63 = vunpack.i.l.bf16 %v9822_v62 }
0x2012   :  { %v9396_v0 = vpack.c.bf16 %v9824_v40, %v9823_v63  ;;  %v10053_v49 = vpop.eup %10052 }
0x2013   :  { %v3374_v52 = vmul.f32 %v10053_v49, %v10049_v35  ;;  %v2663_v35 = vadd.f32 %v7959_v57, %v10843_v9 }
0x2014   :  { %9398 = vmatprep.subr.msk.bf16.mxu1 %vm10358_vm2, %v9396_v0 }
0x2016   :  { %v10055_v1 = vpop.eup %10054 }
0x2017   :  { %v3372_v2 = vmul.f32 %v10055_v1, %v10051_v41  ;;  %v2671_v41 = vadd.f32 %v2663_v35, %v10760_v47 }
0x2019   :  { %8819 = vmatprep.mubr.msk.f32.mxu1 %vm273_vm3, %v3372_v2  ;;  %v2675_v60 = vsel %vm44_vm0, %v2671_v41, 0.0 }
0x201a   :  { %8820 = vmatmul.mubr.msk.f32.vlgmr.msra.gmra.mrb[22].mxu1 %vm273_vm3, %v3374_v52 }
0x201b   :  { %9401 = vmatpush3.bf16.xpose.msk.msra.mxu1 %vm10358_vm2, %v9396_v0  ;;  %8826 = vmatprep.mubr.msk.f32.mxu1 %vm185_vm1, %v3463_v27 }
0x2022   :  { %8827 = vmatmul.mubr.msk.f32.vlgmr.msra.gmra.mrb[24].mxu1 %vm185_vm1, %v3465_v3 }
0x20ed   :  { %v8821_v25 = vpop.f32.mrb[22].mxu1 }
0x20ee   :  { %v3453_v4 = vpop.f32.mrb[23].mxu1 }
0x20f5   :  { %v8828_v5 = vpop.f32.mrb[24].mxu1 }
0x20f6   :  { %v3554_v6 = vmul.f32 0.35355338, %v8828_v5  ;;  %v3544_v38 = vpop.f32.mrb[25].mxu1  ;;  %v8001_v5 = vld [vmem:[%s11783_s4 + $0x16] ss:$0 sm:$0xff] }
0x20f7   :  { %v3553_v7 = vmul.f32 0.35355338, %v3544_v38 }
0x20f8   :  { %v3556_v12 = vadd.f32 %v3554_v6, %v10848_v11 }
0x20f9   :  { %v3555_v13 = vadd.f32 %v3553_v7, %v10853_v15 }
0x20fa   :  { %v3560_v14 = vsel %vm273_vm3, %v3556_v12, -inf }
0x20fb   :  { %3561 = vmax.xlane.f32.xlu0 %v3560_v14  ;;  %v3557_v22 = vsel %vm273_vm3, %v3555_v13, -inf }
0x20fc   :  { %3558 = vmax.xlane.f32.xlu1 %v3557_v22 }
0x210d   :  { %9826 = vrot.lane.b32.xlu1 %v10817_v59, %s10237_s22 }
0x2111   :  { %3670 = vrot.lane.b32.xlu1 %v10891_v30, %s10239_s24 }
0x2115   :  { %3676 = vrot.lane.b32.xlu1 %v3453_v4, %s10240_s16 }
0x2119   :  { %3678 = vrot.lane.b32.xlu1 %v8821_v25, %s10240_s16 }
0x2188   :  { %v3562_v17 = vpop.xlane.xlu0 %3561 }
0x2189   :  { %v3564_v11 = vsub.f32 %v3556_v12, %v3562_v17  ;;  %v3559_v18 = vpop.xlane.xlu1 %3558 }
0x218a   :  { %v3563_v15 = vsub.f32 %v3555_v13, %v3559_v18 }
0x218b   :  { %v3567_v23 = vmul.f32 1.442695, %v3564_v11 }
0x218c   :  { %v3565_v24 = vmul.f32 1.442695, %v3563_v15 }
0x218d   :  { %v9827_v26 = vpop.permute.xlu1 %9826 }
0x218e   :  { %10056 = vpow2.f32 %v3565_v24  ;;  %v9829_v28 = vunpack.i.h.bf16 %v9827_v26  ;;  %v9828_v32 = vunpack.i.l.bf16 %v9827_v26  ;;  %v3829_v24 = vld [vmem:[%s11786_s7] sm:$0xff] }
0x218f   :  { %10058 = vpow2.f32 %v3567_v23 }
0x2190   :  { %v9402_v34 = vpack.c.bf16 %v9829_v28, %v9828_v32  ;;  %v3832_v28 = vld [vmem:[%s11786_s7 + $0x18] sm:$0xff] }
0x2191   :  { %v3671_v62 = vpop.permute.xlu1 %3670 }
0x2192   :  { %9403 = vmatprep.subr.bf16.mxu0 %v9402_v34  ;;  %v3691_v8 = vsel %vm185_vm1, %v10887_v29, %v3671_v62  ;;  %v8006_v62 = vld [vmem:[%s11785_s6 + $0x80] sm:$0xff] }
0x2193   :  { %9405 = vmatpush3.bf16.msra.mxu0 %v9402_v34 }
0x2195   :  { %v3677_v40 = vpop.permute.xlu1 %3676 }
0x2198   :  { %v10057_v59 = vpop.eup %10056 }
0x2199   :  { %v3569_v30 = vsel %vm273_vm3, %v10057_v59, 0.0  ;;  %v10059_v36 = vpop.eup %10058  ;;  %v3679_v0 = vpop.permute.xlu1 %3678 }
0x219a   :  { %3570 = vadd.xlane.f32.xlu0 %v3569_v30  ;;  %v3572_v37 = vsel %vm273_vm3, %v10059_v36, 0.0  ;;  %v3693_v1 = vsel %vm273_vm3, %v3691_v8, %v3679_v0 }
0x219e   :  { %3573 = vadd.xlane.f32.xlu0 %v3572_v37 }
0x21b4   :  { %3668 = vrot.lane.b32.xlu0 %v10893_v31, %s10239_s24  ;;  %v7971_v31 = vld [vmem:[%s11785_s6 + $0x48] sm:$0xff] }
0x21b5   :  { %v9406_v50 = vpack.c.bf16 %v7971_v31, %v7970_v48 }
0x21b7   :  { %9407 = vmatprep.subr.bf16.mxu0 %v9406_v50 }
0x2227   :  { %v3571_v39 = vpop.xlane.xlu0 %3570 }
0x2228   :  { %10060 = vrcp.f32 %v3571_v39 }
0x222b   :  { %v3574_v42 = vpop.xlane.xlu0 %3573 }
0x222c   :  { %10062 = vrcp.f32 %v3574_v42 }
0x222f   :  { %v3669_v63 = vpop.permute.xlu0 %3668 }
0x2230   :  { %v3690_v49 = vsel %vm185_vm1, %v10889_v19, %v3669_v63  ;;  %v8008_v63 = vld [vmem:[%s11785_s6 + $0x90] sm:$0xff] }
0x2231   :  { %v3692_v47 = vsel %vm273_vm3, %v3690_v49, %v3677_v40  ;;  %v8007_v40 = vld [vmem:[%s11785_s6 + $0x88] sm:$0xff]  ;;  %v8009_v49 = vld [vmem:[%s11785_s6 + $0x98] sm:$0xff] }
0x2232   :  { %v10061_v43 = vpop.eup %10060  ;;  %v9414_v0 = vpack.c.bf16 %v8007_v40, %v8006_v62 }
0x2233   :  { %v3576_v44 = vmul.f32 %v10061_v43, %v10057_v59 }
0x2234   :  { %9415 = vmatprep.subr.bf16.mxu1 %v9414_v0 }
0x2235   :  { %8833 = vmatprep.mubr.msk.f32.mxu0 %vm273_vm3, %v3576_v44  ;;  %9417 = vmatpush3.bf16.msra.mxu1 %v9414_v0 }
0x2236   :  { %v10063_v46 = vpop.eup %10062 }
0x2237   :  { %v3578_v20 = vmul.f32 %v10063_v46, %v10059_v36 }
0x2239   :  { %8834 = vmatmul.mubr.msk.f32.vlgmr.msra.gmra.mrb[38].mxu0 %vm273_vm3, %v3578_v20 }
0x223a   :  { %9409 = vmatpush3.bf16.msra.mxu0 %v9406_v50 }
0x223b   :  { %9411 = vmatprep.subr.bf16.mxu0 %v9410_v53 }
0x223e   :  { %9413 = vmatpush3.bf16.msra.mxu0 %v9410_v53 }
0x230c   :  { %v8835_v54 = vpop.f32.mrb[38].mxu0 }
0x230d   :  { %3686 = vrot.lane.b32.xlu1 %v8835_v54, %s11794_s25  ;;  %v3657_v56 = vpop.f32.mrb[39].mxu0 }
0x230e   :  { %3684 = vrot.lane.b32.xlu0 %v3657_v56, %s11794_s25  ;;  %v7962_v56 = vld [vmem:[%s11783_s4 + $0x13] ss:$0 sm:$0xff] }
0x232d   :  { %2676 = vadd.xlane.f32.xlu0 %v2675_v60 }
0x2331   :  { %2679 = vadd.xlane.f32.xlu1 %v2678_v61 }
0x237f   :  { %v3687_v9 = vpop.permute.xlu1 %3686 }
0x2380   :  { %v3685_v10 = vpop.permute.xlu0 %3684  ;;  %v3695_v52 = vsel %vm1023_vm4, %v3693_v1, %v3687_v9  ;;  %v9418_v9 = vpack.c.bf16 %v8009_v49, %v8008_v63 }
0x2381   :  { %v3694_v2 = vsel %vm1023_vm4, %v3692_v47, %v3685_v10 }
0x2382   :  { %8844 = vmatprep.mubr.msk.f32.mxu0 %vm44_vm0, %v3694_v2  ;;  %9419 = vmatprep.subr.bf16.mxu1 %v9418_v9 }
0x2383   :  { %8845 = vmatmul.mubr.msk.f32.vlgmr.msra.gmra.mrb[40].mxu0 %vm44_vm0, %v3695_v52  ;;  %9421 = vmatpush3.bf16.msra.mxu1 %v9418_v9 }
0x23ba   :  { %v2677_v29 = vpop.xlane.xlu0 %2676 }
0x23bb   :  { %v2681_v7 = vmul.f32 0.03125, %v2677_v29 }
0x23bd   :  { %v2683_v22 = vsub.f32 %v2671_v41, %v2681_v7  ;;  %v7963_v41 = vld [vmem:[%s11783_s4 + $0x14] ss:$0 sm:$0xff] }
0x23be   :  { %v2680_v27 = vpop.xlane.xlu1 %2679 }
0x23bf   :  { %v2682_v3 = vmul.f32 0.03125, %v2680_v27  ;;  %v2685_v15 = vmul.f32 %v2683_v22, %v2683_v22 }
0x23c1   :  { %v2684_v19 = vsub.f32 %v2672_v55, %v2682_v3  ;;  %v2687_v23 = vsel %vm44_vm0, %v2685_v15, 0.0  ;;  %v8004_v3 = vld [vmem:[%s11783_s4 + $0x17] ss:$0 sm:$0xff] }
0x23c3   :  { %v2686_v25 = vmul.f32 %v2684_v19, %v2684_v19 }
0x23c5   :  { %v2690_v4 = vsel %vm44_vm0, %v2686_v25, 0.0  ;;  %v8005_v25 = vld [vmem:[%s11783_s4 + $0x18] ss:$0 sm:$0xff] }
0x23c6   :  { %2691 = vadd.xlane.f32.xlu1 %v2690_v4 }
0x2453   :  { %v2692_v34 = vpop.xlane.xlu1 %2691 }
0x2454   :  { %v2694_v59 = vmul.f32 0.03125, %v2692_v34 }
0x2456   :  { %v8846_v6 = vpop.f32.mrb[40].mxu0  ;;  %v2696_v39 = vadd.f32 1e-05, %v2694_v59 }
0x2457   :  { %v3772_v38 = vpop.f32.mrb[41].mxu0  ;;  %v3778_v12 = vadd.f32 %v8846_v6, %v8001_v5 }
0x2458   :  { %v3773_v13 = vadd.f32 %v8001_v5, %v3772_v38  ;;  %10064 = vrsqrt.f32 %v2696_v39 }
0x2459   :  { %v3782_v17 = vadd.f32 %v3778_v12, %v10775_v21  ;;  %v3831_v21 = vld [vmem:[%s11786_s7 + $0x10] sm:$0xff]  ;;  %v8017_v12 = vld [vmem:[%s11783_s4 + $0x1a] ss:$0 sm:$0xff] }
0x245a   :  { %v3781_v14 = vadd.f32 %v3773_v13, %v10771_v16  ;;  %v3830_v16 = vld [vmem:[%s11786_s7 + $0x8] sm:$0xff]  ;;  %v9426_v32 = vpack.c.bf16 %v3832_v28, %v3831_v21  ;;  %v8014_v21 = vld [vmem:[%s11783_s4 + $0x19] ss:$0 sm:$0xff] }
0x245b   :  { %v3788_v18 = vsel %vm44_vm0, %v3782_v17, 0.0  ;;  %v9422_v26 = vpack.c.bf16 %v3830_v16, %v3829_v24 }
0x245c   :  { %v3785_v11 = vsel %vm44_vm0, %v3781_v14, 0.0 }
0x245d   :  { %3786 = vadd.xlane.f32.xlu0 %v3785_v11  ;;  %9423 = vmatprep.subr.bf16.mxu0 %v9422_v26 }
0x245e   :  { %9425 = vmatpush3.bf16.msra.mxu0 %v9422_v26 }
0x245f   :  { %9427 = vmatprep.subr.bf16.mxu0 %v9426_v32 }
0x2461   :  { %3789 = vadd.xlane.f32.xlu0 %v3788_v18 }
0x2462   :  { %9429 = vmatpush3.bf16.msra.mxu0 %v9426_v32  ;;  %v10065_v53 = vpop.eup %10064 }
0x2463   :  { %v2700_v54 = vmul.f32 %v10065_v53, %v2684_v19 }
0x2465   :  { %2688 = vadd.xlane.f32.xlu0 %v2687_v23  ;;  %v2706_v58 = vmul.f32 %v7962_v56, %v2700_v54 }
0x2467   :  { %v10997_v61 = vadd.f32 %v7963_v41, %v2706_v58 }
0x24ea   :  { %v3787_v30 = vpop.xlane.xlu0 %3786 }
0x24eb   :  { %v3791_v36 = vmul.f32 0.03125, %v3787_v30 }
0x24ed   :  { %v3793_v37 = vsub.f32 %v3781_v14, %v3791_v36 }
0x24ee   :  { %v3790_v42 = vpop.xlane.xlu0 %3789 }
0x24ef   :  { %v3792_v43 = vmul.f32 0.03125, %v3790_v42  ;;  %v3795_v44 = vmul.f32 %v3793_v37, %v3793_v37 }
0x24f1   :  { %v3794_v46 = vsub.f32 %v3782_v17, %v3792_v43  ;;  %v3797_v20 = vsel %vm44_vm0, %v3795_v44, 0.0  ;;  %v11064_v43 = vld [vmem:[%s11781_s2 + $0x8] sm:$0xff] }
0x24f2   :  { %3798 = vadd.xlane.f32.xlu0 %v3797_v20  ;;  %v2689_v48 = vpop.xlane.xlu0 %2688 }
0x24f3   :  { %v2693_v31 = vmul.f32 0.03125, %v2689_v48  ;;  %v3796_v33 = vmul.f32 %v3794_v46, %v3794_v46 }
0x24f5   :  { %v2695_v50 = vadd.f32 1e-05, %v2693_v31  ;;  %v3800_v51 = vsel %vm44_vm0, %v3796_v33, 0.0 }
0x24f6   :  { %3801 = vadd.xlane.f32.xlu1 %v3800_v51 }
0x24f7   :  { %10066 = vrsqrt.f32 %v2695_v50 }
0x2501   :  { %v10067_v57 = vpop.eup %10066 }
0x2502   :  { %v2699_v35 = vmul.f32 %v10067_v57, %v2683_v22 }
0x2504   :  { %v2705_v55 = vmul.f32 %v7962_v56, %v2699_v35 }
0x2506   :  { %v10995_v60 = vadd.f32 %v7963_v41, %v2705_v55 }
0x2508   :  { %8866 = vmatprep.mubr.msk.f32.mxu0 %vm44_vm0, %v10995_v60 }
0x2509   :  { %8867 = vmatmul.mubr.msk.f32.vlgmr.msra.gmra.mrb[42].mxu0 %vm44_vm0, %v10997_v61 }
0x257f   :  { %v3799_v8 = vpop.xlane.xlu0 %3798 }
0x2580   :  { %v3803_v47 = vmul.f32 0.03125, %v3799_v8 }
0x2582   :  { %v3805_v10 = vadd.f32 1e-05, %v3803_v47 }
0x2583   :  { %v3802_v1 = vpop.xlane.xlu1 %3801 }
0x2584   :  { %10068 = vrsqrt.f32 %v3805_v10  ;;  %v3804_v2 = vmul.f32 0.03125, %v3802_v1 }
0x2586   :  { %v3806_v52 = vadd.f32 1e-05, %v3804_v2 }
0x2588   :  { %10070 = vrsqrt.f32 %v3806_v52 }
0x258e   :  { %v10069_v27 = vpop.eup %10068 }
0x258f   :  { %v3809_v19 = vmul.f32 %v10069_v27, %v3793_v37 }
0x2591   :  { %v3815_v4 = vmul.f32 %v8004_v3, %v3809_v19 }
0x2592   :  { %v10071_v29 = vpop.eup %10070 }
0x2593   :  { %v3810_v5 = vmul.f32 %v10071_v29, %v3794_v46  ;;  %v11021_v6 = vadd.f32 %v8005_v25, %v3815_v4  ;;  %v11070_v46 = vld [vmem:[%s11781_s2] sm:$0xff] }
0x2595   :  { %v3816_v38 = vmul.f32 %v8004_v3, %v3810_v5  ;;  %8855 = vmatprep.mubr.msk.f32.mxu1 %vm44_vm0, %v11021_v6 }
0x2597   :  { %v11025_v7 = vadd.f32 %v8005_v25, %v3816_v38 }
0x2599   :  { %8856 = vmatmul.mubr.msk.f32.vlgmr.msra.gmra.mrb[26].mxu1 %vm44_vm0, %v11025_v7 }
0x25dc   :  { %v8868_v13 = vpop.f32.mrb[42].mxu0 }
0x25dd   :  { %v4007_v14 = vadd.f32 %v8868_v13, %v8017_v12  ;;  %v4001_v22 = vpop.f32.mrb[43].mxu0 }
0x25de   :  { %v4002_v17 = vadd.f32 %v8017_v12, %v4001_v22 }
0x25e0   :  { %v11032_v11 = vpack.i.bf16 %v4007_v14, %v4002_v17  ;;  %v9430_v18 = vpack.c.bf16 %v4007_v14, %v4002_v17 }
0x25e2   :  { %9831 = vrot.lane.b32.xlu0 %v11032_v11, %s10230_s12  ;;  %9432 = vmatprep.subr.msk.bf16.mxu1 %vm10358_vm2, %v9430_v18 }
0x25e3   :  { %9435 = vmatpush3.bf16.xpose.msk.msra.mxu1 %vm10358_vm2, %v9430_v18 }
0x2654   :  { %v9832_v15 = vpop.permute.xlu0 %9831 }
0x2655   :  { %v9834_v23 = vunpack.i.h.bf16 %v9832_v15  ;;  %v9833_v24 = vunpack.i.l.bf16 %v9832_v15 }
0x2657   :  { %v9440_v16 = vpack.c.bf16 %v9834_v23, %v9833_v24 }
0x2659   :  { %9442 = vmatprep.subr.msk.bf16.mxu1 %vm10358_vm2, %v9440_v16 }
0x266c   :  { %v8857_v26 = vpop.f32.mrb[26].mxu1 }
0x266d   :  { %v3916_v28 = vpop.f32.mrb[27].mxu1  ;;  %v11047_v34 = vadd.f32 %v8857_v26, %v8014_v21 }
0x266e   :  { %v11045_v32 = vadd.f32 %v8014_v21, %v3916_v28 }
0x2670   :  { %4210 = vrot.lane.b32.xlu1 %v11045_v32, %s10230_s12  ;;  %8873 = vmatprep.mubr.msk.f32.mxu1 %vm185_vm1, %v11045_v32 }
0x2671   :  { %8874 = vmatmul.mubr.msk.f32.vlgmr.msra.gmra.mrb[28].mxu1 %vm185_vm1, %v11047_v34 }
0x2672   :  { %9445 = vmatpush3.bf16.xpose.msk.msra.mxu1 %vm10358_vm2, %v9440_v16 }
0x2674   :  { %4212 = vrot.lane.b32.xlu1 %v11047_v34, %s10230_s12 }
0x26e2   :  { %v4211_v59 = vpop.permute.xlu1 %4210 }
0x26e3   :  { %8887 = vmatprep.mubr.msk.f32.mxu1 %vm185_vm1, %v4211_v59 }
0x26e6   :  { %v4213_v30 = vpop.permute.xlu1 %4212 }
0x26e7   :  { %8888 = vmatmul.mubr.msk.f32.vlgmr.msra.gmra.mrb[30].mxu1 %vm185_vm1, %v4213_v30 }
0x2744   :  { %v8875_v36 = vpop.f32.mrb[28].mxu1 }
0x2745   :  { %v4098_v37 = vmul.f32 0.35355338, %v8875_v36  ;;  %v4088_v39 = vpop.f32.mrb[29].mxu1 }
0x2746   :  { %v4097_v42 = vmul.f32 0.35355338, %v4088_v39 }
0x2747   :  { %v4100_v44 = vadd.f32 %v11064_v43, %v4098_v37 }
0x2748   :  { %v4099_v20 = vadd.f32 %v11070_v46, %v4097_v42 }
0x2749   :  { %v4104_v48 = vsel %vm273_vm3, %v4100_v44, -inf }
0x274a   :  { %4105 = vmax.xlane.f32.xlu0 %v4104_v48  ;;  %v4101_v31 = vsel %vm273_vm3, %v4099_v20, -inf }
0x274b   :  { %4102 = vmax.xlane.f32.xlu1 %v4101_v31 }
0x275c   :  { %9836 = vrot.lane.b32.xlu1 %v11032_v11, %s10228_s30 }
0x27ba   :  { %v8889_v33 = vpop.f32.mrb[30].mxu1 }
0x27bb   :  { %v4292_v50 = vpop.f32.mrb[31].mxu1  ;;  %v4302_v51 = vmul.f32 0.35355338, %v8889_v33 }
0x27bc   :  { %v4301_v53 = vmul.f32 0.35355338, %v4292_v50 }
0x27bd   :  { %v4304_v56 = vadd.f32 %v11064_v43, %v4302_v51 }
0x27be   :  { %v4303_v54 = vadd.f32 %v11070_v46, %v4301_v53 }
0x27bf   :  { %v4308_v35 = vsel %vm273_vm3, %v4304_v56, -inf }
0x27c0   :  { %v4305_v57 = vsel %vm273_vm3, %v4303_v54, -inf }
0x27c1   :  { %4306 = vmax.xlane.f32.xlu0 %v4305_v57 }
0x27c5   :  { %4309 = vmax.xlane.f32.xlu0 %v4308_v35 }
0x27d7   :  { %v4106_v58 = vpop.xlane.xlu0 %4105 }
0x27d8   :  { %v4108_v41 = vsub.f32 %v4100_v44, %v4106_v58  ;;  %v4103_v55 = vpop.xlane.xlu1 %4102 }
0x27d9   :  { %v4107_v62 = vsub.f32 %v4099_v20, %v4103_v55 }
0x27da   :  { %v4111_v40 = vmul.f32 1.442695, %v4108_v41 }
0x27db   :  { %v4109_v63 = vmul.f32 1.442695, %v4107_v62 }
0x27dc   :  { %10072 = vpow2.f32 %v4111_v40  ;;  %v9837_v0 = vpop.permute.xlu1 %9836 }
0x27dd   :  { %10074 = vpow2.f32 %v4109_v63  ;;  %v9839_v49 = vunpack.i.h.bf16 %v9837_v0  ;;  %v9838_v9 = vunpack.i.l.bf16 %v9837_v0 }
0x27df   :  { %v9436_v8 = vpack.c.bf16 %v9839_v49, %v9838_v9 }
0x27e1   :  { %9437 = vmatprep.subr.bf16.mxu0 %v9436_v8 }
0x27e2   :  { %9439 = vmatpush3.bf16.msra.mxu0 %v9436_v8 }
0x27e6   :  { %v10073_v47 = vpop.eup %10072 }
0x27e7   :  { %v10075_v10 = vpop.eup %10074  ;;  %v4116_v1 = vsel %vm273_vm3, %v10073_v47, 0.0 }
0x27e8   :  { %4117 = vadd.xlane.f32.xlu0 %v4116_v1  ;;  %v4113_v2 = vsel %vm273_vm3, %v10075_v10, 0.0 }
0x27e9   :  { %4114 = vadd.xlane.f32.xlu1 %v4113_v2 }
0x27fa   :  { %9846 = vrot.lane.b32.xlu1 %v11032_v11, %s10234_s19 }
0x27fe   :  { %4414 = vrot.lane.b32.xlu1 %v11045_v32, %s10234_s19 }
0x284e   :  { %v4307_v52 = vpop.xlane.xlu0 %4306 }
0x284f   :  { %v4311_v27 = vsub.f32 %v4303_v54, %v4307_v52 }
0x2851   :  { %v4313_v3 = vmul.f32 1.442695, %v4311_v27 }
0x2852   :  { %v4310_v19 = vpop.xlane.xlu0 %4309 }
0x2853   :  { %10076 = vpow2.f32 %v4313_v3  ;;  %v4312_v25 = vsub.f32 %v4304_v56, %v4310_v19 }
0x2855   :  { %v4315_v4 = vmul.f32 1.442695, %v4312_v25 }
0x2857   :  { %10078 = vpow2.f32 %v4315_v4 }
0x285d   :  { %v10077_v29 = vpop.eup %10076 }
0x285e   :  { %v4317_v5 = vsel %vm273_vm3, %v10077_v29, 0.0 }
0x285f   :  { %4318 = vadd.xlane.f32.xlu1 %v4317_v5 }
0x2861   :  { %v10079_v38 = vpop.eup %10078 }
0x2862   :  { %v4320_v12 = vsel %vm273_vm3, %v10079_v38, 0.0 }
0x2863   :  { %4321 = vadd.xlane.f32.xlu0 %v4320_v12 }
0x2870   :  { %4416 = vrot.lane.b32.xlu1 %v11047_v34, %s10234_s19 }
0x2875   :  { %v4118_v13 = vpop.xlane.xlu0 %4117 }
0x2876   :  { %10080 = vrcp.f32 %v4118_v13  ;;  %v4115_v14 = vpop.xlane.xlu1 %4114 }
0x2877   :  { %10082 = vrcp.f32 %v4115_v14 }
0x2879   :  { %9841 = vrot.lane.b32.xlu0 %v11032_v11, %s10229_s11 }
0x287a   :  { %v9847_v23 = vpop.permute.xlu1 %9846 }
0x287b   :  { %v9849_v28 = vunpack.i.h.bf16 %v9847_v23  ;;  %v9848_v59 = vunpack.i.l.bf16 %v9847_v23 }
0x287d   :  { %v9450_v44 = vpack.c.bf16 %v9849_v28, %v9848_v59 }
0x287e   :  { %v4415_v24 = vpop.permute.xlu1 %4414 }
0x2880   :  { %v10081_v22 = vpop.eup %10080 }
0x2881   :  { %v10083_v17 = vpop.eup %10082  ;;  %v4122_v15 = vmul.f32 %v10081_v22, %v10073_v47 }
0x2882   :  { %v4120_v18 = vmul.f32 %v10083_v17, %v10075_v10 }
0x2884   :  { %8880 = vmatprep.mubr.msk.f32.mxu0 %vm273_vm3, %v4120_v18 }
0x2885   :  { %8881 = vmatmul.mubr.msk.f32.vlgmr.msra.gmra.mrb[44].mxu0 %vm273_vm3, %v4122_v15 }
0x28ec   :  { %v4319_v16 = vpop.xlane.xlu1 %4318 }
0x28ed   :  { %10084 = vrcp.f32 %v4319_v16 }
0x28f0   :  { %v4322_v21 = vpop.xlane.xlu0 %4321  ;;  %v4417_v31 = vpop.permute.xlu1 %4416 }
0x28f1   :  { %10086 = vrcp.f32 %v4322_v21 }
0x28f4   :  { %v9842_v26 = vpop.permute.xlu0 %9841 }
0x28f5   :  { %v9844_v30 = vunpack.i.h.bf16 %v9842_v26  ;;  %v9843_v36 = vunpack.i.l.bf16 %v9842_v26 }
0x28f7   :  { %v10085_v37 = vpop.eup %10084  ;;  %v9446_v39 = vpack.c.bf16 %v9844_v30, %v9843_v36 }
0x28f8   :  { %v4324_v42 = vmul.f32 %v10085_v37, %v10077_v29 }
0x28f9   :  { %9447 = vmatprep.subr.bf16.mxu0 %v9446_v39 }
0x28fa   :  { %9449 = vmatpush3.bf16.msra.mxu0 %v9446_v39  ;;  %8894 = vmatprep.mubr.msk.f32.mxu0 %vm273_vm3, %v4324_v42 }
0x28fb   :  { %v10087_v20 = vpop.eup %10086  ;;  %9452 = vmatprep.subr.msk.bf16.mxu0 %vm10358_vm2, %v9450_v44 }
0x28fc   :  { %v4326_v48 = vmul.f32 %v10087_v20, %v10079_v38 }
0x28fe   :  { %8895 = vmatmul.mubr.msk.f32.vlgmr.msra.gmra.mrb[46].mxu0 %vm273_vm3, %v4326_v48 }
0x28ff   :  { %8901 = vmatprep.mubr.msk.f32.mxu0 %vm185_vm1, %v4415_v24 }
0x2903   :  { %9455 = vmatpush3.bf16.xpose.msk.msra.mxu0 %vm10358_vm2, %v9450_v44 }
0x290a   :  { %8902 = vmatmul.mubr.msk.f32.vlgmr.msra.gmra.mrb[48].mxu0 %vm185_vm1, %v4417_v31 }
0x2958   :  { %v11103_v33 = vpop.f32.mrb[44].mxu0 }
0x2959   :  { %v11105_v50 = vpop.f32.mrb[45].mxu0 }
0x29d1   :  { %v11107_v51 = vpop.f32.mrb[46].mxu0 }
0x29d2   :  { %v11109_v53 = vpop.f32.mrb[47].mxu0 }
0x29dd   :  { %v8903_v54 = vpop.f32.mrb[48].mxu0 }
0x29de   :  { %v4506_v56 = vmul.f32 0.35355338, %v8903_v54  ;;  %v4496_v57 = vpop.f32.mrb[49].mxu0 }
0x29df   :  { %v4505_v35 = vmul.f32 0.35355338, %v4496_v57 }
0x29e0   :  { %v4508_v58 = vadd.f32 %v11064_v43, %v4506_v56 }
0x29e1   :  { %v4507_v41 = vadd.f32 %v11070_v46, %v4505_v35 }
0x29e2   :  { %v4512_v55 = vsel %vm273_vm3, %v4508_v58, -inf }
0x29e3   :  { %4513 = vmax.xlane.f32.xlu1 %v4512_v55  ;;  %v4509_v62 = vsel %vm273_vm3, %v4507_v41, -inf }
0x29e4   :  { %4510 = vmax.xlane.f32.xlu0 %v4509_v62 }
0x29f4   :  { %9856 = vrot.lane.b32.xlu1 %v11032_v11, %s10235_s20 }
0x29f8   :  { %4618 = vrot.lane.b32.xlu1 %v11045_v32, %s10235_s20 }
0x29fc   :  { %4620 = vrot.lane.b32.xlu1 %v11047_v34, %s10235_s20 }
0x2a70   :  { %v4514_v40 = vpop.xlane.xlu1 %4513 }
0x2a71   :  { %v4516_v63 = vsub.f32 %v4508_v58, %v4514_v40  ;;  %v4511_v0 = vpop.xlane.xlu0 %4510  ;;  %v8011_v40 = vld [vmem:[%s11785_s6 + $0xc8] sm:$0xff] }
0x2a72   :  { %v4515_v49 = vsub.f32 %v4507_v41, %v4511_v0 }
0x2a73   :  { %v4519_v9 = vmul.f32 1.442695, %v4516_v63  ;;  %v8012_v63 = vld [vmem:[%s11785_s6 + $0xd0] sm:$0xff] }
0x2a74   :  { %v4517_v8 = vmul.f32 1.442695, %v4515_v49  ;;  %v9857_v52 = vpop.permute.xlu1 %9856  ;;  %v8013_v49 = vld [vmem:[%s11785_s6 + $0xd8] sm:$0xff] }
0x2a75   :  { %10088 = vpow2.f32 %v4519_v9  ;;  %v9859_v3 = vunpack.i.h.bf16 %v9857_v52  ;;  %v9858_v19 = vunpack.i.l.bf16 %v9857_v52  ;;  %v9474_v9 = vpack.c.bf16 %v8013_v49, %v8012_v63  ;;  %v8056_v49 = vld [vmem:[%s11787_s8 + $0x98] sm:$0xff] }
0x2a76   :  { %10090 = vpow2.f32 %v4517_v8 }
0x2a77   :  { %v9460_v5 = vpack.c.bf16 %v9859_v3, %v9858_v19 }
0x2a78   :  { %v4619_v22 = vpop.permute.xlu1 %4618 }
0x2a7c   :  { %v4621_v17 = vpop.permute.xlu1 %4620 }
0x2a7f   :  { %v10089_v47 = vpop.eup %10088 }
0x2a80   :  { %v4524_v10 = vsel %vm273_vm3, %v10089_v47, 0.0  ;;  %v10091_v1 = vpop.eup %10090 }
0x2a81   :  { %4525 = vadd.xlane.f32.xlu0 %v4524_v10  ;;  %v4521_v2 = vsel %vm273_vm3, %v10091_v1, 0.0 }
0x2a85   :  { %4522 = vadd.xlane.f32.xlu0 %v4521_v2 }
0x2a9b   :  { %9851 = vrot.lane.b32.xlu0 %v11032_v11, %s10236_s21 }
0x2b0e   :  { %v4526_v32 = vpop.xlane.xlu0 %4525 }
0x2b0f   :  { %10092 = vrcp.f32 %v4526_v32 }
0x2b12   :  { %v4523_v34 = vpop.xlane.xlu0 %4522 }
0x2b13   :  { %10094 = vrcp.f32 %v4523_v34 }
0x2b16   :  { %v9852_v27 = vpop.permute.xlu0 %9851 }
0x2b17   :  { %v9854_v25 = vunpack.i.h.bf16 %v9852_v27  ;;  %v9853_v4 = vunpack.i.l.bf16 %v9852_v27 }
0x2b19   :  { %v9456_v29 = vpack.c.bf16 %v9854_v25, %v9853_v4  ;;  %v10093_v38 = vpop.eup %10092 }
0x2b1a   :  { %v4530_v14 = vmul.f32 %v10093_v38, %v10089_v47 }
0x2b1b   :  { %9457 = vmatprep.subr.bf16.mxu1 %v9456_v29 }
0x2b1c   :  { %9459 = vmatpush3.bf16.msra.mxu1 %v9456_v29 }
0x2b1d   :  { %v10095_v12 = vpop.eup %10094  ;;  %9462 = vmatprep.subr.msk.bf16.mxu1 %vm10358_vm2, %v9460_v5 }
0x2b1e   :  { %v4528_v13 = vmul.f32 %v10095_v12, %v10091_v1 }
0x2b20   :  { %8908 = vmatprep.mubr.msk.f32.mxu1 %vm273_vm3, %v4528_v13 }
0x2b21   :  { %8909 = vmatmul.mubr.msk.f32.vlgmr.msra.gmra.mrb[32].mxu1 %vm273_vm3, %v4530_v14 }
0x2b22   :  { %8915 = vmatprep.mubr.msk.f32.mxu1 %vm185_vm1, %v4619_v22 }
0x2b25   :  { %9465 = vmatpush3.bf16.xpose.msk.msra.mxu1 %vm10358_vm2, %v9460_v5 }
0x2b2c   :  { %8916 = vmatmul.mubr.msk.f32.vlgmr.msra.gmra.mrb[34].mxu1 %vm185_vm1, %v4621_v17 }
0x2bf4   :  { %v8910_v18 = vpop.f32.mrb[32].mxu1 }
0x2bf5   :  { %v4609_v15 = vpop.f32.mrb[33].mxu1 }
0x2bff   :  { %v8917_v23 = vpop.f32.mrb[34].mxu1 }
0x2c00   :  { %v4710_v24 = vmul.f32 0.35355338, %v8917_v23  ;;  %v4700_v16 = vpop.f32.mrb[35].mxu1 }
0x2c01   :  { %v4709_v21 = vmul.f32 0.35355338, %v4700_v16 }
0x2c02   :  { %v4712_v26 = vadd.f32 %v11064_v43, %v4710_v24 }
0x2c03   :  { %v4711_v28 = vadd.f32 %v11070_v46, %v4709_v21 }
0x2c04   :  { %v4716_v59 = vsel %vm273_vm3, %v4712_v26, -inf }
0x2c05   :  { %4717 = vmax.xlane.f32.xlu1 %v4716_v59  ;;  %v4713_v30 = vsel %vm273_vm3, %v4711_v28, -inf }
0x2c06   :  { %4714 = vmax.xlane.f32.xlu0 %v4713_v30  ;;  %v8050_v30 = vld [vmem:[%s11786_s7 + $0x88] sm:$0xff] }
0x2c16   :  { %4824 = vrot.lane.b32.xlu1 %v11109_v53, %s10239_s24 }
0x2c1a   :  { %4826 = vrot.lane.b32.xlu1 %v11107_v51, %s10239_s24 }
0x2c1e   :  { %4832 = vrot.lane.b32.xlu1 %v4609_v15, %s10240_s16 }
0x2c92   :  { %v4718_v36 = vpop.xlane.xlu1 %4717 }
0x2c93   :  { %v4720_v37 = vsub.f32 %v4712_v26, %v4718_v36  ;;  %v4715_v39 = vpop.xlane.xlu0 %4714 }
0x2c94   :  { %v4719_v43 = vsub.f32 %v4711_v28, %v4715_v39  ;;  %v8052_v39 = vld [vmem:[%s11786_s7 + $0x98] sm:$0xff] }
0x2c95   :  { %v4723_v42 = vmul.f32 1.442695, %v4720_v37  ;;  %v8051_v37 = vld [vmem:[%s11786_s7 + $0x90] sm:$0xff] }
0x2c96   :  { %v4721_v46 = vmul.f32 1.442695, %v4719_v43  ;;  %v4825_v10 = vpop.permute.xlu1 %4824  ;;  %v9482_v43 = vpack.c.bf16 %v8052_v39, %v8051_v37 }
0x2c97   :  { %10096 = vpow2.f32 %v4723_v42  ;;  %v4846_v34 = vsel %vm185_vm1, %v11105_v50, %v4825_v10  ;;  %v8044_v50 = vld [vmem:[%s11783_s4 + $0x1b] ss:$0 sm:$0xff] }
0x2c98   :  { %10098 = vpow2.f32 %v4721_v46 }
0x2c9a   :  { %v4827_v1 = vpop.permute.xlu1 %4826 }
0x2c9b   :  { %v4847_v27 = vsel %vm185_vm1, %v11103_v33, %v4827_v1  ;;  %v8059_v1 = vld [vmem:[%s11787_s8 + $0xb0] sm:$0xff] }
0x2c9e   :  { %v4833_v32 = vpop.permute.xlu1 %4832 }
0x2c9f   :  { %v4848_v3 = vsel %vm273_vm3, %v4846_v34, %v4833_v32  ;;  %v8061_v34 = vld [vmem:[%s11783_s4 + $0x1e] ss:$0 sm:$0xff] }
0x2ca1   :  { %v10097_v44 = vpop.eup %10096 }
0x2ca2   :  { %v4728_v20 = vsel %vm273_vm3, %v10097_v44, 0.0  ;;  %v10099_v48 = vpop.eup %10098 }
0x2ca3   :  { %4729 = vadd.xlane.f32.xlu0 %v4728_v20  ;;  %v4725_v31 = vsel %vm273_vm3, %v10099_v48, 0.0 }
0x2ca7   :  { %4726 = vadd.xlane.f32.xlu0 %v4725_v31 }
0x2cbd   :  { %9861 = vrot.lane.b32.xlu0 %v11032_v11, %s10233_s18  ;;  %v8010_v11 = vld [vmem:[%s11785_s6 + $0xc0] sm:$0xff] }
0x2cbe   :  { %v9470_v0 = vpack.c.bf16 %v8011_v40, %v8010_v11  ;;  %v8053_v11 = vld [vmem:[%s11787_s8 + $0x80] sm:$0xff]  ;;  %v8054_v40 = vld [vmem:[%s11787_s8 + $0x88] sm:$0xff] }
0x2cbf   :  { %v9486_v63 = vpack.c.bf16 %v8054_v40, %v8053_v11 }
0x2cc1   :  { %4834 = vrot.lane.b32.xlu0 %v8910_v18, %s10240_s16 }
0x2d30   :  { %v4730_v51 = vpop.xlane.xlu0 %4729 }
0x2d31   :  { %10100 = vrcp.f32 %v4730_v51 }
0x2d34   :  { %v4727_v53 = vpop.xlane.xlu0 %4726 }
0x2d35   :  { %10102 = vrcp.f32 %v4727_v53  ;;  %v8047_v53 = vld [vmem:[%s11783_s4 + $0x1c] ss:$0 sm:$0xff] }
0x2d38   :  { %v9862_v54 = vpop.permute.xlu0 %9861 }
0x2d39   :  { %v9864_v56 = vunpack.i.h.bf16 %v9862_v54  ;;  %v9863_v57 = vunpack.i.l.bf16 %v9862_v54 }
0x2d3b   :  { %v9466_v35 = vpack.c.bf16 %v9864_v56, %v9863_v57  ;;  %v10101_v58 = vpop.eup %10100  ;;  %v8048_v56 = vld [vmem:[%s11783_s4 + $0x1d] ss:$0 sm:$0xff] }
0x2d3c   :  { %v4734_v62 = vmul.f32 %v10101_v58, %v10097_v44  ;;  %v4835_v2 = vpop.permute.xlu0 %4834 }
0x2d3d   :  { %9467 = vmatprep.subr.bf16.mxu0 %v9466_v35  ;;  %v4849_v25 = vsel %vm273_vm3, %v4847_v27, %v4835_v2  ;;  %v8060_v2 = vld [vmem:[%s11787_s8 + $0xb8] sm:$0xff] }
0x2d3e   :  { %9469 = vmatpush3.bf16.msra.mxu0 %v9466_v35  ;;  %v9498_v32 = vpack.c.bf16 %v8060_v2, %v8059_v1  ;;  %v8068_v2 = vld [vmem:[%s11783_s4 + $0x21] ss:$0 sm:$0xff] }
0x2d3f   :  { %v10103_v41 = vpop.eup %10102  ;;  %9471 = vmatprep.subr.bf16.mxu0 %v9470_v0 }
0x2d40   :  { %v4732_v55 = vmul.f32 %v10103_v41, %v10099_v48 }
0x2d42   :  { %8922 = vmatprep.mubr.msk.f32.mxu0 %vm273_vm3, %v4732_v55 }
0x2d43   :  { %8923 = vmatmul.mubr.msk.f32.vlgmr.msra.gmra.mrb[50].mxu0 %vm273_vm3, %v4734_v62 }
0x2d44   :  { %9473 = vmatpush3.bf16.msra.mxu0 %v9470_v0  ;;  %v8055_v0 = vld [vmem:[%s11787_s8 + $0x90] sm:$0xff] }
0x2d45   :  { %9475 = vmatprep.subr.bf16.mxu0 %v9474_v9 }
0x2d48   :  { %9477 = vmatpush3.bf16.msra.mxu0 %v9474_v9  ;;  %v9490_v9 = vpack.c.bf16 %v8056_v49, %v8055_v0 }
0x2d49   :  { %9487 = vmatprep.subr.bf16.mxu0 %v9486_v63 }
0x2e16   :  { %v8924_v8 = vpop.f32.mrb[50].mxu0 }
0x2e17   :  { %4842 = vrot.lane.b32.xlu0 %v8924_v8, %s11794_s25  ;;  %v4813_v47 = vpop.f32.mrb[51].mxu0  ;;  %v8057_v8 = vld [vmem:[%s11787_s8 + $0xa0] sm:$0xff] }
0x2e18   :  { %4840 = vrot.lane.b32.xlu1 %v4813_v47, %s11794_s25  ;;  %v8058_v47 = vld [vmem:[%s11787_s8 + $0xa8] sm:$0xff] }
0x2e19   :  { %v9494_v10 = vpack.c.bf16 %v8058_v47, %v8057_v8  ;;  %v8067_v8 = vld [vmem:[%s11783_s4 + $0x20] ss:$0 sm:$0xff] }
0x2e89   :  { %v4843_v52 = vpop.permute.xlu0 %4842 }
0x2e8a   :  { %v4841_v19 = vpop.permute.xlu1 %4840  ;;  %v4851_v29 = vsel %vm1023_vm4, %v4849_v25, %v4843_v52 }
0x2e8b   :  { %v4850_v4 = vsel %vm1023_vm4, %v4848_v3, %v4841_v19 }
0x2e8c   :  { %8933 = vmatprep.mubr.msk.f32.mxu0 %vm44_vm0, %v4850_v4 }
0x2e8d   :  { %8934 = vmatmul.mubr.msk.f32.vlgmr.msra.gmra.mrb[52].mxu0 %vm44_vm0, %v4851_v29 }
0x2e8e   :  { %9489 = vmatpush3.bf16.msra.mxu0 %v9486_v63 }
0x2e8f   :  { %9491 = vmatprep.subr.bf16.mxu0 %v9490_v9 }
0x2e92   :  { %9493 = vmatpush3.bf16.msra.mxu0 %v9490_v9 }
0x2e93   :  { %9495 = vmatprep.subr.bf16.mxu0 %v9494_v10 }
0x2e96   :  { %9497 = vmatpush3.bf16.msra.mxu0 %v9494_v10 }
0x2e97   :  { %9499 = vmatprep.subr.bf16.mxu0 %v9498_v32 }
0x2e9a   :  { %9501 = vmatpush3.bf16.msra.mxu0 %v9498_v32 }
0x2f60   :  { %v8935_v5 = vpop.f32.mrb[52].mxu0 }
0x2f61   :  { %v4934_v38 = vadd.f32 %v8935_v5, %v8044_v50  ;;  %v4928_v33 = vpop.f32.mrb[53].mxu0 }
0x2f62   :  { %v4929_v12 = vadd.f32 %v8044_v50, %v4928_v33 }
0x2f63   :  { %v4938_v13 = vadd.f32 %v4934_v38, %v11025_v7 }
0x2f64   :  { %v4937_v14 = vadd.f32 %v4929_v12, %v11021_v6  ;;  %v8049_v6 = vld [vmem:[%s11786_s7 + $0x80] sm:$0xff] }
0x2f65   :  { %v4944_v22 = vsel %vm44_vm0, %v4938_v13, 0.0  ;;  %v9478_v36 = vpack.c.bf16 %v8050_v30, %v8049_v6 }
0x2f66   :  { %4945 = vadd.xlane.f32.xlu0 %v4944_v22  ;;  %v4941_v17 = vsel %vm44_vm0, %v4937_v14, 0.0 }
0x2f67   :  { %4942 = vadd.xlane.f32.xlu1 %v4941_v17  ;;  %9479 = vmatprep.subr.bf16.mxu1 %v9478_v36 }
0x2f68   :  { %9481 = vmatpush3.bf16.msra.mxu1 %v9478_v36 }
0x2f69   :  { %9483 = vmatprep.subr.bf16.mxu1 %v9482_v43 }
0x2f6c   :  { %9485 = vmatpush3.bf16.msra.mxu1 %v9482_v43 }
0x2ff3   :  { %v4946_v18 = vpop.xlane.xlu0 %4945 }
0x2ff4   :  { %v4948_v15 = vmul.f32 0.03125, %v4946_v18  ;;  %v4943_v23 = vpop.xlane.xlu1 %4942 }
0x2ff5   :  { %v4947_v24 = vmul.f32 0.03125, %v4943_v23 }
0x2ff6   :  { %v4950_v16 = vsub.f32 %v4938_v13, %v4948_v15 }
0x2ff7   :  { %v4949_v21 = vsub.f32 %v4937_v14, %v4947_v24 }
0x2ff8   :  { %v4952_v59 = vmul.f32 %v4950_v16, %v4950_v16 }
0x2ff9   :  { %v4951_v26 = vmul.f32 %v4949_v21, %v4949_v21 }
0x2ffa   :  { %v4956_v7 = vsel %vm44_vm0, %v4952_v59, 0.0 }
0x2ffb   :  { %v4953_v28 = vsel %vm44_vm0, %v4951_v26, 0.0  ;;  %v8064_v26 = vld [vmem:[%s11783_s4 + $0x1f] ss:$0 sm:$0xff] }
0x2ffc   :  { %4954 = vadd.xlane.f32.xlu0 %v4953_v28 }
0x3000   :  { %4957 = vadd.xlane.f32.xlu0 %v4956_v7 }
0x3089   :  { %v4955_v42 = vpop.xlane.xlu0 %4954 }
0x308a   :  { %v4959_v46 = vmul.f32 0.03125, %v4955_v42 }
0x308c   :  { %v4961_v44 = vadd.f32 1e-05, %v4959_v46 }
0x308d   :  { %v4958_v20 = vpop.xlane.xlu0 %4957 }
0x308e   :  { %10104 = vrsqrt.f32 %v4961_v44  ;;  %v4960_v48 = vmul.f32 0.03125, %v4958_v20 }
0x3090   :  { %v4962_v31 = vadd.f32 1e-05, %v4960_v48 }
0x3092   :  { %10106 = vrsqrt.f32 %v4962_v31 }
0x3098   :  { %v10105_v51 = vpop.eup %10104 }
0x3099   :  { %v4965_v54 = vmul.f32 %v10105_v51, %v4949_v21 }
0x309b   :  { %v4971_v57 = vmul.f32 %v8047_v53, %v4965_v54 }
0x309c   :  { %v10107_v35 = vpop.eup %10106 }
0x309d   :  { %v4966_v58 = vmul.f32 %v10107_v35, %v4950_v16  ;;  %v4977_v41 = vadd.f32 %v8048_v56, %v4971_v57  ;;  %v8070_v57 = vld [vmem:[%s11784_s5 + $0x68] sm:$0xff] }
0x309f   :  { %v4972_v55 = vmul.f32 %v8047_v53, %v4966_v58  ;;  %8944 = vmatprep.mubr.msk.f32.mxu1 %vm44_vm0, %v4977_v41  ;;  %v8071_v58 = vld [vmem:[%s11784_s5 + $0x70] sm:$0xff] }
0x30a1   :  { %v4978_v62 = vadd.f32 %v8048_v56, %v4972_v55  ;;  %v8069_v56 = vld [vmem:[%s11784_s5 + $0x60] sm:$0xff] }
0x30a2   :  { %v9502_v35 = vpack.c.bf16 %v8070_v57, %v8069_v56 }
0x30a3   :  { %8945 = vmatmul.mubr.msk.f32.vlgmr.msra.gmra.mrb[36].mxu1 %vm44_vm0, %v4978_v62 }
0x30a4   :  { %9503 = vmatprep.subr.bf16.mxu1 %v9502_v35 }
0x30a5   :  { %9505 = vmatpush3.bf16.msra.mxu1 %v9502_v35 }
0x3176   :  { %v8946_v52 = vpop.f32.mrb[36].mxu1 }
0x3177   :  { %v5077_v27 = vadd.f32 %v8946_v52, %v8061_v34  ;;  %v5071_v3 = vpop.f32.mrb[37].mxu1 }
0x3178   :  { %v5072_v19 = vadd.f32 %v8061_v34, %v5071_v3  ;;  %v8077_v3 = vld [vmem:[%s11783_s4 + $0x22] ss:$0 sm:$0xff] }
0x3179   :  { %v5081_v25 = vmul.f32 %v5077_v27, %v5077_v27 }
0x317a   :  { %v5080_v4 = vmul.f32 %v5072_v19, %v5072_v19 }
0x317b   :  { %v5083_v29 = vmul.f32 %v5081_v25, %v5077_v27 }
0x317c   :  { %v5082_v50 = vmul.f32 %v5080_v4, %v5072_v19 }
0x317d   :  { %v5085_v5 = vmul.f32 0.044715, %v5083_v29 }
0x317e   :  { %v5084_v38 = vmul.f32 0.044715, %v5082_v50 }
0x317f   :  { %v5087_v33 = vadd.f32 %v5085_v5, %v5077_v27 }
0x3180   :  { %v5086_v12 = vadd.f32 %v5084_v38, %v5072_v19 }
0x3181   :  { %v5089_v13 = vmul.f32 0.7978846, %v5087_v33 }
0x3182   :  { %v5088_v14 = vmul.f32 0.7978846, %v5086_v12 }
0x3183   :  { %10108 = vtanh.f32 %v5089_v13 }
0x3184   :  { %10110 = vtanh.f32 %v5088_v14 }
0x318d   :  { %v10109_v22 = vpop.eup %10108 }
0x318e   :  { %v10111_v17 = vpop.eup %10110  ;;  %v5093_v18 = vadd.f32 1.0, %v10109_v22 }
0x318f   :  { %v5092_v15 = vadd.f32 1.0, %v10111_v17 }
0x3190   :  { %v5095_v23 = vmul.f32 0.5, %v5093_v18 }
0x3191   :  { %v5094_v24 = vmul.f32 0.5, %v5092_v15 }
0x3192   :  { %v5097_v21 = vmul.f32 %v5095_v23, %v5077_v27 }
0x3193   :  { %v5096_v16 = vmul.f32 %v5094_v24, %v5072_v19 }
0x3195   :  { %8963 = vmatprep.mubr.msk.f32.mxu0 %vm1275_vm5, %v5096_v16 }
0x3196   :  { %8964 = vmatmul.mubr.msk.f32.vlgmr.msra.gmra.mrb[54].mxu0 %vm1275_vm5, %v5097_v21 }
0x3269   :  { %v8965_v28 = vpop.f32.mrb[54].mxu0 }
0x326a   :  { %v5180_v59 = vadd.f32 %v8965_v28, %v8064_v26  ;;  %v5174_v7 = vpop.f32.mrb[55].mxu0 }
0x326b   :  { %v5175_v6 = vadd.f32 %v8064_v26, %v5174_v7  ;;  %v11300_v26 = vld [vmem:[%s11782_s3 + $0x8] sm:$0xff] }
0x326c   :  { %v5184_v30 = vadd.f32 %v5180_v59, %v4978_v62  ;;  %v11306_v59 = vld [vmem:[%s11782_s3] sm:$0xff] }
0x326d   :  { %v5183_v36 = vadd.f32 %v5175_v6, %v4977_v41  ;;  %v8072_v41 = vld [vmem:[%s11784_s5 + $0x78] sm:$0xff] }
0x326e   :  { %v5190_v37 = vsel %vm44_vm0, %v5184_v30, 0.0  ;;  %v9506_v55 = vpack.c.bf16 %v8072_v41, %v8071_v58 }
0x326f   :  { %5191 = vadd.xlane.f32.xlu0 %v5190_v37  ;;  %v5187_v39 = vsel %vm44_vm0, %v5183_v36, 0.0 }
0x3270   :  { %5188 = vadd.xlane.f32.xlu1 %v5187_v39  ;;  %9507 = vmatprep.subr.bf16.mxu1 %v9506_v55 }
0x3271   :  { %9509 = vmatpush3.bf16.msra.mxu1 %v9506_v55 }
0x32fc   :  { %v5192_v43 = vpop.xlane.xlu0 %5191 }
0x32fd   :  { %v5194_v42 = vmul.f32 0.03125, %v5192_v43  ;;  %v5189_v46 = vpop.xlane.xlu1 %5188 }
0x32fe   :  { %v5193_v44 = vmul.f32 0.03125, %v5189_v46 }
0x32ff   :  { %v5196_v20 = vsub.f32 %v5184_v30, %v5194_v42 }
0x3300   :  { %v5195_v48 = vsub.f32 %v5183_v36, %v5193_v44 }
0x3301   :  { %v5198_v31 = vmul.f32 %v5196_v20, %v5196_v20 }
0x3302   :  { %v5197_v51 = vmul.f32 %v5195_v48, %v5195_v48 }
0x3303   :  { %v5202_v53 = vsel %vm44_vm0, %v5198_v31, 0.0 }
0x3304   :  { %5203 = vadd.xlane.f32.xlu0 %v5202_v53  ;;  %v5199_v54 = vsel %vm44_vm0, %v5197_v51, 0.0 }
0x3305   :  { %5200 = vadd.xlane.f32.xlu1 %v5199_v54 }
0x3391   :  { %v5204_v62 = vpop.xlane.xlu0 %5203 }
0x3392   :  { %v5206_v11 = vmul.f32 0.03125, %v5204_v62  ;;  %v5201_v40 = vpop.xlane.xlu1 %5200 }
0x3393   :  { %v5205_v63 = vmul.f32 0.03125, %v5201_v40 }
0x3394   :  { %v5208_v0 = vadd.f32 1e-05, %v5206_v11 }
0x3395   :  { %v5207_v49 = vadd.f32 1e-05, %v5205_v63 }
0x3396   :  { %10112 = vrsqrt.f32 %v5208_v0 }
0x3397   :  { %10114 = vrsqrt.f32 %v5207_v49 }
0x33a0   :  { %v10113_v9 = vpop.eup %10112 }
0x33a1   :  { %v10115_v47 = vpop.eup %10114  ;;  %v5212_v10 = vmul.f32 %v10113_v9, %v5196_v20 }
0x33a2   :  { %v5211_v1 = vmul.f32 %v10115_v47, %v5195_v48 }
0x33a3   :  { %v5218_v32 = vmul.f32 %v8067_v8, %v5212_v10 }
0x33a4   :  { %v5217_v34 = vmul.f32 %v8067_v8, %v5211_v1 }
0x33a5   :  { %v11258_v27 = vadd.f32 %v8068_v2, %v5218_v32 }
0x33a6   :  { %v11256_v52 = vadd.f32 %v8068_v2, %v5217_v34 }
0x33a8   :  { %8974 = vmatprep.mubr.msk.f32.mxu1 %vm44_vm0, %v11256_v52 }
0x33a9   :  { %8975 = vmatmul.mubr.msk.f32.vlgmr.msra.gmra.mrb[38].mxu1 %vm44_vm0, %v11258_v27 }
0x347c   :  { %v8976_v19 = vpop.f32.mrb[38].mxu1 }
0x347d   :  { %v11267_v25 = vadd.f32 %v8976_v19, %v8077_v3  ;;  %v5313_v4 = vpop.f32.mrb[39].mxu1 }
0x347e   :  { %v11269_v29 = vadd.f32 %v8077_v3, %v5313_v4 }
0x3480   :  { %8981 = vmatprep.mubr.msk.f32.mxu1 %vm185_vm1, %v11269_v29  ;;  %v11275_v50 = vpack.i.bf16 %v11267_v25, %v11269_v29 }
0x3482   :  { %9871 = vrot.lane.b32.xlu0 %v11275_v50, %s10229_s11  ;;  %9866 = vrot.lane.b32.xlu1 %v11275_v50, %s10228_s30 }
0x3486   :  { %5524 = vrot.lane.b32.xlu1 %v11269_v29, %s10230_s12 }
0x348a   :  { %5526 = vrot.lane.b32.xlu1 %v11267_v25, %s10230_s12 }
0x34f4   :  { %v9872_v5 = vpop.permute.xlu0 %9871  ;;  %v9867_v38 = vpop.permute.xlu1 %9866 }
0x34f5   :  { %v9874_v33 = vunpack.i.h.bf16 %v9872_v5  ;;  %v9873_v12 = vunpack.i.l.bf16 %v9872_v5  ;;  %v9869_v13 = vunpack.i.h.bf16 %v9867_v38  ;;  %v9868_v14 = vunpack.i.l.bf16 %v9867_v38 }
0x34f7   :  { %v9510_v22 = vpack.c.bf16 %v9869_v13, %v9868_v14  ;;  %v9520_v17 = vpack.c.bf16 %v9874_v33, %v9873_v12 }
0x34f8   :  { %v5525_v18 = vpop.permute.xlu1 %5524 }
0x34f9   :  { %9512 = vmatprep.subr.msk.bf16.mxu1 %vm10358_vm2, %v9510_v22 }
0x34fa   :  { %9515 = vmatpush3.bf16.xpose.msk.msra.mxu1 %vm10358_vm2, %v9510_v22 }
0x34fb   :  { %9522 = vmatprep.subr.msk.bf16.mxu1 %vm10358_vm2, %v9520_v17 }
0x34fc   :  { %v5527_v15 = vpop.permute.xlu1 %5526 }
0x3501   :  { %8982 = vmatmul.mubr.msk.f32.vlgmr.msra.gmra.mrb[40].mxu1 %vm185_vm1, %v11267_v25 }
0x3502   :  { %9525 = vmatpush3.bf16.xpose.msk.msra.mxu1 %vm10358_vm2, %v9520_v17  ;;  %8995 = vmatprep.mubr.msk.f32.mxu1 %vm185_vm1, %v5525_v18 }
0x3509   :  { %8996 = vmatmul.mubr.msk.f32.vlgmr.msra.gmra.mrb[42].mxu1 %vm185_vm1, %v5527_v15 }
0x35d4   :  { %v8983_v23 = vpop.f32.mrb[40].mxu1 }
0x35d5   :  { %v5412_v24 = vmul.f32 0.35355338, %v8983_v23  ;;  %v5402_v16 = vpop.f32.mrb[41].mxu1 }
0x35d6   :  { %v5411_v21 = vmul.f32 0.35355338, %v5402_v16 }
0x35d7   :  { %v5414_v28 = vadd.f32 %v11300_v26, %v5412_v24 }
0x35d8   :  { %v5413_v7 = vadd.f32 %v11306_v59, %v5411_v21 }
0x35d9   :  { %v5418_v6 = vsel %vm273_vm3, %v5414_v28, -inf }
0x35da   :  { %5419 = vmax.xlane.f32.xlu0 %v5418_v6  ;;  %v5415_v30 = vsel %vm273_vm3, %v5413_v7, -inf }
0x35db   :  { %5416 = vmax.xlane.f32.xlu1 %v5415_v30 }
0x35dc   :  { %v8997_v36 = vpop.f32.mrb[42].mxu1 }
0x35dd   :  { %v5606_v37 = vpop.f32.mrb[43].mxu1  ;;  %v5616_v39 = vmul.f32 0.35355338, %v8997_v36 }
0x35de   :  { %v5615_v43 = vmul.f32 0.35355338, %v5606_v37 }
0x35df   :  { %v5618_v46 = vadd.f32 %v11300_v26, %v5616_v39 }
0x35e0   :  { %v5617_v42 = vadd.f32 %v11306_v59, %v5615_v43 }
0x35e1   :  { %v5622_v20 = vsel %vm273_vm3, %v5618_v46, -inf }
0x35e2   :  { %v5619_v44 = vsel %vm273_vm3, %v5617_v42, -inf }
0x35e3   :  { %5620 = vmax.xlane.f32.xlu0 %v5619_v44 }
0x35e7   :  { %5623 = vmax.xlane.f32.xlu0 %v5622_v20 }
0x35ec   :  { %9876 = vrot.lane.b32.xlu1 %v11275_v50, %s10231_s0 }
0x3667   :  { %v5420_v48 = vpop.xlane.xlu0 %5419 }
0x3668   :  { %v5422_v31 = vsub.f32 %v5414_v28, %v5420_v48  ;;  %v5417_v51 = vpop.xlane.xlu1 %5416 }
0x3669   :  { %v5421_v53 = vsub.f32 %v5413_v7, %v5417_v51 }
0x366a   :  { %v5425_v54 = vmul.f32 1.442695, %v5422_v31 }
0x366b   :  { %v5423_v56 = vmul.f32 1.442695, %v5421_v53 }
0x366c   :  { %10116 = vpow2.f32 %v5425_v54  ;;  %v9877_v57 = vpop.permute.xlu1 %9876 }
0x366d   :  { %10118 = vpow2.f32 %v5423_v56  ;;  %v9879_v35 = vunpack.i.h.bf16 %v9877_v57  ;;  %v9878_v58 = vunpack.i.l.bf16 %v9877_v57 }
0x366f   :  { %v9516_v41 = vpack.c.bf16 %v9879_v35, %v9878_v58 }
0x3670   :  { %v5621_v55 = vpop.xlane.xlu0 %5620 }
0x3671   :  { %9517 = vmatprep.subr.bf16.mxu0 %v9516_v41  ;;  %v5625_v10 = vsub.f32 %v5617_v42, %v5621_v55 }
0x3672   :  { %9519 = vmatpush3.bf16.msra.mxu0 %v9516_v41 }
0x3673   :  { %v5627_v1 = vmul.f32 1.442695, %v5625_v10 }
0x3674   :  { %v5624_v62 = vpop.xlane.xlu0 %5623 }
0x3675   :  { %v5626_v11 = vsub.f32 %v5618_v46, %v5624_v62 }
0x3676   :  { %v10117_v40 = vpop.eup %10116 }
0x3677   :  { %v10119_v63 = vpop.eup %10118  ;;  %v5629_v0 = vmul.f32 1.442695, %v5626_v11  ;;  %v5430_v49 = vsel %vm273_vm3, %v10117_v40, 0.0 }
0x3678   :  { %5431 = vadd.xlane.f32.xlu0 %v5430_v49  ;;  %v5427_v9 = vsel %vm273_vm3, %v10119_v63, 0.0 }
0x3679   :  { %10120 = vpow2.f32 %v5629_v0  ;;  %5428 = vadd.xlane.f32.xlu1 %v5427_v9 }
0x367a   :  { %10122 = vpow2.f32 %v5627_v1 }
0x3683   :  { %v10121_v8 = vpop.eup %10120 }
0x3684   :  { %v5634_v47 = vsel %vm273_vm3, %v10121_v8, 0.0  ;;  %v10123_v2 = vpop.eup %10122 }
0x3685   :  { %5635 = vadd.xlane.f32.xlu0 %v5634_v47  ;;  %v5631_v32 = vsel %vm273_vm3, %v10123_v2, 0.0 }
0x368a   :  { %9886 = vrot.lane.b32.xlu1 %v11275_v50, %s10236_s21 }
0x368e   :  { %5728 = vrot.lane.b32.xlu1 %v11269_v29, %s10234_s19 }
0x369b   :  { %9881 = vrot.lane.b32.xlu0 %v11275_v50, %s10232_s17 }
0x36b2   :  { %5632 = vadd.xlane.f32.xlu1 %v5631_v32 }
0x36c3   :  { %5730 = vrot.lane.b32.xlu1 %v11267_v25, %s10234_s19 }
0x3705   :  { %v5432_v34 = vpop.xlane.xlu0 %5431 }
0x3706   :  { %10124 = vrcp.f32 %v5432_v34  ;;  %v5429_v3 = vpop.xlane.xlu1 %5428 }
0x3707   :  { %10126 = vrcp.f32 %v5429_v3 }
0x370a   :  { %v9887_v12 = vpop.permute.xlu1 %9886 }
0x370b   :  { %v9889_v14 = vunpack.i.h.bf16 %v9887_v12  ;;  %v9888_v22 = vunpack.i.l.bf16 %v9887_v12 }
0x370d   :  { %v9530_v23 = vpack.c.bf16 %v9889_v14, %v9888_v22 }
0x370e   :  { %v5729_v24 = vpop.permute.xlu1 %5728 }
0x3710   :  { %v10125_v19 = vpop.eup %10124 }
0x3711   :  { %v10127_v4 = vpop.eup %10126  ;;  %v5436_v33 = vmul.f32 %v10125_v19, %v10117_v40 }
0x3712   :  { %v5636_v5 = vpop.xlane.xlu0 %5635  ;;  %v5434_v38 = vmul.f32 %v10127_v4, %v10119_v63 }
0x3713   :  { %10128 = vrcp.f32 %v5636_v5 }
0x3714   :  { %8988 = vmatprep.mubr.msk.f32.mxu0 %vm273_vm3, %v5434_v38 }
0x3715   :  { %8989 = vmatmul.mubr.msk.f32.vlgmr.msra.gmra.mrb[56].mxu0 %vm273_vm3, %v5436_v33 }
0x3716   :  { %v9882_v13 = vpop.permute.xlu0 %9881 }
0x3717   :  { %v9884_v17 = vunpack.i.h.bf16 %v9882_v13  ;;  %v9883_v18 = vunpack.i.l.bf16 %v9882_v13 }
0x3719   :  { %v9526_v15 = vpack.c.bf16 %v9884_v17, %v9883_v18 }
0x371b   :  { %9527 = vmatprep.subr.bf16.mxu0 %v9526_v15 }
0x371c   :  { %9529 = vmatpush3.bf16.msra.mxu0 %v9526_v15 }
0x371d   :  { %9532 = vmatprep.subr.msk.bf16.mxu0 %vm10358_vm2, %v9530_v23  ;;  %v10129_v21 = vpop.eup %10128 }
0x371e   :  { %v5640_v6 = vmul.f32 %v10129_v21, %v10121_v8 }
0x373f   :  { %v5633_v16 = vpop.xlane.xlu1 %5632 }
0x3740   :  { %10130 = vrcp.f32 %v5633_v16 }
0x3743   :  { %v5731_v30 = vpop.permute.xlu1 %5730 }
0x374a   :  { %v10131_v28 = vpop.eup %10130 }
0x374b   :  { %v5638_v7 = vmul.f32 %v10131_v28, %v10123_v2 }
0x374d   :  { %9002 = vmatprep.mubr.msk.f32.mxu0 %vm273_vm3, %v5638_v7 }
0x374e   :  { %9003 = vmatmul.mubr.msk.f32.vlgmr.msra.gmra.mrb[58].mxu0 %vm273_vm3, %v5640_v6 }
0x374f   :  { %9535 = vmatpush3.bf16.xpose.msk.msra.mxu0 %vm10358_vm2, %v9530_v23  ;;  %9009 = vmatprep.mubr.msk.f32.mxu0 %vm185_vm1, %v5729_v24 }
0x3756   :  { %9010 = vmatmul.mubr.msk.f32.vlgmr.msra.gmra.mrb[60].mxu0 %vm185_vm1, %v5731_v30 }
0x37e8   :  { %v11339_v36 = vpop.f32.mrb[56].mxu0 }
0x37e9   :  { %v11341_v37 = vpop.f32.mrb[57].mxu0 }
0x3821   :  { %v11343_v39 = vpop.f32.mrb[58].mxu0 }
0x3822   :  { %v11345_v43 = vpop.f32.mrb[59].mxu0 }
0x3829   :  { %v9011_v42 = vpop.f32.mrb[60].mxu0 }
0x382a   :  { %v5820_v46 = vmul.f32 0.35355338, %v9011_v42  ;;  %v5810_v44 = vpop.f32.mrb[61].mxu0 }
0x382b   :  { %v5819_v20 = vmul.f32 0.35355338, %v5810_v44 }
0x382c   :  { %v5822_v48 = vadd.f32 %v11300_v26, %v5820_v46 }
0x382d   :  { %v5821_v31 = vadd.f32 %v11306_v59, %v5819_v20 }
0x382e   :  { %v5826_v51 = vsel %vm273_vm3, %v5822_v48, -inf }
0x382f   :  { %5827 = vmax.xlane.f32.xlu1 %v5826_v51  ;;  %v5823_v53 = vsel %vm273_vm3, %v5821_v31, -inf }
0x3830   :  { %5824 = vmax.xlane.f32.xlu0 %v5823_v53 }
0x3840   :  { %9896 = vrot.lane.b32.xlu1 %v11275_v50, %s10233_s18 }
0x3844   :  { %5932 = vrot.lane.b32.xlu1 %v11269_v29, %s10235_s20 }
0x3848   :  { %5934 = vrot.lane.b32.xlu1 %v11267_v25, %s10235_s20 }
0x38bc   :  { %v5828_v54 = vpop.xlane.xlu1 %5827 }
0x38bd   :  { %v5830_v56 = vsub.f32 %v5822_v48, %v5828_v54  ;;  %v5825_v57 = vpop.xlane.xlu0 %5824  ;;  %v8074_v54 = vld [vmem:[%s11785_s6 + $0x68] sm:$0xff] }
0x38be   :  { %v5829_v35 = vsub.f32 %v5821_v31, %v5825_v57 }
0x38bf   :  { %v5833_v58 = vmul.f32 1.442695, %v5830_v56  ;;  %v8075_v56 = vld [vmem:[%s11785_s6 + $0x70] sm:$0xff] }
0x38c0   :  { %v5831_v41 = vmul.f32 1.442695, %v5829_v35  ;;  %v9897_v63 = vpop.permute.xlu1 %9896  ;;  %v8076_v35 = vld [vmem:[%s11785_s6 + $0x78] sm:$0xff] }
0x38c1   :  { %10132 = vpow2.f32 %v5833_v58  ;;  %v9899_v49 = vunpack.i.h.bf16 %v9897_v63  ;;  %v9898_v9 = vunpack.i.l.bf16 %v9897_v63  ;;  %v9554_v58 = vpack.c.bf16 %v8076_v35, %v8075_v56  ;;  %v8107_v56 = vld [vmem:[%s11783_s4 + $0x24] ss:$0 sm:$0xff]  ;;  %v8108_v35 = vld [vmem:[%s11783_s4 + $0x25] ss:$0 sm:$0xff] }
0x38c2   :  { %10134 = vpow2.f32 %v5831_v41  ;;  %v8113_v41 = vld [vmem:[%s11786_s7 + $0x20] sm:$0xff] }
0x38c3   :  { %v9540_v1 = vpack.c.bf16 %v9899_v49, %v9898_v9  ;;  %v8115_v49 = vld [vmem:[%s11786_s7 + $0x30] sm:$0xff]  ;;  %v8116_v9 = vld [vmem:[%s11786_s7 + $0x38] sm:$0xff] }
0x38c4   :  { %v5933_v19 = vpop.permute.xlu1 %5932 }
0x38c8   :  { %v5935_v4 = vpop.permute.xlu1 %5934 }
0x38cb   :  { %v10133_v55 = vpop.eup %10132 }
0x38cc   :  { %v5838_v62 = vsel %vm273_vm3, %v10133_v55, 0.0  ;;  %v10135_v11 = vpop.eup %10134 }
0x38cd   :  { %5839 = vadd.xlane.f32.xlu0 %v5838_v62  ;;  %v5835_v40 = vsel %vm273_vm3, %v10135_v11, 0.0 }
0x38d1   :  { %5836 = vadd.xlane.f32.xlu0 %v5835_v40 }
0x38e7   :  { %9891 = vrot.lane.b32.xlu0 %v11275_v50, %s10238_s23 }
0x395a   :  { %v5840_v25 = vpop.xlane.xlu0 %5839 }
0x395b   :  { %10136 = vrcp.f32 %v5840_v25 }
0x395e   :  { %v5837_v29 = vpop.xlane.xlu0 %5836 }
0x395f   :  { %10138 = vrcp.f32 %v5837_v29 }
0x3962   :  { %v9892_v0 = vpop.permute.xlu0 %9891 }
0x3963   :  { %v9894_v8 = vunpack.i.h.bf16 %v9892_v0  ;;  %v9893_v47 = vunpack.i.l.bf16 %v9892_v0 }
0x3965   :  { %v9536_v10 = vpack.c.bf16 %v9894_v8, %v9893_v47  ;;  %v10137_v2 = vpop.eup %10136 }
0x3966   :  { %v5844_v3 = vmul.f32 %v10137_v2, %v10133_v55  ;;  %v8114_v55 = vld [vmem:[%s11786_s7 + $0x28] sm:$0xff] }
0x3967   :  { %9537 = vmatprep.subr.bf16.mxu1 %v9536_v10  ;;  %v9566_v62 = vpack.c.bf16 %v8114_v55, %v8113_v41 }
0x3968   :  { %9539 = vmatpush3.bf16.msra.mxu1 %v9536_v10 }
0x3969   :  { %v10139_v32 = vpop.eup %10138  ;;  %9542 = vmatprep.subr.msk.bf16.mxu1 %vm10358_vm2, %v9540_v1 }
0x396a   :  { %v5842_v34 = vmul.f32 %v10139_v32, %v10135_v11 }
0x396c   :  { %9016 = vmatprep.mubr.msk.f32.mxu1 %vm273_vm3, %v5842_v34 }
0x396d   :  { %9017 = vmatmul.mubr.msk.f32.vlgmr.msra.gmra.mrb[44].mxu1 %vm273_vm3, %v5844_v3  ;;  %v9570_v3 = vpack.c.bf16 %v8116_v9, %v8115_v49  ;;  %v8121_v49 = vld [vmem:[%s11783_s4 + $0x26] ss:$0 sm:$0xff] }
0x396e   :  { %9023 = vmatprep.mubr.msk.f32.mxu1 %vm185_vm1, %v5933_v19 }
0x3971   :  { %9545 = vmatpush3.bf16.xpose.msk.msra.mxu1 %vm10358_vm2, %v9540_v1 }
0x3978   :  { %9024 = vmatmul.mubr.msk.f32.vlgmr.msra.gmra.mrb[46].mxu1 %vm185_vm1, %v5935_v4 }
0x3a40   :  { %v9018_v5 = vpop.f32.mrb[44].mxu1 }
0x3a41   :  { %v5923_v38 = vpop.f32.mrb[45].mxu1 }
0x3a4b   :  { %v9025_v33 = vpop.f32.mrb[46].mxu1 }
0x3a4c   :  { %v6024_v12 = vmul.f32 0.35355338, %v9025_v33  ;;  %v6014_v13 = vpop.f32.mrb[47].mxu1 }
0x3a4d   :  { %v6023_v14 = vmul.f32 0.35355338, %v6014_v13 }
0x3a4e   :  { %v6026_v22 = vadd.f32 %v11300_v26, %v6024_v12 }
0x3a4f   :  { %v6025_v17 = vadd.f32 %v11306_v59, %v6023_v14 }
0x3a50   :  { %v6030_v18 = vsel %vm273_vm3, %v6026_v22, -inf }
0x3a51   :  { %6031 = vmax.xlane.f32.xlu1 %v6030_v18  ;;  %v6027_v15 = vsel %vm273_vm3, %v6025_v17, -inf }
0x3a52   :  { %6028 = vmax.xlane.f32.xlu0 %v6027_v15  ;;  %v8124_v15 = vld [vmem:[%s11783_s4 + $0x27] ss:$0 sm:$0xff] }
0x3a62   :  { %6138 = vrot.lane.b32.xlu1 %v11345_v43, %s10239_s24 }
0x3a66   :  { %6140 = vrot.lane.b32.xlu1 %v11343_v39, %s10239_s24 }
0x3a6a   :  { %6146 = vrot.lane.b32.xlu1 %v5923_v38, %s10240_s16  ;;  %v8104_v38 = vld [vmem:[%s11783_s4 + $0x23] ss:$0 sm:$0xff] }
0x3ade   :  { %v6032_v23 = vpop.xlane.xlu1 %6031 }
0x3adf   :  { %v6034_v24 = vsub.f32 %v6026_v22, %v6032_v23  ;;  %v6029_v16 = vpop.xlane.xlu0 %6028 }
0x3ae0   :  { %v6033_v26 = vsub.f32 %v6025_v17, %v6029_v16 }
0x3ae1   :  { %v6037_v21 = vmul.f32 1.442695, %v6034_v24 }
0x3ae2   :  { %v6035_v59 = vmul.f32 1.442695, %v6033_v26  ;;  %v6139_v25 = vpop.permute.xlu1 %6138 }
0x3ae3   :  { %10140 = vpow2.f32 %v6037_v21  ;;  %v6160_v8 = vsel %vm185_vm1, %v11341_v37, %v6139_v25  ;;  %v8110_v37 = vld [vmem:[%s11785_s6 + $0xa8] sm:$0xff] }
0x3ae4   :  { %10142 = vpow2.f32 %v6035_v59 }
0x3ae6   :  { %v6141_v29 = vpop.permute.xlu1 %6140 }
0x3ae7   :  { %v6161_v10 = vsel %vm185_vm1, %v11339_v36, %v6141_v29  ;;  %v8109_v36 = vld [vmem:[%s11785_s6 + $0xa0] sm:$0xff] }
0x3ae8   :  { %v9558_v4 = vpack.c.bf16 %v8110_v37, %v8109_v36  ;;  %v11495_v36 = vld [vmem:[%s11781_s2 + $0x8] sm:$0xff] }
0x3aea   :  { %v6147_v0 = vpop.permute.xlu1 %6146  ;;  %9559 = vmatprep.subr.bf16.mxu1 %v9558_v4 }
0x3aeb   :  { %v6162_v1 = vsel %vm273_vm3, %v6160_v8, %v6147_v0  ;;  %9561 = vmatpush3.bf16.msra.mxu1 %v9558_v4  ;;  %v11501_v4 = vld [vmem:[%s11781_s2] sm:$0xff]  ;;  %s7847_s2 = sshll.u32 %s10242_s29, 4  ;;  %s7848_s2 = int_to_ptr.vmem [resolvable:$true] %s7847_s2 }
0x3aec   :  { %p10209_p1 = scmp.lt.s32.totalorder %s7848_s2, %s7848_s2 }
0x3aed   :  { %v10141_v28 = vpop.eup %10140 }
0x3aee   :  { %v6042_v7 = vsel %vm273_vm3, %v10141_v28, 0.0  ;;  %v10143_v6 = vpop.eup %10142 }
0x3aef   :  { %6043 = vadd.xlane.f32.xlu0 %v6042_v7  ;;  %v6039_v30 = vsel %vm273_vm3, %v10143_v6, 0.0 }
0x3af3   :  { %6040 = vadd.xlane.f32.xlu0 %v6039_v30 }
0x3b09   :  { %9901 = vrot.lane.b32.xlu0 %v11275_v50, %s10237_s22  ;;  %v8073_v50 = vld [vmem:[%s11785_s6 + $0x60] sm:$0xff] }
0x3b0a   :  { %v9550_v57 = vpack.c.bf16 %v8074_v54, %v8073_v50 }
0x3b0d   :  { %6148 = vrot.lane.b32.xlu0 %v9018_v5, %s10240_s16  ;;  %v8112_v5 = vld [vmem:[%s11785_s6 + $0xb8] sm:$0xff] }
0x3b7c   :  { %v6044_v39 = vpop.xlane.xlu0 %6043 }
0x3b7d   :  { %10144 = vrcp.f32 %v6044_v39 }
0x3b80   :  { %v6041_v43 = vpop.xlane.xlu0 %6040 }
0x3b81   :  { %10146 = vrcp.f32 %v6041_v43 }
0x3b84   :  { %v9902_v42 = vpop.permute.xlu0 %9901 }
0x3b85   :  { %v9904_v46 = vunpack.i.h.bf16 %v9902_v42  ;;  %v9903_v44 = vunpack.i.l.bf16 %v9902_v42 }
0x3b87   :  { %v9546_v20 = vpack.c.bf16 %v9904_v46, %v9903_v44  ;;  %v10145_v48 = vpop.eup %10144 }
0x3b88   :  { %v6048_v53 = vmul.f32 %v10145_v48, %v10141_v28  ;;  %v6149_v63 = vpop.permute.xlu0 %6148 }
0x3b89   :  { %9547 = vmatprep.subr.bf16.mxu0 %v9546_v20  ;;  %v6163_v32 = vsel %vm273_vm3, %v6161_v10, %v6149_v63 }
0x3b8a   :  { %9549 = vmatpush3.bf16.msra.mxu0 %v9546_v20 }
0x3b8b   :  { %v10147_v31 = vpop.eup %10146  ;;  %9551 = vmatprep.subr.bf16.mxu0 %v9550_v57 }
0x3b8c   :  { %v6046_v51 = vmul.f32 %v10147_v31, %v10143_v6 }
0x3b8e   :  { %9030 = vmatprep.mubr.msk.f32.mxu0 %vm273_vm3, %v6046_v51 }
0x3b8f   :  { %9031 = vmatmul.mubr.msk.f32.vlgmr.msra.gmra.mrb[62].mxu0 %vm273_vm3, %v6048_v53 }
0x3b90   :  { %9553 = vmatpush3.bf16.msra.mxu0 %v9550_v57 }
0x3b91   :  { %9555 = vmatprep.subr.bf16.mxu0 %v9554_v58 }
0x3b94   :  { %9557 = vmatpush3.bf16.msra.mxu0 %v9554_v58 }
0x3b95   :  { %9567 = vmatprep.subr.bf16.mxu0 %v9566_v62 }
0x3c62   :  { %v9032_v11 = vpop.f32.mrb[62].mxu0 }
0x3c63   :  { %6156 = vrot.lane.b32.xlu0 %v9032_v11, %s11794_s25  ;;  %v6127_v40 = vpop.f32.mrb[63].mxu0 }
0x3c64   :  { %6154 = vrot.lane.b32.xlu1 %v6127_v40, %s11794_s25 }
0x3cd5   :  { %v6157_v47 = vpop.permute.xlu0 %6156 }
0x3cd6   :  { %v6155_v2 = vpop.permute.xlu1 %6154  ;;  %v6165_v19 = vsel %vm1023_vm4, %v6163_v32, %v6157_v47 }
0x3cd7   :  { %v6164_v34 = vsel %vm1023_vm4, %v6162_v1, %v6155_v2 }
0x3cd8   :  { %9041 = vmatprep.mubr.msk.f32.mxu0 %vm44_vm0, %v6164_v34 }
0x3cd9   :  { %9042 = vmatmul.mubr.msk.f32.vlgmr.msra.gmra.mrb[64].mxu0 %vm44_vm0, %v6165_v19 }
0x3cda   :  { %9569 = vmatpush3.bf16.msra.mxu0 %v9566_v62  ;;  %9063 = vmatprep.mubr.msk.f32.mxu0 %vm44_vm0, %v10995_v60  ;;  %v8111_v60 = vld [vmem:[%s11785_s6 + $0xb0] sm:$0xff] }
0x3cdb   :  { %9571 = vmatprep.subr.bf16.mxu0 %v9570_v3 }
0x3cde   :  { %9573 = vmatpush3.bf16.msra.mxu0 %v9570_v3 }
0x3ce1   :  { %9064 = vmatmul.mubr.msk.f32.vlgmr.msra.gmra.mrb[66].mxu0 %vm44_vm0, %v10997_v61  ;;  %v9562_v61 = vpack.c.bf16 %v8112_v5, %v8111_v60 }
0x3ce3   :  { %9563 = vmatprep.subr.bf16.mxu1 %v9562_v61 }
0x3ce4   :  { %9565 = vmatpush3.bf16.msra.mxu1 %v9562_v61 }
0x3dac   :  { %v9043_v33 = vpop.f32.mrb[64].mxu0 }
0x3dad   :  { %v6248_v12 = vadd.f32 %v9043_v33, %v8104_v38  ;;  %v6242_v13 = vpop.f32.mrb[65].mxu0 }
0x3dae   :  { %v6243_v14 = vadd.f32 %v8104_v38, %v6242_v13 }
0x3daf   :  { %v6252_v22 = vadd.f32 %v6248_v12, %v11258_v27 }
0x3db0   :  { %v6251_v17 = vadd.f32 %v6243_v14, %v11256_v52 }
0x3db1   :  { %v6258_v18 = vsel %vm44_vm0, %v6252_v22, 0.0 }
0x3db2   :  { %6259 = vadd.xlane.f32.xlu0 %v6258_v18  ;;  %v6255_v23 = vsel %vm44_vm0, %v6251_v17, 0.0 }
0x3db3   :  { %6256 = vadd.xlane.f32.xlu1 %v6255_v23 }
0x3db4   :  { %v9065_v24 = vpop.f32.mrb[66].mxu0 }
0x3db5   :  { %v6472_v16 = vadd.f32 %v9065_v24, %v8124_v15  ;;  %v6466_v26 = vpop.f32.mrb[67].mxu0 }
0x3db6   :  { %v6467_v21 = vadd.f32 %v8124_v15, %v6466_v26 }
0x3db8   :  { %v9574_v59 = vpack.c.bf16 %v6472_v16, %v6467_v21  ;;  %v11447_v28 = vpack.i.bf16 %v6472_v16, %v6467_v21 }
0x3dba   :  { %9576 = vmatprep.subr.msk.bf16.mxu1 %vm10358_vm2, %v9574_v59 }
0x3dc4   :  { %9906 = vrot.lane.b32.xlu1 %v11447_v28, %s10230_s12 }
0x3e3f   :  { %v6260_v52 = vpop.xlane.xlu0 %6259 }
0x3e40   :  { %v6262_v27 = vmul.f32 0.03125, %v6260_v52  ;;  %v6257_v7 = vpop.xlane.xlu1 %6256 }
0x3e41   :  { %v6261_v6 = vmul.f32 0.03125, %v6257_v7 }
0x3e42   :  { %v6264_v30 = vsub.f32 %v6252_v22, %v6262_v27 }
0x3e43   :  { %v6263_v39 = vsub.f32 %v6251_v17, %v6261_v6 }
0x3e44   :  { %v6266_v46 = vmul.f32 %v6264_v30, %v6264_v30  ;;  %v9907_v55 = vpop.permute.xlu1 %9906 }
0x3e45   :  { %v6265_v43 = vmul.f32 %v6263_v39, %v6263_v39  ;;  %v9909_v40 = vunpack.i.h.bf16 %v9907_v55  ;;  %v9908_v25 = vunpack.i.l.bf16 %v9907_v55 }
0x3e46   :  { %v6270_v44 = vsel %vm44_vm0, %v6266_v46, 0.0 }
0x3e47   :  { %v6267_v42 = vsel %vm44_vm0, %v6265_v43, 0.0  ;;  %v9584_v0 = vpack.c.bf16 %v9909_v40, %v9908_v25 }
0x3e48   :  { %6268 = vadd.xlane.f32.xlu0 %v6267_v42 }
0x3e4c   :  { %6271 = vadd.xlane.f32.xlu0 %v6270_v44 }
0x3ed5   :  { %v6269_v20 = vpop.xlane.xlu0 %6268 }
0x3ed6   :  { %v6273_v48 = vmul.f32 0.03125, %v6269_v20 }
0x3ed8   :  { %v6275_v31 = vadd.f32 1e-05, %v6273_v48 }
0x3ed9   :  { %v6272_v51 = vpop.xlane.xlu0 %6271 }
0x3eda   :  { %10148 = vrsqrt.f32 %v6275_v31  ;;  %v6274_v53 = vmul.f32 0.03125, %v6272_v51 }
0x3edc   :  { %v6276_v50 = vadd.f32 1e-05, %v6274_v53 }
0x3ede   :  { %10150 = vrsqrt.f32 %v6276_v50 }
0x3ee4   :  { %v10149_v54 = vpop.eup %10148 }
0x3ee5   :  { %v6279_v57 = vmul.f32 %v10149_v54, %v6263_v39 }
0x3ee7   :  { %v6285_v58 = vmul.f32 %v8107_v56, %v6279_v57 }
0x3ee8   :  { %v10151_v41 = vpop.eup %10150 }
0x3ee9   :  { %v6280_v62 = vmul.f32 %v10151_v41, %v6264_v30  ;;  %v11461_v11 = vadd.f32 %v8108_v35, %v6285_v58 }
0x3eeb   :  { %v6286_v29 = vmul.f32 %v8107_v56, %v6280_v62  ;;  %9052 = vmatprep.mubr.msk.f32.mxu1 %vm44_vm0, %v11461_v11 }
0x3eed   :  { %v11465_v63 = vadd.f32 %v8108_v35, %v6286_v29 }
0x3eef   :  { %9053 = vmatmul.mubr.msk.f32.vlgmr.msra.gmra.mrb[48].mxu1 %vm44_vm0, %v11465_v63 }
0x3ef0   :  { %9579 = vmatpush3.bf16.xpose.msk.msra.mxu1 %vm10358_vm2, %v9574_v59 }
0x3ef1   :  { %9586 = vmatprep.subr.msk.bf16.mxu1 %vm10358_vm2, %v9584_v0 }
0x3fc2   :  { %v9054_v9 = vpop.f32.mrb[48].mxu1 }
0x3fc3   :  { %v11476_v8 = vadd.f32 %v9054_v9, %v8121_v49  ;;  %v6387_v47 = vpop.f32.mrb[49].mxu1 }
0x3fc4   :  { %v11478_v10 = vadd.f32 %v8121_v49, %v6387_v47 }
0x3fc5   :  { %6677 = vrot.lane.b32.xlu1 %v11476_v8, %s10230_s12 }
0x3fc6   :  { %6675 = vrot.lane.b32.xlu0 %v11478_v10, %s10230_s12  ;;  %9070 = vmatprep.mubr.msk.f32.mxu1 %vm185_vm1, %v11478_v10 }
0x3fc7   :  { %9071 = vmatmul.mubr.msk.f32.vlgmr.msra.gmra.mrb[50].mxu1 %vm185_vm1, %v11476_v8 }
0x3fc8   :  { %9589 = vmatpush3.bf16.xpose.msk.msra.mxu1 %vm10358_vm2, %v9584_v0 }
0x4037   :  { %v6678_v2 = vpop.permute.xlu1 %6677 }
0x4038   :  { %v6676_v1 = vpop.permute.xlu0 %6675 }
0x4039   :  { %9084 = vmatprep.mubr.msk.f32.mxu1 %vm185_vm1, %v6676_v1 }
0x403a   :  { %9085 = vmatmul.mubr.msk.f32.vlgmr.msra.gmra.mrb[52].mxu1 %vm185_vm1, %v6678_v2 }
0x409a   :  { %v9072_v32 = vpop.f32.mrb[50].mxu1 }
0x409b   :  { %v6563_v34 = vmul.f32 0.35355338, %v9072_v32  ;;  %v6553_v3 = vpop.f32.mrb[51].mxu1 }
0x409c   :  { %v6562_v19 = vmul.f32 0.35355338, %v6553_v3 }
0x409d   :  { %v6565_v37 = vadd.f32 %v11495_v36, %v6563_v34 }
0x409e   :  { %v6564_v60 = vadd.f32 %v11501_v4, %v6562_v19 }
0x409f   :  { %v6569_v5 = vsel %vm273_vm3, %v6565_v37, -inf }
0x40a0   :  { %6570 = vmax.xlane.f32.xlu0 %v6569_v5  ;;  %v6566_v61 = vsel %vm273_vm3, %v6564_v60, -inf }
0x40a1   :  { %6567 = vmax.xlane.f32.xlu1 %v6566_v61 }
0x410d   :  { %v9086_v38 = vpop.f32.mrb[52].mxu1 }
0x410e   :  { %v6767_v33 = vmul.f32 0.35355338, %v9086_v38  ;;  %v6757_v12 = vpop.f32.mrb[53].mxu1 }
0x410f   :  { %v6766_v13 = vmul.f32 0.35355338, %v6757_v12 }
0x4110   :  { %v6769_v14 = vadd.f32 %v11495_v36, %v6767_v33 }
0x4111   :  { %v6768_v22 = vadd.f32 %v11501_v4, %v6766_v13 }
0x4112   :  { %v6773_v17 = vsel %vm273_vm3, %v6769_v14, -inf }
0x4113   :  { %6774 = vmax.xlane.f32.xlu1 %v6773_v17  ;;  %v6770_v18 = vsel %vm273_vm3, %v6768_v22, -inf }
0x4114   :  { %6771 = vmax.xlane.f32.xlu0 %v6770_v18 }
0x412d   :  { %v6571_v15 = vpop.xlane.xlu0 %6570 }
0x412e   :  { %v6573_v23 = vsub.f32 %v6565_v37, %v6571_v15  ;;  %v6568_v24 = vpop.xlane.xlu1 %6567 }
0x412f   :  { %v6572_v16 = vsub.f32 %v6564_v60, %v6568_v24 }
0x4130   :  { %v6576_v26 = vmul.f32 1.442695, %v6573_v23 }
0x4131   :  { %v6574_v21 = vmul.f32 1.442695, %v6572_v16 }
0x4132   :  { %10152 = vpow2.f32 %v6576_v26 }
0x4133   :  { %10154 = vpow2.f32 %v6574_v21 }
0x413c   :  { %v10153_v59 = vpop.eup %10152 }
0x413d   :  { %v10155_v52 = vpop.eup %10154  ;;  %v6581_v27 = vsel %vm273_vm3, %v10153_v59, 0.0 }
0x413e   :  { %6582 = vadd.xlane.f32.xlu1 %v6581_v27  ;;  %v6578_v7 = vsel %vm273_vm3, %v10155_v52, 0.0 }
0x413f   :  { %6579 = vadd.xlane.f32.xlu0 %v6578_v7 }
0x41a0   :  { %v6775_v6 = vpop.xlane.xlu1 %6774 }
0x41a1   :  { %v6777_v30 = vsub.f32 %v6769_v14, %v6775_v6  ;;  %v6772_v39 = vpop.xlane.xlu0 %6771 }
0x41a2   :  { %v6776_v43 = vsub.f32 %v6768_v22, %v6772_v39 }
0x41a3   :  { %v6780_v42 = vmul.f32 1.442695, %v6777_v30 }
0x41a4   :  { %v6778_v46 = vmul.f32 1.442695, %v6776_v43 }
0x41a5   :  { %10156 = vpow2.f32 %v6780_v42 }
0x41a6   :  { %10158 = vpow2.f32 %v6778_v46 }
0x41af   :  { %v10157_v44 = vpop.eup %10156 }
0x41b0   :  { %v10159_v20 = vpop.eup %10158  ;;  %v6785_v48 = vsel %vm273_vm3, %v10157_v44, 0.0 }
0x41b1   :  { %6786 = vadd.xlane.f32.xlu1 %v6785_v48  ;;  %v6782_v31 = vsel %vm273_vm3, %v10159_v20, 0.0 }
0x41b2   :  { %6783 = vadd.xlane.f32.xlu0 %v6782_v31 }
0x41c2   :  { %9916 = vrot.lane.b32.xlu1 %v11447_v28, %s10229_s11 }
0x41c6   :  { %9921 = vrot.lane.b32.xlu1 %v11447_v28, %s10234_s19 }
0x41c8   :  { %9911 = vrot.lane.b32.xlu0 %v11447_v28, %s10228_s30  ;;  %s10204_s30 = scalar_lea.vmem %s7848_s2, 256 }
0x41c9   :  { %p10205_p0 = scmp.ne.s32.totalorder %s7848_s2, %s10204_s30  ;;  %p10210_p2 = scmp.lt.s32.totalorder %s10204_s30, %s10204_s30 }
0x41ca   :  { %6879 = vrot.lane.b32.xlu1 %v11478_v10, %s10234_s19 }
0x41cb   :  { %v6583_v54 = vpop.xlane.xlu1 %6582  ;;  %p10211_p3 = por %p10210_p2, %p10209_p1 }
0x41cc   :  { %6881 = vrot.lane.b32.xlu0 %v11476_v8, %s10234_s19  ;;  %v6580_v51 = vpop.xlane.xlu0 %6579 }
0x41cd   :  { %10160 = vrcp.f32 %v6580_v51  ;;  %p10212_p4 = pnand %p10211_p3, %p10205_p0 }
0x41ce   :  { %10162 = vrcp.f32 %v6583_v54 }
0x41d7   :  { %v10161_v53 = vpop.eup %10160 }
0x41d8   :  { %v6585_v50 = vmul.f32 %v10161_v53, %v10155_v52  ;;  %v10163_v0 = vpop.eup %10162 }
0x41d9   :  { %v6587_v2 = vmul.f32 %v10163_v0, %v10153_v59 }
0x41da   :  { %9077 = vmatprep.mubr.msk.f32.mxu0 %vm273_vm3, %v6585_v50 }
0x423e   :  { %v6787_v56 = vpop.xlane.xlu1 %6786 }
0x423f   :  { %v6784_v57 = vpop.xlane.xlu0 %6783 }
0x4240   :  { %10164 = vrcp.f32 %v6784_v57 }
0x4241   :  { %10166 = vrcp.f32 %v6787_v56 }
0x4242   :  { %v9917_v35 = vpop.permute.xlu1 %9916 }
0x4243   :  { %v9912_v58 = vpop.permute.xlu0 %9911  ;;  %v9919_v41 = vunpack.i.h.bf16 %v9917_v35  ;;  %v9918_v55 = vunpack.i.l.bf16 %v9917_v35 }
0x4244   :  { %v9914_v62 = vunpack.i.h.bf16 %v9912_v58  ;;  %v9913_v40 = vunpack.i.l.bf16 %v9912_v58 }
0x4245   :  { %v9590_v49 = vpack.c.bf16 %v9919_v41, %v9918_v55 }
0x4246   :  { %v9580_v25 = vpack.c.bf16 %v9914_v62, %v9913_v40  ;;  %v9922_v29 = vpop.permute.xlu1 %9921 }
0x4247   :  { %v9924_v9 = vunpack.i.h.bf16 %v9922_v29  ;;  %v9923_v47 = vunpack.i.l.bf16 %v9922_v29  ;;  %v6882_v60 = vpop.permute.xlu0 %6881 }
0x4248   :  { %9581 = vmatprep.subr.bf16.mxu0 %v9580_v25 }
0x4249   :  { %9583 = vmatpush3.bf16.msra.mxu0 %v9580_v25  ;;  %v9594_v3 = vpack.c.bf16 %v9924_v9, %v9923_v47 }
0x424a   :  { %v10165_v1 = vpop.eup %10164  ;;  %9591 = vmatprep.subr.bf16.mxu0 %v9590_v49  ;;  %v6880_v37 = vpop.permute.xlu1 %6879 }
0x424b   :  { %v10167_v32 = vpop.eup %10166  ;;  %v6789_v34 = vmul.f32 %v10165_v1, %v10159_v20 }
0x424c   :  { %9078 = vmatmul.mubr.msk.f32.vlgmr.msra.gmra.mrb[68].mxu0 %vm273_vm3, %v6587_v2  ;;  %v6791_v19 = vmul.f32 %v10167_v32, %v10157_v44 }
0x424d   :  { %9593 = vmatpush3.bf16.msra.mxu0 %v9590_v49  ;;  %9091 = vmatprep.mubr.msk.f32.mxu0 %vm273_vm3, %v6789_v34 }
0x424e   :  { %9596 = vmatprep.subr.msk.bf16.mxu0 %vm10358_vm2, %v9594_v3 }
0x4250   :  { %9092 = vmatmul.mubr.msk.f32.vlgmr.msra.gmra.mrb[70].mxu0 %vm273_vm3, %v6791_v19 }
0x4251   :  { %9098 = vmatprep.mubr.msk.f32.mxu0 %vm185_vm1, %v6880_v37 }
0x4256   :  { %9599 = vmatpush3.bf16.xpose.msk.msra.mxu0 %vm10358_vm2, %v9594_v3 }
0x425d   :  { %9099 = vmatmul.mubr.msk.f32.vlgmr.msra.gmra.mrb[72].mxu0 %vm185_vm1, %v6882_v60 }
0x431f   :  { %v11534_v5 = vpop.f32.mrb[68].mxu0 }
0x4320   :  { %v11536_v61 = vpop.f32.mrb[69].mxu0 }
0x4323   :  { %v11538_v38 = vpop.f32.mrb[70].mxu0 }
0x4324   :  { %v11540_v33 = vpop.f32.mrb[71].mxu0 }
0x4330   :  { %v9100_v12 = vpop.f32.mrb[72].mxu0 }
0x4331   :  { %v6971_v13 = vmul.f32 0.35355338, %v9100_v12  ;;  %v6961_v14 = vpop.f32.mrb[73].mxu0 }
0x4332   :  { %v6970_v22 = vmul.f32 0.35355338, %v6961_v14 }
0x4333   :  { %v6973_v17 = vadd.f32 %v11495_v36, %v6971_v13 }
0x4334   :  { %v6972_v18 = vadd.f32 %v11501_v4, %v6970_v22 }
0x4335   :  { %v6977_v15 = vsel %vm273_vm3, %v6973_v17, -inf }
0x4336   :  { %6978 = vmax.xlane.f32.xlu0 %v6977_v15  ;;  %v6974_v23 = vsel %vm273_vm3, %v6972_v18, -inf  ;;  %v8119_v15 = vld [vmem:[%s11785_s6 + $0xf0] sm:$0xff] }
0x4337   :  { %6975 = vmax.xlane.f32.xlu1 %v6974_v23 }
0x4348   :  { %9926 = vrot.lane.b32.xlu1 %v11447_v28, %s10236_s21 }
0x434c   :  { %7083 = vrot.lane.b32.xlu1 %v11478_v10, %s10235_s20 }
0x4350   :  { %7085 = vrot.lane.b32.xlu1 %v11476_v8, %s10235_s20 }
0x43c3   :  { %v6979_v24 = vpop.xlane.xlu0 %6978 }
0x43c4   :  { %v6981_v16 = vsub.f32 %v6973_v17, %v6979_v24  ;;  %v6976_v26 = vpop.xlane.xlu1 %6975  ;;  %v8120_v24 = vld [vmem:[%s11785_s6 + $0xf8] sm:$0xff] }
0x43c5   :  { %v6980_v21 = vsub.f32 %v6972_v18, %v6976_v26  ;;  %v8117_v18 = vld [vmem:[%s11785_s6 + $0xe0] sm:$0xff] }
0x43c6   :  { %v6984_v59 = vmul.f32 1.442695, %v6981_v16  ;;  %v9618_v16 = vpack.c.bf16 %v8120_v24, %v8119_v15  ;;  %v8165_v24 = vld [vmem:[%s11787_s8 + $0xe8] sm:$0xff] }
0x43c7   :  { %v6982_v52 = vmul.f32 1.442695, %v6980_v21 }
0x43c8   :  { %10168 = vpow2.f32 %v6984_v59  ;;  %v9927_v27 = vpop.permute.xlu1 %9926 }
0x43c9   :  { %v9929_v7 = vunpack.i.h.bf16 %v9927_v27  ;;  %v9928_v6 = vunpack.i.l.bf16 %v9927_v27  ;;  %10170 = vpow2.f32 %v6982_v52 }
0x43cb   :  { %v9600_v30 = vpack.c.bf16 %v9929_v7, %v9928_v6 }
0x43cc   :  { %v7084_v56 = vpop.permute.xlu1 %7083 }
0x43cd   :  { %9601 = vmatprep.subr.bf16.mxu1 %v9600_v30 }
0x43ce   :  { %9603 = vmatpush3.bf16.msra.mxu1 %v9600_v30 }
0x43d0   :  { %v7086_v57 = vpop.permute.xlu1 %7085 }
0x43d2   :  { %v10169_v39 = vpop.eup %10168 }
0x43d3   :  { %v6989_v10 = vsel %vm273_vm3, %v10169_v39, 0.0  ;;  %v10171_v43 = vpop.eup %10170 }
0x43d4   :  { %6990 = vadd.xlane.f32.xlu0 %v6989_v10  ;;  %v6986_v8 = vsel %vm273_vm3, %v10171_v43, 0.0 }
0x43d8   :  { %6987 = vadd.xlane.f32.xlu0 %v6986_v8 }
0x43ee   :  { %9931 = vrot.lane.b32.xlu0 %v11447_v28, %s10235_s20 }
0x4461   :  { %v6991_v42 = vpop.xlane.xlu0 %6990 }
0x4462   :  { %10172 = vrcp.f32 %v6991_v42 }
0x4465   :  { %v6988_v46 = vpop.xlane.xlu0 %6987 }
0x4466   :  { %10174 = vrcp.f32 %v6988_v46 }
0x4469   :  { %v9932_v44 = vpop.permute.xlu0 %9931 }
0x446a   :  { %v9934_v20 = vunpack.i.h.bf16 %v9932_v44  ;;  %v9933_v48 = vunpack.i.l.bf16 %v9932_v44 }
0x446c   :  { %v9604_v31 = vpack.c.bf16 %v9934_v20, %v9933_v48  ;;  %v10173_v51 = vpop.eup %10172 }
0x446d   :  { %v6995_v54 = vmul.f32 %v10173_v51, %v10169_v39 }
0x446e   :  { %9606 = vmatprep.subr.msk.bf16.mxu1 %vm10358_vm2, %v9604_v31 }
0x4470   :  { %v10175_v53 = vpop.eup %10174 }
0x4471   :  { %v6993_v50 = vmul.f32 %v10175_v53, %v10171_v43 }
0x4473   :  { %9105 = vmatprep.mubr.msk.f32.mxu1 %vm273_vm3, %v6993_v50 }
0x4474   :  { %9106 = vmatmul.mubr.msk.f32.vlgmr.msra.gmra.mrb[54].mxu1 %vm273_vm3, %v6995_v54 }
0x4475   :  { %9609 = vmatpush3.bf16.xpose.msk.msra.mxu1 %vm10358_vm2, %v9604_v31  ;;  %9112 = vmatprep.mubr.msk.f32.mxu1 %vm185_vm1, %v7084_v56 }
0x447c   :  { %9113 = vmatmul.mubr.msk.f32.vlgmr.msra.gmra.mrb[56].mxu1 %vm185_vm1, %v7086_v57 }
0x4547   :  { %v9107_v35 = vpop.f32.mrb[54].mxu1 }
0x4548   :  { %v7074_v58 = vpop.f32.mrb[55].mxu1 }
0x454f   :  { %v9114_v41 = vpop.f32.mrb[56].mxu1 }
0x4550   :  { %v7175_v55 = vmul.f32 0.35355338, %v9114_v41  ;;  %v7165_v62 = vpop.f32.mrb[57].mxu1 }
0x4551   :  { %v7174_v40 = vmul.f32 0.35355338, %v7165_v62 }
0x4552   :  { %v7177_v25 = vadd.f32 %v11495_v36, %v7175_v55 }
0x4553   :  { %v7176_v29 = vadd.f32 %v11501_v4, %v7174_v40 }
0x4554   :  { %v7181_v0 = vsel %vm273_vm3, %v7177_v25, -inf }
0x4555   :  { %7182 = vmax.xlane.f32.xlu0 %v7181_v0  ;;  %v7178_v45 = vsel %vm273_vm3, %v7176_v29, -inf  ;;  %v8158_v0 = vld [vmem:[%s11786_s7 + $0xb0] sm:$0xff] }
0x4556   :  { %7179 = vmax.xlane.f32.xlu1 %v7178_v45  ;;  %v8159_v45 = vld [vmem:[%s11786_s7 + $0xb8] sm:$0xff] }
0x4567   :  { %9936 = vrot.lane.b32.xlu1 %v11447_v28, %s10233_s18 }
0x456b   :  { %7291 = vrot.lane.b32.xlu1 %v11538_v38, %s10239_s24 }
0x456f   :  { %7297 = vrot.lane.b32.xlu1 %v7074_v58, %s10240_s16 }
0x4573   :  { %7299 = vrot.lane.b32.xlu1 %v9107_v35, %s10240_s16 }
0x45e2   :  { %v7183_v49 = vpop.xlane.xlu0 %7182 }
0x45e3   :  { %v7185_v36 = vsub.f32 %v7177_v25, %v7183_v49  ;;  %v7180_v9 = vpop.xlane.xlu1 %7179  ;;  %v8157_v25 = vld [vmem:[%s11786_s7 + $0xa8] sm:$0xff]  ;;  %v9626_v49 = vpack.c.bf16 %v8159_v45, %v8158_v0 }
0x45e4   :  { %v7184_v4 = vsub.f32 %v7176_v29, %v7180_v9  ;;  %v7691_v0 = vld [vmem:[%s11788_s9 + $0x8] sm:$0xff] }
0x45e5   :  { %v7188_v47 = vmul.f32 1.442695, %v7185_v36 }
0x45e6   :  { %v7186_v1 = vmul.f32 1.442695, %v7184_v4 }
0x45e7   :  { %v9937_v2 = vpop.permute.xlu1 %9936 }
0x45e8   :  { %10176 = vpow2.f32 %v7186_v1  ;;  %v9939_v32 = vunpack.i.h.bf16 %v9937_v2  ;;  %v9938_v34 = vunpack.i.l.bf16 %v9937_v2 }
0x45e9   :  { %10178 = vpow2.f32 %v7188_v47 }
0x45ea   :  { %v9610_v3 = vpack.c.bf16 %v9939_v32, %v9938_v34  ;;  %v8154_v34 = vld [vmem:[%s11783_s4 + $0x29] ss:$0 sm:$0xff] }
0x45eb   :  { %v7292_v59 = vpop.permute.xlu1 %7291 }
0x45ec   :  { %9611 = vmatprep.subr.bf16.mxu0 %v9610_v3  ;;  %v7312_v39 = vsel %vm185_vm1, %v11534_v5, %v7292_v59 }
0x45ed   :  { %9613 = vmatpush3.bf16.msra.mxu0 %v9610_v3 }
0x45ef   :  { %v7298_v52 = vpop.permute.xlu1 %7297 }
0x45f2   :  { %v10177_v28 = vpop.eup %10176 }
0x45f3   :  { %v7190_v19 = vsel %vm273_vm3, %v10177_v28, 0.0  ;;  %v10179_v37 = vpop.eup %10178  ;;  %v7300_v7 = vpop.permute.xlu1 %7299 }
0x45f4   :  { %7191 = vadd.xlane.f32.xlu0 %v7190_v19  ;;  %v7193_v60 = vsel %vm273_vm3, %v10179_v37, 0.0  ;;  %v7314_v8 = vsel %vm273_vm3, %v7312_v39, %v7300_v7 }
0x45f8   :  { %7194 = vadd.xlane.f32.xlu0 %v7193_v60 }
0x460e   :  { %7289 = vrot.lane.b32.xlu0 %v11540_v33, %s10239_s24  ;;  %v8118_v33 = vld [vmem:[%s11785_s6 + $0xe8] sm:$0xff] }
0x460f   :  { %v9614_v23 = vpack.c.bf16 %v8118_v33, %v8117_v18  ;;  %v8162_v18 = vld [vmem:[%s11787_s8 + $0xd0] sm:$0xff]  ;;  %v8163_v33 = vld [vmem:[%s11787_s8 + $0xd8] sm:$0xff] }
0x4610   :  { %v9634_v15 = vpack.c.bf16 %v8163_v33, %v8162_v18 }
0x4611   :  { %9615 = vmatprep.subr.bf16.mxu0 %v9614_v23 }
0x4681   :  { %v7192_v38 = vpop.xlane.xlu0 %7191 }
0x4682   :  { %10180 = vrcp.f32 %v7192_v38 }
0x4685   :  { %v7195_v12 = vpop.xlane.xlu0 %7194 }
0x4686   :  { %10182 = vrcp.f32 %v7195_v12 }
0x4689   :  { %v7290_v27 = vpop.permute.xlu0 %7289 }
0x468a   :  { %v7311_v6 = vsel %vm185_vm1, %v11536_v61, %v7290_v27  ;;  %v8151_v61 = vld [vmem:[%s11783_s4 + $0x28] ss:$0 sm:$0xff] }
0x468b   :  { %v7313_v10 = vsel %vm273_vm3, %v7311_v6, %v7298_v52  ;;  %v8168_v52 = vld [vmem:[%s11783_s4 + $0x2b] ss:$0 sm:$0xff] }
0x468c   :  { %v10181_v13 = vpop.eup %10180 }
0x468d   :  { %v7197_v14 = vmul.f32 %v10181_v13, %v10177_v28  ;;  %v8155_v28 = vld [vmem:[%s11783_s4 + $0x2a] ss:$0 sm:$0xff] }
0x468f   :  { %9119 = vmatprep.mubr.msk.f32.mxu0 %vm273_vm3, %v7197_v14  ;;  %v8160_v14 = vld [vmem:[%s11787_s8 + $0xc0] sm:$0xff] }
0x4690   :  { %v10183_v22 = vpop.eup %10182 }
0x4691   :  { %v7199_v17 = vmul.f32 %v10183_v22, %v10179_v37  ;;  %v8161_v22 = vld [vmem:[%s11787_s8 + $0xc8] sm:$0xff] }
0x4693   :  { %9120 = vmatmul.mubr.msk.f32.vlgmr.msra.gmra.mrb[74].mxu0 %vm273_vm3, %v7199_v17  ;;  %v9630_v17 = vpack.c.bf16 %v8161_v22, %v8160_v14 }
0x4694   :  { %9617 = vmatpush3.bf16.msra.mxu0 %v9614_v23  ;;  %v8164_v23 = vld [vmem:[%s11787_s8 + $0xe0] sm:$0xff] }
0x4695   :  { %9619 = vmatprep.subr.bf16.mxu0 %v9618_v16 }
0x4698   :  { %9621 = vmatpush3.bf16.msra.mxu0 %v9618_v16  ;;  %v9638_v16 = vpack.c.bf16 %v8165_v24, %v8164_v23 }
0x4699   :  { %9631 = vmatprep.subr.bf16.mxu0 %v9630_v17 }
0x4766   :  { %v9121_v26 = vpop.f32.mrb[74].mxu0 }
0x4767   :  { %7307 = vrot.lane.b32.xlu1 %v9121_v26, %s11794_s25  ;;  %v7278_v21 = vpop.f32.mrb[75].mxu0  ;;  %v8166_v26 = vld [vmem:[%s11787_s8 + $0xf0] sm:$0xff] }
0x4768   :  { %7305 = vrot.lane.b32.xlu0 %v7278_v21, %s11794_s25  ;;  %v8167_v21 = vld [vmem:[%s11787_s8 + $0xf8] sm:$0xff] }
0x4769   :  { %v9642_v59 = vpack.c.bf16 %v8167_v21, %v8166_v26  ;;  %v7702_v26 = vld [vmem:[%s11788_s9 + $0x60] sm:$0xff]  ;;  %v7703_v21 = vld [vmem:[%s11788_s9 + $0x68] sm:$0xff] }
0x47d9   :  { %v7308_v30 = vpop.permute.xlu1 %7307 }
0x47da   :  { %v7306_v43 = vpop.permute.xlu0 %7305  ;;  %v7316_v46 = vsel %vm1023_vm4, %v7314_v8, %v7308_v30 }
0x47db   :  { %v7315_v42 = vsel %vm1023_vm4, %v7313_v10, %v7306_v43 }
0x47dc   :  { %9130 = vmatprep.mubr.msk.f32.mxu0 %vm44_vm0, %v7315_v42 }
0x47dd   :  { %9131 = vmatmul.mubr.msk.f32.vlgmr.msra.gmra.mrb[76].mxu0 %vm44_vm0, %v7316_v46 }
0x47de   :  { %9633 = vmatpush3.bf16.msra.mxu0 %v9630_v17 }
0x47df   :  { %9635 = vmatprep.subr.bf16.mxu0 %v9634_v15 }
0x47e2   :  { %9637 = vmatpush3.bf16.msra.mxu0 %v9634_v15 }
0x47e3   :  { %9639 = vmatprep.subr.bf16.mxu0 %v9638_v16 }
0x47e6   :  { %9641 = vmatpush3.bf16.msra.mxu0 %v9638_v16 }
0x47e7   :  { %9643 = vmatprep.subr.bf16.mxu0 %v9642_v59 }
0x47ea   :  { %9645 = vmatpush3.bf16.msra.mxu0 %v9642_v59  ;;  %v9682_v59 = vpack.c.bf16 %v7703_v21, %v7702_v26 }
0x48b0   :  { %v9132_v44 = vpop.f32.mrb[76].mxu0 }
0x48b1   :  { %v7399_v20 = vadd.f32 %v9132_v44, %v8151_v61  ;;  %v7393_v5 = vpop.f32.mrb[77].mxu0 }
0x48b2   :  { %v7394_v48 = vadd.f32 %v8151_v61, %v7393_v5 }
0x48b3   :  { %v7403_v31 = vadd.f32 %v7399_v20, %v11465_v63 }
0x48b4   :  { %v7402_v51 = vadd.f32 %v7394_v48, %v11461_v11  ;;  %v8156_v11 = vld [vmem:[%s11786_s7 + $0xa0] sm:$0xff] }
0x48b5   :  { %v7409_v53 = vsel %vm44_vm0, %v7403_v31, 0.0  ;;  %v9622_v29 = vpack.c.bf16 %v8157_v25, %v8156_v11 }
0x48b6   :  { %7410 = vadd.xlane.f32.xlu1 %v7409_v53  ;;  %v7406_v50 = vsel %vm44_vm0, %v7402_v51, 0.0 }
0x48b7   :  { %7407 = vadd.xlane.f32.xlu0 %v7406_v50  ;;  %9623 = vmatprep.subr.bf16.mxu1 %v9622_v29 }
0x48b8   :  { %9625 = vmatpush3.bf16.msra.mxu1 %v9622_v29  ;;  %v7690_v29 = vld [vmem:[%s11788_s9] sm:$0xff] }
0x48b9   :  { %9627 = vmatprep.subr.bf16.mxu1 %v9626_v49 }
0x48bc   :  { %9629 = vmatpush3.bf16.msra.mxu1 %v9626_v49  ;;  %v9646_v49 = vpack.c.bf16 %v7691_v0, %v7690_v29 }
0x48be   :  { %9648 = vmatprep.subr.msk.bf16.mxu1 %vm11675_vm6, %v9646_v49 }
0x4943   :  { %v7411_v54 = vpop.xlane.xlu1 %7410 }
0x4944   :  { %v7413_v56 = vmul.f32 0.03125, %v7411_v54  ;;  %v7408_v57 = vpop.xlane.xlu0 %7407 }
0x4945   :  { %v7412_v35 = vmul.f32 0.03125, %v7408_v57 }
0x4946   :  { %v7415_v58 = vsub.f32 %v7403_v31, %v7413_v56 }
0x4947   :  { %v7414_v41 = vsub.f32 %v7402_v51, %v7412_v35  ;;  %v8171_v35 = vld [vmem:[%s11783_s4 + $0x2c] ss:$0 sm:$0xff] }
0x4948   :  { %v7417_v40 = vmul.f32 %v7415_v58, %v7415_v58 }
0x4949   :  { %v7416_v55 = vmul.f32 %v7414_v41, %v7414_v41 }
0x494a   :  { %v7421_v63 = vsel %vm44_vm0, %v7417_v40, 0.0 }
0x494b   :  { %v7418_v62 = vsel %vm44_vm0, %v7416_v55, 0.0 }
0x494c   :  { %7419 = vadd.xlane.f32.xlu0 %v7418_v62 }
0x4950   :  { %7422 = vadd.xlane.f32.xlu0 %v7421_v63 }
0x49d9   :  { %v7420_v36 = vpop.xlane.xlu0 %7419 }
0x49da   :  { %v7424_v9 = vmul.f32 0.03125, %v7420_v36  ;;  %v7692_v36 = vld [vmem:[%s11788_s9 + $0x10] sm:$0xff] }
0x49dc   :  { %v7426_v4 = vadd.f32 1e-05, %v7424_v9  ;;  %v7693_v9 = vld [vmem:[%s11788_s9 + $0x18] sm:$0xff] }
0x49dd   :  { %v7423_v47 = vpop.xlane.xlu0 %7422 }
0x49de   :  { %10184 = vrsqrt.f32 %v7426_v4  ;;  %v7425_v1 = vmul.f32 0.03125, %v7423_v47  ;;  %v9652_v4 = vpack.c.bf16 %v7693_v9, %v7692_v36  ;;  %v7694_v47 = vld [vmem:[%s11788_s9 + $0x20] sm:$0xff] }
0x49e0   :  { %v7427_v2 = vadd.f32 1e-05, %v7425_v1  ;;  %v7695_v1 = vld [vmem:[%s11788_s9 + $0x28] sm:$0xff] }
0x49e2   :  { %10186 = vrsqrt.f32 %v7427_v2  ;;  %v9658_v2 = vpack.c.bf16 %v7695_v1, %v7694_v47 }
0x49e8   :  { %v10185_v32 = vpop.eup %10184 }
0x49e9   :  { %v7430_v3 = vmul.f32 %v10185_v32, %v7414_v41  ;;  %v7696_v32 = vld [vmem:[%s11788_s9 + $0x30] sm:$0xff] }
0x49eb   :  { %v7436_v19 = vmul.f32 %v8154_v34, %v7430_v3 }
0x49ec   :  { %v10187_v37 = vpop.eup %10186 }
0x49ed   :  { %v7431_v60 = vmul.f32 %v10187_v37, %v7415_v58  ;;  %v7442_v38 = vadd.f32 %v8155_v28, %v7436_v19  ;;  %v7699_v19 = vld [vmem:[%s11788_s9 + $0x48] sm:$0xff] }
0x49ef   :  { %v7437_v12 = vmul.f32 %v8154_v34, %v7431_v60  ;;  %9141 = vmatprep.mubr.msk.f32.mxu1 %vm44_vm0, %v7442_v38  ;;  %v7697_v34 = vld [vmem:[%s11788_s9 + $0x38] sm:$0xff]  ;;  %v7700_v60 = vld [vmem:[%s11788_s9 + $0x50] sm:$0xff] }
0x49f0   :  { %v9664_v3 = vpack.c.bf16 %v7697_v34, %v7696_v32 }
0x49f1   :  { %v7443_v13 = vadd.f32 %v8155_v28, %v7437_v12  ;;  %v7698_v28 = vld [vmem:[%s11788_s9 + $0x40] sm:$0xff] }
0x49f2   :  { %v9670_v37 = vpack.c.bf16 %v7699_v19, %v7698_v28 }
0x49f3   :  { %9142 = vmatmul.mubr.msk.f32.vlgmr.msra.gmra.mrb[58].mxu1 %vm44_vm0, %v7443_v13 }
0x49f4   :  { %9651 = vmatpush3.bf16.xpose.msk.msra.mxu1 %vm11675_vm6, %v9646_v49 }
0x49f5   :  { %9654 = vmatprep.subr.msk.bf16.mxu1 %vm11675_vm6, %v9652_v4 }
0x49fc   :  { %9657 = vmatpush3.bf16.xpose.msk.msra.mxu1 %vm11675_vm6, %v9652_v4 }
0x49fd   :  { %9660 = vmatprep.subr.msk.bf16.mxu1 %vm11675_vm6, %v9658_v2 }
0x4a04   :  { %9663 = vmatpush3.bf16.xpose.msk.msra.mxu1 %vm11675_vm6, %v9658_v2 }
0x4a05   :  { %9666 = vmatprep.subr.msk.bf16.mxu1 %vm11675_vm6, %v9664_v3 }
0x4a0c   :  { %9669 = vmatpush3.bf16.xpose.msk.msra.mxu1 %vm11675_vm6, %v9664_v3 }
0x4a0d   :  { %9672 = vmatprep.subr.msk.bf16.mxu1 %vm11675_vm6, %v9670_v37 }
0x4a14   :  { %9675 = vmatpush3.bf16.xpose.msk.msra.mxu1 %vm11675_vm6, %v9670_v37 }
0x4ac6   :  { %v9143_v27 = vpop.f32.mrb[58].mxu1 }
0x4ac7   :  { %v7542_v7 = vadd.f32 %v9143_v27, %v8168_v52  ;;  %v7536_v6 = vpop.f32.mrb[59].mxu1  ;;  %v7705_v27 = vld [vmem:[%s11788_s9 + $0x78] sm:$0xff] }
0x4ac8   :  { %v7537_v30 = vadd.f32 %v8168_v52, %v7536_v6  ;;  %v7704_v52 = vld [vmem:[%s11788_s9 + $0x70] sm:$0xff] }
0x4ac9   :  { %v7546_v39 = vmul.f32 %v7542_v7, %v7542_v7 }
0x4aca   :  { %v7545_v10 = vmul.f32 %v7537_v30, %v7537_v30 }
0x4acb   :  { %v7548_v43 = vmul.f32 %v7546_v39, %v7542_v7 }
0x4acc   :  { %v7547_v8 = vmul.f32 %v7545_v10, %v7537_v30 }
0x4acd   :  { %v7550_v42 = vmul.f32 0.044715, %v7548_v43 }
0x4ace   :  { %v7549_v46 = vmul.f32 0.044715, %v7547_v8 }
0x4acf   :  { %v7552_v61 = vadd.f32 %v7550_v42, %v7542_v7 }
0x4ad0   :  { %v7551_v44 = vadd.f32 %v7549_v46, %v7537_v30  ;;  %v8174_v46 = vld [vmem:[%s11783_s4 + $0x2d] ss:$0 sm:$0xff] }
0x4ad1   :  { %v7554_v20 = vmul.f32 0.7978846, %v7552_v61 }
0x4ad2   :  { %v7553_v5 = vmul.f32 0.7978846, %v7551_v44 }
0x4ad3   :  { %10188 = vtanh.f32 %v7554_v20 }
0x4ad4   :  { %10190 = vtanh.f32 %v7553_v5  ;;  %v8175_v5 = vld [vmem:[%s11783_s4 + $0x2e] ss:$0 sm:$0xff] }
0x4add   :  { %v10189_v48 = vpop.eup %10188 }
0x4ade   :  { %v10191_v31 = vpop.eup %10190  ;;  %v7558_v51 = vadd.f32 1.0, %v10189_v48 }
0x4adf   :  { %v7557_v53 = vadd.f32 1.0, %v10191_v31 }
0x4ae0   :  { %v7560_v50 = vmul.f32 0.5, %v7558_v51 }
0x4ae1   :  { %v7559_v54 = vmul.f32 0.5, %v7557_v53 }
0x4ae2   :  { %v7562_v57 = vmul.f32 %v7560_v50, %v7542_v7  ;;  %v9688_v7 = vpack.c.bf16 %v7705_v27, %v7704_v52  ;;  %v8176_v50 = vld [vmem:[%s11783_s4 + $0x4] ss:$0 sm:$0xff] }
0x4ae3   :  { %v7561_v56 = vmul.f32 %v7559_v54, %v7537_v30 }
0x4ae5   :  { %9160 = vmatprep.mubr.msk.f32.mxu0 %vm1275_vm5, %v7561_v56 }
0x4ae6   :  { %9161 = vmatmul.mubr.msk.f32.vlgmr.msra.gmra.mrb[78].mxu0 %vm1275_vm5, %v7562_v57 }
0x4bb9   :  { %v9162_v58 = vpop.f32.mrb[78].mxu0 }
0x4bba   :  { %v7645_v41 = vadd.f32 %v9162_v58, %v8171_v35  ;;  %v7639_v55 = vpop.f32.mrb[79].mxu0 }
0x4bbb   :  { %v7640_v62 = vadd.f32 %v8171_v35, %v7639_v55 }
0x4bbc   :  { %v7649_v40 = vadd.f32 %v7645_v41, %v7443_v13 }
0x4bbd   :  { %v7648_v63 = vadd.f32 %v7640_v62, %v7442_v38  ;;  %v7701_v38 = vld [vmem:[%s11788_s9 + $0x58] sm:$0xff] }
0x4bbe   :  { %v7655_v11 = vsel %vm44_vm0, %v7649_v40, 0.0  ;;  %v9676_v12 = vpack.c.bf16 %v7701_v38, %v7700_v60 }
0x4bbf   :  { %7656 = vadd.xlane.f32.xlu1 %v7655_v11  ;;  %v7652_v25 = vsel %vm44_vm0, %v7648_v63, 0.0 }
0x4bc0   :  { %7653 = vadd.xlane.f32.xlu0 %v7652_v25  ;;  %9678 = vmatprep.subr.msk.bf16.mxu1 %vm11675_vm6, %v9676_v12 }
0x4bc1   :  { %9681 = vmatpush3.bf16.xpose.msk.msra.mxu1 %vm11675_vm6, %v9676_v12 }
0x4bc2   :  { %9684 = vmatprep.subr.msk.bf16.mxu1 %vm11675_vm6, %v9682_v59 }
0x4bc9   :  { %9687 = vmatpush3.bf16.xpose.msk.msra.mxu1 %vm11675_vm6, %v9682_v59 }
0x4bca   :  { %9690 = vmatprep.subr.msk.bf16.mxu1 %vm11675_vm6, %v9688_v7 }
0x4bd1   :  { %9693 = vmatpush3.bf16.xpose.msk.msra.mxu1 %vm11675_vm6, %v9688_v7 }
0x4c4c   :  { %v7657_v13 = vpop.xlane.xlu1 %7656 }
0x4c4d   :  { %v7659_v14 = vmul.f32 0.03125, %v7657_v13  ;;  %v7654_v22 = vpop.xlane.xlu0 %7653 }
0x4c4e   :  { %v7658_v17 = vmul.f32 0.03125, %v7654_v22 }
0x4c4f   :  { %v7661_v18 = vsub.f32 %v7649_v40, %v7659_v14 }
0x4c50   :  { %v7660_v33 = vsub.f32 %v7648_v63, %v7658_v17 }
0x4c51   :  { %v7663_v15 = vmul.f32 %v7661_v18, %v7661_v18 }
0x4c52   :  { %v7662_v23 = vmul.f32 %v7660_v33, %v7660_v33 }
0x4c53   :  { %v7667_v24 = vsel %vm44_vm0, %v7663_v15, 0.0 }
0x4c54   :  { %7668 = vadd.xlane.f32.xlu1 %v7667_v24  ;;  %v7664_v16 = vsel %vm44_vm0, %v7662_v23, 0.0 }
0x4c55   :  { %7665 = vadd.xlane.f32.xlu0 %v7664_v16 }
0x4ce1   :  { %v7669_v6 = vpop.xlane.xlu1 %7668 }
0x4ce2   :  { %v7671_v30 = vmul.f32 0.03125, %v7669_v6  ;;  %v7666_v39 = vpop.xlane.xlu0 %7665 }
0x4ce3   :  { %v7670_v10 = vmul.f32 0.03125, %v7666_v39 }
0x4ce4   :  { %v7673_v43 = vadd.f32 1e-05, %v7671_v30 }
0x4ce5   :  { %v7672_v8 = vadd.f32 1e-05, %v7670_v10 }
0x4ce6   :  { %10192 = vrsqrt.f32 %v7673_v43 }
0x4ce7   :  { %10194 = vrsqrt.f32 %v7672_v8 }
0x4cf0   :  { %v10193_v42 = vpop.eup %10192 }
0x4cf1   :  { %v10195_v61 = vpop.eup %10194  ;;  %v7677_v44 = vmul.f32 %v10193_v42, %v7661_v18 }
0x4cf2   :  { %v7676_v20 = vmul.f32 %v10195_v61, %v7660_v33 }
0x4cf3   :  { %v7683_v48 = vmul.f32 %v8174_v46, %v7677_v44 }
0x4cf4   :  { %v7682_v31 = vmul.f32 %v8174_v46, %v7676_v20 }
0x4cf5   :  { %v7689_v53 = vadd.f32 %v8175_v5, %v7683_v48 }
0x4cf6   :  { %v7688_v51 = vadd.f32 %v8175_v5, %v7682_v31 }
0x4cf8   :  { %9195 = vmatprep.mubr.msk.f32.mxu1 %vm44_vm0, %v7688_v51 }
0x4cf9   :  { %9196 = vmatmul.mubr.msk.f32.vlgmr.msra.gmra.mrb[60].mxu1 %vm44_vm0, %v7689_v53 }
0x4dcc   :  { %v9197_v54 = vpop.f32.mrb[60].mxu1 }
0x4dcd   :  { %v7837_v56 = vadd.f32 %v9197_v54, %v8176_v50  ;;  %v7831_v57 = vpop.f32.mrb[61].mxu1 }
0x4dce   :  { %v7832_v35 = vadd.f32 %v8176_v50, %v7831_v57 }
0x4dcf   :  { %7841 = vst [vmem:[#allocation2 + $0x8] sm:$0xff] %v7837_v56 }
0x4dd0   :  { %7840 = vst [vmem:[#allocation2] sm:$0xff] %v7832_v35 }
0x4dd1   :  { %10215 = shalt.err (!%p10212_p4)
}
0x4dd2   :  { %s10216_s4 = scalar_lea.hbm %s11789_s10, 256 }
0x4dd3   :  { %p10217_p5 = scmp.ne.s32.totalorder %s11789_s10, %s10216_s4  ;;  %p10220_p6 = scmp.lt.u32.totalorder %s10216_s4, %s11789_s10 }
0x4dd5   :  { %p10222_p7 = pnand %p10220_p6, %p10217_p5 }
0x4dd7   :  { %10225 = shalt.err (!%p10222_p7)
}
0x4dd8   :  { %s10243_s6 = smov 128  }
0x4dd9   :  { %7853 = dma.vmem_to_hbm [thread:$0]  %s7848_s2, 256, %s11789_s10, [#allocation3], %s10243_s6, %s10243_s6, %s10239_s24  }
0x4dda   :  { %10226 = dma.done.wait [#allocation3], 256  }
0x4ddb   :  { %10227 = vsyncadd [#allocation3], 4294967040 }
0x4ddc   :  { %7857 = vsyncpa [#allocation3], 1 }

</bundles_post_ra>
